<compile_context>
chip_gen: v5e
topology: v5e:2x2
jax: 0.10.0
libtpu: 0.0.40
codegen_flags: <defaults>
</compile_context>

<pallas_src>
import jax
import jax.numpy as jnp
from jax.experimental import pallas as pl
from jax.experimental.pallas import tpu as pltpu  # noqa: F401  (kept per template; no TPU-specific params needed at these sizes)

# ---- module hyper-parameters (small, consistent with the module ctor) ------
TGT_LEN = 16
MEM_LEN = 32
RATIO = 2
D_MODEL = 32
NHEAD = 4
HEAD_DIM = D_MODEL // NHEAD
DIM_FF = 64
BATCH = 2
EPS = 1e-5  # nn.LayerNorm default

KC1 = TGT_LEN // RATIO  # compressed self-attn K/V length (8)
KC2 = MEM_LEN // RATIO  # compressed cross-attn K/V length (16)

# ---------------------------------------------------------------------------
# Packed-parameter layout (static; offsets known at trace time, all row
# offsets are multiples of 8 so every in-kernel slice is sublane-aligned).
# Slabs are padded to 128 lanes (lane-dense rows).
# ---------------------------------------------------------------------------
MAT_WIDTH = 128
VEC_WIDTH = 128

MAT_SPECS = (
    # block-diag-over-batch [K-compressor ; V-compressor] stacks
    ("comp1", 2 * BATCH * KC1, BATCH * TGT_LEN),   # (32, 32) self-attn
    ("comp2", 2 * BATCH * KC2, BATCH * MEM_LEN),   # (64, 64) cross-attn
    ("sa_wq", D_MODEL, D_MODEL),
    ("sa_wkv", D_MODEL, 2 * D_MODEL),              # [Wk | Wv] fused, 64 lanes
    ("sa_wo", D_MODEL, D_MODEL),
    ("ca_wq", D_MODEL, D_MODEL),
    ("ca_wkv", D_MODEL, 2 * D_MODEL),
    ("ca_wo", D_MODEL, D_MODEL),
    ("l1_w", D_MODEL, DIM_FF),
    ("l2_w", DIM_FF, D_MODEL),
)


def _build_mat_layout():
    off, r = {}, 0
    for name, rows, cols in MAT_SPECS:
        off[name] = (r, rows, cols)
        r += rows  # every row count above is a multiple of 8
    return off, r


MAT_OFFSETS, MAT_ROWS = _build_mat_layout()

VEC_SPECS = (
    ("sa_bq", D_MODEL), ("sa_bkv", 2 * D_MODEL), ("sa_bo", D_MODEL),
    ("ca_bq", D_MODEL), ("ca_bkv", 2 * D_MODEL), ("ca_bo", D_MODEL),
    ("l1_b", DIM_FF), ("l2_b", D_MODEL),
    ("n1_g", D_MODEL), ("n1_b", D_MODEL),
    ("n2_g", D_MODEL), ("n2_b", D_MODEL),
    ("n3_g", D_MODEL), ("n3_b", D_MODEL),
)
VEC_OFFSETS = {name: (i, cols) for i, (name, cols) in enumerate(VEC_SPECS)}
VEC_ALLOC_ROWS = 16  # pad 14 -> 16 rows


# ---------------------------------------------------------------------------
# Pallas kernel: whole decoder layer, both batch elements, one invocation.
# ---------------------------------------------------------------------------
def decoder_layer_kernel(tgt_ref, mem_ref, wmat_ref, bvec_ref, out_ref):
    def mat(name):
        r, rows, cols = MAT_OFFSETS[name]
        return wmat_ref[r:r + rows, 0:cols]

    def vec(name):
        r, cols = VEC_OFFSETS[name]
        return bvec_ref[r:r + 1, 0:cols]

    def dot(a, b):
        return jnp.dot(a, b, preferred_element_type=jnp.float32)

    def softmax_rows(s):
        # exact normalization (matches torch.softmax; approx reciprocal was
        # the source of the previous 3e-3 error)
        s = s - jnp.max(s, axis=-1, keepdims=True)
        p = jnp.exp(s)
        return p / jnp.sum(p, axis=-1, keepdims=True)

    def layernorm(x, g, b):
        mu = jnp.mean(x, axis=-1, keepdims=True)
        var = jnp.mean((x - mu) ** 2, axis=-1, keepdims=True)
        return (x - mu) * jax.lax.rsqrt(var + EPS) * g + b

    def linformer_attention(x, src, kc, comp_kv, wq, bq, wkv, bkv, wo, bo):
        # x:   (B*Lt, D)        batch-stacked queries
        # src: (B*src_len, D)   batch-stacked sequence to compress
        q = dot(x, wq) + bq                  # (B*Lt, D); 1/sqrt(hd) folded into wq/bq
        c = dot(comp_kv, src)                # (2*B*kc, D): [K-compressed ; V-compressed], one matmul
        kv = dot(c, wkv)                     # (2*B*kc, 2D): [c@Wk | c@Wv], one matmul
        bkc = BATCH * kc
        kb_all = kv[0:bkc, 0:D_MODEL] + bkv[:, 0:D_MODEL]                       # K-compressed @ Wk + bk
        vb_all = kv[bkc:2 * bkc, D_MODEL:2 * D_MODEL] + bkv[:, D_MODEL:2 * D_MODEL]  # V-compressed @ Wv + bv

        pv_rows = []
        for b in range(BATCH):               # static unroll over batch
            qb = q[b * TGT_LEN:(b + 1) * TGT_LEN, :]                 # (Lt, D)
            kbT = jnp.transpose(kb_all[b * kc:(b + 1) * kc, :])      # (D, kc), ONE transpose / batch
            vb = vb_all[b * kc:(b + 1) * kc, :]                      # (kc, D)
            pv_heads = []
            for h in range(NHEAD):           # static unroll over heads
                lo, hi = h * HEAD_DIM, (h + 1) * HEAD_DIM
                p = softmax_rows(dot(qb[:, lo:hi], kbT[lo:hi, :]))   # (Lt, kc)
                pv_heads.append(dot(p, vb[:, lo:hi]))                # (Lt, hd)
            pv_rows.append(jnp.concatenate(pv_heads, axis=-1))       # (Lt, D) lane concat
        pv = jnp.concatenate(pv_rows, axis=0)                        # (B*Lt, D)
        return dot(pv, wo) + bo                                      # single out-projection for both batches

    x = tgt_ref[...].astype(jnp.float32)   # (B*Lt, D)
    m = mem_ref[...].astype(jnp.float32)   # (B*Lm, D)

    # --- Linformer self-attention + add & norm (dropout1 = identity) -------
    sa = linformer_attention(x, x, KC1, mat("comp1"),
                             mat("sa_wq"), vec("sa_bq"), mat("sa_wkv"), vec("sa_bkv"),
                             mat("sa_wo"), vec("sa_bo"))
    x = layernorm(x + sa, vec("n1_g"), vec("n1_b"))

    # --- Linformer cross-attention + add & norm (dropout2 = identity) ------
    ca = linformer_attention(x, m, KC2, mat("comp2"),
                             mat("ca_wq"), vec("ca_bq"), mat("ca_wkv"), vec("ca_bkv"),
                             mat("ca_wo"), vec("ca_bo"))
    x = layernorm(x + ca, vec("n2_g"), vec("n2_b"))

    # --- feed-forward + add & norm (inner dropout, dropout3 = identity) ----
    h = jnp.maximum(dot(x, mat("l1_w")) + vec("l1_b"), 0.0)   # ReLU
    y = dot(h, mat("l2_w")) + vec("l2_b")
    x = layernorm(x + y, vec("n3_g"), vec("n3_b"))

    out_ref[...] = x.astype(out_ref.dtype)


# ---------------------------------------------------------------------------
# Wrapper (single pallas_call, no grid: everything resident in VMEM)
# ---------------------------------------------------------------------------
@jax.jit
def linformer_decoder_layer(tgt, memory, wmat, bvec):
    """tgt: (Lt, B, D), memory: (Lm, B, D)  ->  (Lt, B, D)"""
    Lt, B, D = tgt.shape
    Lm = memory.shape[0]

    # batch-major, row-stacked slabs: (B*L, D)
    tgt_s = jnp.transpose(tgt, (1, 0, 2)).reshape(B * Lt, D)
    mem_s = jnp.transpose(memory, (1, 0, 2)).reshape(B * Lm, D)

    out = pl.pallas_call(
        decoder_layer_kernel,
        out_shape=jax.ShapeDtypeStruct((B * Lt, D), jnp.float32),
    )(tgt_s, mem_s, wmat, bvec)

    return jnp.transpose(out.reshape(B, Lt, D), (1, 0, 2))  # back to (Lt, B, D)


# ---------------------------------------------------------------------------
# One-time parameter preparation: transpose weights, fold query scale,
# block-diagonalize + stack the Linformer compressors, fuse Wk|Wv, pack the
# tensors into two 128-lane f32 slabs.
# ---------------------------------------------------------------------------
def prepare_params(p):
    D = D_MODEL
    scale = float(HEAD_DIM) ** -0.5

    def block_diag(a):
        kc, L = a.shape
        out = jnp.zeros((BATCH * kc, BATCH * L), jnp.float32)
        for b in range(BATCH):
            out = out.at[b * kc:(b + 1) * kc, b * L:(b + 1) * L].set(a.astype(jnp.float32))
        return out

    comp1 = jnp.concatenate([block_diag(p["linear_k1"]), block_diag(p["linear_v1"])], axis=0)
    comp2 = jnp.concatenate([block_diag(p["linear_k2"]), block_diag(p["linear_v2"])], axis=0)

    mats = {
        "comp1": comp1,
        "comp2": comp2,
        "sa_wq": p["sa_in_w"][0:D, :].T * scale,
        "sa_wkv": jnp.concatenate([p["sa_in_w"][D:2 * D, :].T,
                                   p["sa_in_w"][2 * D:3 * D, :].T], axis=1),
        "sa_wo": p["sa_out_w"].T,
        "ca_wq": p["ca_in_w"][0:D, :].T * scale,
        "ca_wkv": jnp.concatenate([p["ca_in_w"][D:2 * D, :].T,
                                   p["ca_in_w"][2 * D:3 * D, :].T], axis=1),
        "ca_wo": p["ca_out_w"].T,
        "l1_w": p["l1_w"].T,
        "l2_w": p["l2_w"].T,
    }
    vecs = {
        "sa_bq": p["sa_in_b"][:, 0:D] * scale,
        "sa_bkv": p["sa_in_b"][:, D:3 * D],
        "sa_bo": p["sa_out_b"],
        "ca_bq": p["ca_in_b"][:, 0:D] * scale,
        "ca_bkv": p["ca_in_b"][:, D:3 * D],
        "ca_bo": p["ca_out_b"],
        "l1_b": p["l1_b"], "l2_b": p["l2_b"],
        "n1_g": p["n1_g"], "n1_b": p["n1_b"],
        "n2_g": p["n2_g"], "n2_b": p["n2_b"],
        "n3_g": p["n3_g"], "n3_b": p["n3_b"],
    }

    wmat = jnp.zeros((MAT_ROWS, MAT_WIDTH), jnp.float32)
    for name, rows, cols in MAT_SPECS:
        r = MAT_OFFSETS[name][0]
        wmat = wmat.at[r:r + rows, 0:cols].set(mats[name].astype(jnp.float32))

    bvec = jnp.zeros((VEC_ALLOC_ROWS, VEC_WIDTH), jnp.float32)
    for name, cols in VEC_SPECS:
        r = VEC_OFFSETS[name][0]
        bvec = bvec.at[r, 0:cols].set(vecs[name].astype(jnp.float32).reshape(cols))
    return wmat, bvec


# ---------------------------------------------------------------------------
# Deterministic parameter initialization (mirrors the module's __init__ shapes,
# PyTorch conventions: Linear weight (out, in), MHA in_proj (3D, D)).
# ---------------------------------------------------------------------------
def init_params(key):
    ks = jax.random.split(key, 12)

    def xavier(k, shape):
        fan_out, fan_in = shape
        lim = (6.0 / (fan_in + fan_out)) ** 0.5
        return jax.random.uniform(k, shape, jnp.float32, -lim, lim)

    D = D_MODEL
    p = {}
    p["linear_k1"] = xavier(ks[0], (TGT_LEN // RATIO, TGT_LEN))
    p["linear_v1"] = xavier(ks[1], (TGT_LEN // RATIO, TGT_LEN))
    p["linear_k2"] = xavier(ks[2], (MEM_LEN // RATIO, MEM_LEN))
    p["linear_v2"] = xavier(ks[3], (MEM_LEN // RATIO, MEM_LEN))
    p["sa_in_w"] = xavier(ks[4], (3 * D, D))
    p["sa_in_b"] = jnp.zeros((1, 3 * D), jnp.float32)
    p["sa_out_w"] = xavier(ks[5], (D, D))
    p["sa_out_b"] = jnp.zeros((1, D), jnp.float32)
    p["ca_in_w"] = xavier(ks[6], (3 * D, D))
    p["ca_in_b"] = jnp.zeros((1, 3 * D), jnp.float32)
    p["ca_out_w"] = xavier(ks[7], (D, D))
    p["ca_out_b"] = jnp.zeros((1, D), jnp.float32)
    p["l1_w"] = xavier(ks[8], (DIM_FF, D))
    p["l1_b"] = 0.01 * jax.random.normal(ks[9], (1, DIM_FF), jnp.float32)
    p["l2_w"] = xavier(ks[10], (D, DIM_FF))
    p["l2_b"] = 0.01 * jax.random.normal(ks[11], (1, D), jnp.float32)
    for n in ("n1", "n2", "n3"):
        p[f"{n}_g"] = jnp.ones((1, D), jnp.float32)
        p[f"{n}_b"] = jnp.zeros((1, D), jnp.float32)
    return p


# ---------------------------------------------------------------------------
# Independent pure-JAX reference (direct PyTorch semantics on the RAW params;
# exercises the packing / transposing / block-diag / scale-folding transforms).
# ---------------------------------------------------------------------------
def reference(tgt, memory, p):
    D = D_MODEL
    hd = HEAD_DIM
    scale = float(hd) ** -0.5

    def mha(q_in, k_in, v_in, in_w, in_b, out_w, out_b):
        q = q_in @ in_w[0:D].T + in_b[:, 0:D]
        k = k_in @ in_w[D:2 * D].T + in_b[:, D:2 * D]
        v = v_in @ in_w[2 * D:3 * D].T + in_b[:, 2 * D:3 * D]
        q = q * scale
        heads = []
        for h in range(NHEAD):
            qs = q[:, h * hd:(h + 1) * hd]
            ks = k[:, h * hd:(h + 1) * hd]
            vs = v[:, h * hd:(h + 1) * hd]
            a = jax.nn.softmax(qs @ ks.T, axis=-1)
            heads.append(a @ vs)
        attn = jnp.concatenate(heads, axis=-1)
        return attn @ out_w.T + out_b

    def ln(x, g, b):
        mu = x.mean(-1, keepdims=True)
        var = ((x - mu) ** 2).mean(-1, keepdims=True)
        return (x - mu) / jnp.sqrt(var + EPS) * g + b

    tb = jnp.transpose(tgt, (1, 0, 2))
    mb = jnp.transpose(memory, (1, 0, 2))
    outs = []
    for b in range(BATCH):
        x, m = tb[b], mb[b]
        key = p["linear_k1"] @ x
        val = p["linear_v1"] @ x
        t2 = mha(x, key, val, p["sa_in_w"], p["sa_in_b"], p["sa_out_w"], p["sa_out_b"])
        x = ln(x + t2, p["n1_g"], p["n1_b"])
        key = p["linear_k2"] @ m
        val = p["linear_v2"] @ m
        t2 = mha(x, key, val, p["ca_in_w"], p["ca_in_b"], p["ca_out_w"], p["ca_out_b"])
        x = ln(x + t2, p["n2_g"], p["n2_b"])
        h = jax.nn.relu(x @ p["l1_w"].T + p["l1_b"])
        t2 = h @ p["l2_w"].T + p["l2_b"]
        x = ln(x + t2, p["n3_g"], p["n3_b"])
        outs.append(x)
    return jnp.transpose(jnp.stack(outs), (1, 0, 2))


if __name__ == "__main__":
    root = jax.random.PRNGKey(0)
    kp, kt, km = jax.random.split(root, 3)

    params = init_params(kp)
    tgt = jax.random.normal(kt, (TGT_LEN, BATCH, D_MODEL), jnp.float32)
    memory = jax.random.normal(km, (MEM_LEN, BATCH, D_MODEL), jnp.float32)

    # one-time parameter prep (transpose / fold scale / block-diag / pack into two slabs)
    wmat, bvec = prepare_params(params)

    out = linformer_decoder_layer(tgt, memory, wmat, bvec)
    out = jax.block_until_ready(out)

    ref = reference(tgt, memory, params)
    assert out.shape == (TGT_LEN, BATCH, D_MODEL)
    err = float(jnp.max(jnp.abs(out - ref)))
    assert err < 5e-4, f"max abs error {err}"

    print("KERNEL_OK")
</pallas_src>

<mosaic_0001>
module attributes {stable_mosaic.version = 11 : i64} {
  func.func @decoder_layer_kernel(%arg0: memref<32x32xf32, #tpu.memory_space<vmem>>, %arg1: memref<64x32xf32, #tpu.memory_space<vmem>>, %arg2: memref<384x128xf32, #tpu.memory_space<vmem>>, %arg3: memref<16x128xf32, #tpu.memory_space<vmem>>, %arg4: memref<32x32xf32, #tpu.memory_space<vmem>>) attributes {dimension_semantics = [], scalar_prefetch = 0 : i64, scratch_operands = 0 : i64, tpu.core_type = #tpu.core_type<tc>} {
    %c0 = arith.constant 0 : index
    %c0_0 = arith.constant 0 : index
    %0 = vector.load %arg0[%c0, %c0_0] : memref<32x32xf32, #tpu.memory_space<vmem>>, vector<32x32xf32>
    %c0_1 = arith.constant 0 : index
    %c0_2 = arith.constant 0 : index
    %1 = vector.load %arg1[%c0_1, %c0_2] : memref<64x32xf32, #tpu.memory_space<vmem>>, vector<64x32xf32>
    %c0_3 = arith.constant 0 : index
    %c0_4 = arith.constant 0 : index
    %2 = vector.load %arg2[%c0_3, %c0_4] : memref<384x128xf32, #tpu.memory_space<vmem>>, vector<32x32xf32>
    %c96 = arith.constant 96 : index
    %c0_5 = arith.constant 0 : index
    %3 = vector.load %arg2[%c96, %c0_5] : memref<384x128xf32, #tpu.memory_space<vmem>>, vector<32x32xf32>
    %c0_6 = arith.constant 0 : index
    %c0_7 = arith.constant 0 : index
    %4 = vector.load %arg3[%c0_6, %c0_7] : memref<16x128xf32, #tpu.memory_space<vmem>>, vector<1x32xf32>
    %c128 = arith.constant 128 : index
    %c0_8 = arith.constant 0 : index
    %5 = vector.load %arg2[%c128, %c0_8] : memref<384x128xf32, #tpu.memory_space<vmem>>, vector<32x64xf32>
    %c1 = arith.constant 1 : index
    %c0_9 = arith.constant 0 : index
    %6 = vector.load %arg3[%c1, %c0_9] : memref<16x128xf32, #tpu.memory_space<vmem>>, vector<1x64xf32>
    %c160 = arith.constant 160 : index
    %c0_10 = arith.constant 0 : index
    %7 = vector.load %arg2[%c160, %c0_10] : memref<384x128xf32, #tpu.memory_space<vmem>>, vector<32x32xf32>
    %c2 = arith.constant 2 : index
    %c0_11 = arith.constant 0 : index
    %8 = vector.load %arg3[%c2, %c0_11] : memref<16x128xf32, #tpu.memory_space<vmem>>, vector<1x32xf32>
    %cst = arith.constant dense<0.000000e+00> : vector<32x32xf32>
    %9 = tpu.matmul %0, %3, %cst {dimension_numbers = #tpu.dot_dimension_numbers<[1], [0], [0], [1], [0, 0, 1, 1], [], []>} : vector<32x32xf32>, vector<32x32xf32>, vector<32x32xf32> -> vector<32x32xf32>
    %10 = vector.broadcast %4 : vector<1x32xf32> to vector<32x32xf32>
    %11 = arith.addf %9, %10 : vector<32x32xf32>
    %cst_12 = arith.constant dense<0.000000e+00> : vector<32x32xf32>
    %12 = tpu.matmul %2, %0, %cst_12 {dimension_numbers = #tpu.dot_dimension_numbers<[1], [0], [0], [1], [0, 0, 1, 1], [], []>} : vector<32x32xf32>, vector<32x32xf32>, vector<32x32xf32> -> vector<32x32xf32>
    %cst_13 = arith.constant dense<0.000000e+00> : vector<32x64xf32>
    %13 = tpu.matmul %12, %5, %cst_13 {dimension_numbers = #tpu.dot_dimension_numbers<[1], [0], [0], [1], [0, 0, 1, 1], [], []>} : vector<32x32xf32>, vector<32x64xf32>, vector<32x64xf32> -> vector<32x64xf32>
    %14 = vector.extract_strided_slice %13 {offsets = [0, 0], sizes = [16, 32], strides = [1, 1]} : vector<32x64xf32> to vector<16x32xf32>
    %15 = vector.extract_strided_slice %6 {offsets = [0, 0], sizes = [1, 32], strides = [1, 1]} : vector<1x64xf32> to vector<1x32xf32>
    %16 = vector.broadcast %15 : vector<1x32xf32> to vector<16x32xf32>
    %17 = arith.addf %14, %16 : vector<16x32xf32>
    %18 = vector.extract_strided_slice %13 {offsets = [16, 32], sizes = [16, 32], strides = [1, 1]} : vector<32x64xf32> to vector<16x32xf32>
    %19 = vector.extract_strided_slice %6 {offsets = [0, 32], sizes = [1, 32], strides = [1, 1]} : vector<1x64xf32> to vector<1x32xf32>
    %20 = vector.broadcast %19 : vector<1x32xf32> to vector<16x32xf32>
    %21 = arith.addf %18, %20 : vector<16x32xf32>
    %22 = vector.extract_strided_slice %11 {offsets = [0, 0], sizes = [16, 32], strides = [1, 1]} : vector<32x32xf32> to vector<16x32xf32>
    %23 = vector.extract_strided_slice %17 {offsets = [0, 0], sizes = [8, 32], strides = [1, 1]} : vector<16x32xf32> to vector<8x32xf32>
    %24 = tpu.transpose %23, [1, 0] : vector<8x32xf32> -> vector<32x8xf32>
    %25 = vector.extract_strided_slice %21 {offsets = [0, 0], sizes = [8, 32], strides = [1, 1]} : vector<16x32xf32> to vector<8x32xf32>
    %26 = vector.extract_strided_slice %22 {offsets = [0, 0], sizes = [16, 8], strides = [1, 1]} : vector<16x32xf32> to vector<16x8xf32>
    %27 = vector.extract_strided_slice %24 {offsets = [0, 0], sizes = [8, 8], strides = [1, 1]} : vector<32x8xf32> to vector<8x8xf32>
    %cst_14 = arith.constant dense<0.000000e+00> : vector<16x8xf32>
    %28 = tpu.matmul %26, %27, %cst_14 {dimension_numbers = #tpu.dot_dimension_numbers<[1], [0], [0], [1], [0, 0, 1, 1], [], []>} : vector<16x8xf32>, vector<8x8xf32>, vector<16x8xf32> -> vector<16x8xf32>
    %cst_15 = arith.constant dense<0xFF800000> : vector<16xf32>
    %29 = vector.multi_reduction <maximumf>, %28, %cst_15 [1] : vector<16x8xf32> to vector<16xf32>
    %30 = vector.shape_cast %29 : vector<16xf32> to vector<16x1xf32>
    %31 = vector.broadcast %30 : vector<16x1xf32> to vector<16x8xf32>
    %32 = arith.subf %28, %31 : vector<16x8xf32>
    %33 = math.exp %32 : vector<16x8xf32>
    %cst_16 = arith.constant dense<0.000000e+00> : vector<16xf32>
    %34 = vector.multi_reduction <add>, %33, %cst_16 [1] : vector<16x8xf32> to vector<16xf32>
    %35 = vector.shape_cast %34 : vector<16xf32> to vector<16x1xf32>
    %36 = vector.broadcast %35 : vector<16x1xf32> to vector<16x8xf32>
    %37 = arith.divf %33, %36 : vector<16x8xf32>
    %38 = vector.extract_strided_slice %25 {offsets = [0, 0], sizes = [8, 8], strides = [1, 1]} : vector<8x32xf32> to vector<8x8xf32>
    %cst_17 = arith.constant dense<0.000000e+00> : vector<16x8xf32>
    %39 = tpu.matmul %37, %38, %cst_17 {dimension_numbers = #tpu.dot_dimension_numbers<[1], [0], [0], [1], [0, 0, 1, 1], [], []>} : vector<16x8xf32>, vector<8x8xf32>, vector<16x8xf32> -> vector<16x8xf32>
    %40 = vector.extract_strided_slice %22 {offsets = [0, 8], sizes = [16, 8], strides = [1, 1]} : vector<16x32xf32> to vector<16x8xf32>
    %41 = vector.extract_strided_slice %24 {offsets = [8, 0], sizes = [8, 8], strides = [1, 1]} : vector<32x8xf32> to vector<8x8xf32>
    %cst_18 = arith.constant dense<0.000000e+00> : vector<16x8xf32>
    %42 = tpu.matmul %40, %41, %cst_18 {dimension_numbers = #tpu.dot_dimension_numbers<[1], [0], [0], [1], [0, 0, 1, 1], [], []>} : vector<16x8xf32>, vector<8x8xf32>, vector<16x8xf32> -> vector<16x8xf32>
    %cst_19 = arith.constant dense<0xFF800000> : vector<16xf32>
    %43 = vector.multi_reduction <maximumf>, %42, %cst_19 [1] : vector<16x8xf32> to vector<16xf32>
    %44 = vector.shape_cast %43 : vector<16xf32> to vector<16x1xf32>
    %45 = vector.broadcast %44 : vector<16x1xf32> to vector<16x8xf32>
    %46 = arith.subf %42, %45 : vector<16x8xf32>
    %47 = math.exp %46 : vector<16x8xf32>
    %cst_20 = arith.constant dense<0.000000e+00> : vector<16xf32>
    %48 = vector.multi_reduction <add>, %47, %cst_20 [1] : vector<16x8xf32> to vector<16xf32>
    %49 = vector.shape_cast %48 : vector<16xf32> to vector<16x1xf32>
    %50 = vector.broadcast %49 : vector<16x1xf32> to vector<16x8xf32>
    %51 = arith.divf %47, %50 : vector<16x8xf32>
    %52 = vector.extract_strided_slice %25 {offsets = [0, 8], sizes = [8, 8], strides = [1, 1]} : vector<8x32xf32> to vector<8x8xf32>
    %cst_21 = arith.constant dense<0.000000e+00> : vector<16x8xf32>
    %53 = tpu.matmul %51, %52, %cst_21 {dimension_numbers = #tpu.dot_dimension_numbers<[1], [0], [0], [1], [0, 0, 1, 1], [], []>} : vector<16x8xf32>, vector<8x8xf32>, vector<16x8xf32> -> vector<16x8xf32>
    %54 = vector.extract_strided_slice %22 {offsets = [0, 16], sizes = [16, 8], strides = [1, 1]} : vector<16x32xf32> to vector<16x8xf32>
    %55 = vector.extract_strided_slice %24 {offsets = [16, 0], sizes = [8, 8], strides = [1, 1]} : vector<32x8xf32> to vector<8x8xf32>
    %cst_22 = arith.constant dense<0.000000e+00> : vector<16x8xf32>
    %56 = tpu.matmul %54, %55, %cst_22 {dimension_numbers = #tpu.dot_dimension_numbers<[1], [0], [0], [1], [0, 0, 1, 1], [], []>} : vector<16x8xf32>, vector<8x8xf32>, vector<16x8xf32> -> vector<16x8xf32>
    %cst_23 = arith.constant dense<0xFF800000> : vector<16xf32>
    %57 = vector.multi_reduction <maximumf>, %56, %cst_23 [1] : vector<16x8xf32> to vector<16xf32>
    %58 = vector.shape_cast %57 : vector<16xf32> to vector<16x1xf32>
    %59 = vector.broadcast %58 : vector<16x1xf32> to vector<16x8xf32>
    %60 = arith.subf %56, %59 : vector<16x8xf32>
    %61 = math.exp %60 : vector<16x8xf32>
    %cst_24 = arith.constant dense<0.000000e+00> : vector<16xf32>
    %62 = vector.multi_reduction <add>, %61, %cst_24 [1] : vector<16x8xf32> to vector<16xf32>
    %63 = vector.shape_cast %62 : vector<16xf32> to vector<16x1xf32>
    %64 = vector.broadcast %63 : vector<16x1xf32> to vector<16x8xf32>
    %65 = arith.divf %61, %64 : vector<16x8xf32>
    %66 = vector.extract_strided_slice %25 {offsets = [0, 16], sizes = [8, 8], strides = [1, 1]} : vector<8x32xf32> to vector<8x8xf32>
    %cst_25 = arith.constant dense<0.000000e+00> : vector<16x8xf32>
    %67 = tpu.matmul %65, %66, %cst_25 {dimension_numbers = #tpu.dot_dimension_numbers<[1], [0], [0], [1], [0, 0, 1, 1], [], []>} : vector<16x8xf32>, vector<8x8xf32>, vector<16x8xf32> -> vector<16x8xf32>
    %68 = vector.extract_strided_slice %22 {offsets = [0, 24], sizes = [16, 8], strides = [1, 1]} : vector<16x32xf32> to vector<16x8xf32>
    %69 = vector.extract_strided_slice %24 {offsets = [24, 0], sizes = [8, 8], strides = [1, 1]} : vector<32x8xf32> to vector<8x8xf32>
    %cst_26 = arith.constant dense<0.000000e+00> : vector<16x8xf32>
    %70 = tpu.matmul %68, %69, %cst_26 {dimension_numbers = #tpu.dot_dimension_numbers<[1], [0], [0], [1], [0, 0, 1, 1], [], []>} : vector<16x8xf32>, vector<8x8xf32>, vector<16x8xf32> -> vector<16x8xf32>
    %cst_27 = arith.constant dense<0xFF800000> : vector<16xf32>
    %71 = vector.multi_reduction <maximumf>, %70, %cst_27 [1] : vector<16x8xf32> to vector<16xf32>
    %72 = vector.shape_cast %71 : vector<16xf32> to vector<16x1xf32>
    %73 = vector.broadcast %72 : vector<16x1xf32> to vector<16x8xf32>
    %74 = arith.subf %70, %73 : vector<16x8xf32>
    %75 = math.exp %74 : vector<16x8xf32>
    %cst_28 = arith.constant dense<0.000000e+00> : vector<16xf32>
    %76 = vector.multi_reduction <add>, %75, %cst_28 [1] : vector<16x8xf32> to vector<16xf32>
    %77 = vector.shape_cast %76 : vector<16xf32> to vector<16x1xf32>
    %78 = vector.broadcast %77 : vector<16x1xf32> to vector<16x8xf32>
    %79 = arith.divf %75, %78 : vector<16x8xf32>
    %80 = vector.extract_strided_slice %25 {offsets = [0, 24], sizes = [8, 8], strides = [1, 1]} : vector<8x32xf32> to vector<8x8xf32>
    %cst_29 = arith.constant dense<0.000000e+00> : vector<16x8xf32>
    %81 = tpu.matmul %79, %80, %cst_29 {dimension_numbers = #tpu.dot_dimension_numbers<[1], [0], [0], [1], [0, 0, 1, 1], [], []>} : vector<16x8xf32>, vector<8x8xf32>, vector<16x8xf32> -> vector<16x8xf32>
    %82 = tpu.concatenate %39, %53, %67, %81 in 1 : vector<16x8xf32>, vector<16x8xf32>, vector<16x8xf32>, vector<16x8xf32> -> vector<16x32xf32>
    %83 = vector.extract_strided_slice %11 {offsets = [16, 0], sizes = [16, 32], strides = [1, 1]} : vector<32x32xf32> to vector<16x32xf32>
    %84 = vector.extract_strided_slice %17 {offsets = [8, 0], sizes = [8, 32], strides = [1, 1]} : vector<16x32xf32> to vector<8x32xf32>
    %85 = tpu.transpose %84, [1, 0] : vector<8x32xf32> -> vector<32x8xf32>
    %86 = vector.extract_strided_slice %21 {offsets = [8, 0], sizes = [8, 32], strides = [1, 1]} : vector<16x32xf32> to vector<8x32xf32>
    %87 = vector.extract_strided_slice %83 {offsets = [0, 0], sizes = [16, 8], strides = [1, 1]} : vector<16x32xf32> to vector<16x8xf32>
    %88 = vector.extract_strided_slice %85 {offsets = [0, 0], sizes = [8, 8], strides = [1, 1]} : vector<32x8xf32> to vector<8x8xf32>
    %cst_30 = arith.constant dense<0.000000e+00> : vector<16x8xf32>
    %89 = tpu.matmul %87, %88, %cst_30 {dimension_numbers = #tpu.dot_dimension_numbers<[1], [0], [0], [1], [0, 0, 1, 1], [], []>} : vector<16x8xf32>, vector<8x8xf32>, vector<16x8xf32> -> vector<16x8xf32>
    %cst_31 = arith.constant dense<0xFF800000> : vector<16xf32>
    %90 = vector.multi_reduction <maximumf>, %89, %cst_31 [1] : vector<16x8xf32> to vector<16xf32>
    %91 = vector.shape_cast %90 : vector<16xf32> to vector<16x1xf32>
    %92 = vector.broadcast %91 : vector<16x1xf32> to vector<16x8xf32>
    %93 = arith.subf %89, %92 : vector<16x8xf32>
    %94 = math.exp %93 : vector<16x8xf32>
    %cst_32 = arith.constant dense<0.000000e+00> : vector<16xf32>
    %95 = vector.multi_reduction <add>, %94, %cst_32 [1] : vector<16x8xf32> to vector<16xf32>
    %96 = vector.shape_cast %95 : vector<16xf32> to vector<16x1xf32>
    %97 = vector.broadcast %96 : vector<16x1xf32> to vector<16x8xf32>
    %98 = arith.divf %94, %97 : vector<16x8xf32>
    %99 = vector.extract_strided_slice %86 {offsets = [0, 0], sizes = [8, 8], strides = [1, 1]} : vector<8x32xf32> to vector<8x8xf32>
    %cst_33 = arith.constant dense<0.000000e+00> : vector<16x8xf32>
    %100 = tpu.matmul %98, %99, %cst_33 {dimension_numbers = #tpu.dot_dimension_numbers<[1], [0], [0], [1], [0, 0, 1, 1], [], []>} : vector<16x8xf32>, vector<8x8xf32>, vector<16x8xf32> -> vector<16x8xf32>
    %101 = vector.extract_strided_slice %83 {offsets = [0, 8], sizes = [16, 8], strides = [1, 1]} : vector<16x32xf32> to vector<16x8xf32>
    %102 = vector.extract_strided_slice %85 {offsets = [8, 0], sizes = [8, 8], strides = [1, 1]} : vector<32x8xf32> to vector<8x8xf32>
    %cst_34 = arith.constant dense<0.000000e+00> : vector<16x8xf32>
    %103 = tpu.matmul %101, %102, %cst_34 {dimension_numbers = #tpu.dot_dimension_numbers<[1], [0], [0], [1], [0, 0, 1, 1], [], []>} : vector<16x8xf32>, vector<8x8xf32>, vector<16x8xf32> -> vector<16x8xf32>
    %cst_35 = arith.constant dense<0xFF800000> : vector<16xf32>
    %104 = vector.multi_reduction <maximumf>, %103, %cst_35 [1] : vector<16x8xf32> to vector<16xf32>
    %105 = vector.shape_cast %104 : vector<16xf32> to vector<16x1xf32>
    %106 = vector.broadcast %105 : vector<16x1xf32> to vector<16x8xf32>
    %107 = arith.subf %103, %106 : vector<16x8xf32>
    %108 = math.exp %107 : vector<16x8xf32>
    %cst_36 = arith.constant dense<0.000000e+00> : vector<16xf32>
    %109 = vector.multi_reduction <add>, %108, %cst_36 [1] : vector<16x8xf32> to vector<16xf32>
    %110 = vector.shape_cast %109 : vector<16xf32> to vector<16x1xf32>
    %111 = vector.broadcast %110 : vector<16x1xf32> to vector<16x8xf32>
    %112 = arith.divf %108, %111 : vector<16x8xf32>
    %113 = vector.extract_strided_slice %86 {offsets = [0, 8], sizes = [8, 8], strides = [1, 1]} : vector<8x32xf32> to vector<8x8xf32>
    %cst_37 = arith.constant dense<0.000000e+00> : vector<16x8xf32>
    %114 = tpu.matmul %112, %113, %cst_37 {dimension_numbers = #tpu.dot_dimension_numbers<[1], [0], [0], [1], [0, 0, 1, 1], [], []>} : vector<16x8xf32>, vector<8x8xf32>, vector<16x8xf32> -> vector<16x8xf32>
    %115 = vector.extract_strided_slice %83 {offsets = [0, 16], sizes = [16, 8], strides = [1, 1]} : vector<16x32xf32> to vector<16x8xf32>
    %116 = vector.extract_strided_slice %85 {offsets = [16, 0], sizes = [8, 8], strides = [1, 1]} : vector<32x8xf32> to vector<8x8xf32>
    %cst_38 = arith.constant dense<0.000000e+00> : vector<16x8xf32>
    %117 = tpu.matmul %115, %116, %cst_38 {dimension_numbers = #tpu.dot_dimension_numbers<[1], [0], [0], [1], [0, 0, 1, 1], [], []>} : vector<16x8xf32>, vector<8x8xf32>, vector<16x8xf32> -> vector<16x8xf32>
    %cst_39 = arith.constant dense<0xFF800000> : vector<16xf32>
    %118 = vector.multi_reduction <maximumf>, %117, %cst_39 [1] : vector<16x8xf32> to vector<16xf32>
    %119 = vector.shape_cast %118 : vector<16xf32> to vector<16x1xf32>
    %120 = vector.broadcast %119 : vector<16x1xf32> to vector<16x8xf32>
    %121 = arith.subf %117, %120 : vector<16x8xf32>
    %122 = math.exp %121 : vector<16x8xf32>
    %cst_40 = arith.constant dense<0.000000e+00> : vector<16xf32>
    %123 = vector.multi_reduction <add>, %122, %cst_40 [1] : vector<16x8xf32> to vector<16xf32>
    %124 = vector.shape_cast %123 : vector<16xf32> to vector<16x1xf32>
    %125 = vector.broadcast %124 : vector<16x1xf32> to vector<16x8xf32>
    %126 = arith.divf %122, %125 : vector<16x8xf32>
    %127 = vector.extract_strided_slice %86 {offsets = [0, 16], sizes = [8, 8], strides = [1, 1]} : vector<8x32xf32> to vector<8x8xf32>
    %cst_41 = arith.constant dense<0.000000e+00> : vector<16x8xf32>
    %128 = tpu.matmul %126, %127, %cst_41 {dimension_numbers = #tpu.dot_dimension_numbers<[1], [0], [0], [1], [0, 0, 1, 1], [], []>} : vector<16x8xf32>, vector<8x8xf32>, vector<16x8xf32> -> vector<16x8xf32>
    %129 = vector.extract_strided_slice %83 {offsets = [0, 24], sizes = [16, 8], strides = [1, 1]} : vector<16x32xf32> to vector<16x8xf32>
    %130 = vector.extract_strided_slice %85 {offsets = [24, 0], sizes = [8, 8], strides = [1, 1]} : vector<32x8xf32> to vector<8x8xf32>
    %cst_42 = arith.constant dense<0.000000e+00> : vector<16x8xf32>
    %131 = tpu.matmul %129, %130, %cst_42 {dimension_numbers = #tpu.dot_dimension_numbers<[1], [0], [0], [1], [0, 0, 1, 1], [], []>} : vector<16x8xf32>, vector<8x8xf32>, vector<16x8xf32> -> vector<16x8xf32>
    %cst_43 = arith.constant dense<0xFF800000> : vector<16xf32>
    %132 = vector.multi_reduction <maximumf>, %131, %cst_43 [1] : vector<16x8xf32> to vector<16xf32>
    %133 = vector.shape_cast %132 : vector<16xf32> to vector<16x1xf32>
    %134 = vector.broadcast %133 : vector<16x1xf32> to vector<16x8xf32>
    %135 = arith.subf %131, %134 : vector<16x8xf32>
    %136 = math.exp %135 : vector<16x8xf32>
    %cst_44 = arith.constant dense<0.000000e+00> : vector<16xf32>
    %137 = vector.multi_reduction <add>, %136, %cst_44 [1] : vector<16x8xf32> to vector<16xf32>
    %138 = vector.shape_cast %137 : vector<16xf32> to vector<16x1xf32>
    %139 = vector.broadcast %138 : vector<16x1xf32> to vector<16x8xf32>
    %140 = arith.divf %136, %139 : vector<16x8xf32>
    %141 = vector.extract_strided_slice %86 {offsets = [0, 24], sizes = [8, 8], strides = [1, 1]} : vector<8x32xf32> to vector<8x8xf32>
    %cst_45 = arith.constant dense<0.000000e+00> : vector<16x8xf32>
    %142 = tpu.matmul %140, %141, %cst_45 {dimension_numbers = #tpu.dot_dimension_numbers<[1], [0], [0], [1], [0, 0, 1, 1], [], []>} : vector<16x8xf32>, vector<8x8xf32>, vector<16x8xf32> -> vector<16x8xf32>
    %143 = tpu.concatenate %100, %114, %128, %142 in 1 : vector<16x8xf32>, vector<16x8xf32>, vector<16x8xf32>, vector<16x8xf32> -> vector<16x32xf32>
    %144 = tpu.concatenate %82, %143 in 0 : vector<16x32xf32>, vector<16x32xf32> -> vector<32x32xf32>
    %cst_46 = arith.constant dense<0.000000e+00> : vector<32x32xf32>
    %145 = tpu.matmul %144, %7, %cst_46 {dimension_numbers = #tpu.dot_dimension_numbers<[1], [0], [0], [1], [0, 0, 1, 1], [], []>} : vector<32x32xf32>, vector<32x32xf32>, vector<32x32xf32> -> vector<32x32xf32>
    %146 = vector.broadcast %8 : vector<1x32xf32> to vector<32x32xf32>
    %147 = arith.addf %145, %146 : vector<32x32xf32>
    %148 = arith.addf %0, %147 : vector<32x32xf32>
    %c8 = arith.constant 8 : index
    %c0_47 = arith.constant 0 : index
    %149 = vector.load %arg3[%c8, %c0_47] : memref<16x128xf32, #tpu.memory_space<vmem>>, vector<1x32xf32>
    %c9 = arith.constant 9 : index
    %c0_48 = arith.constant 0 : index
    %150 = vector.load %arg3[%c9, %c0_48] : memref<16x128xf32, #tpu.memory_space<vmem>>, vector<1x32xf32>
    %cst_49 = arith.constant dense<0.000000e+00> : vector<32xf32>
    %151 = vector.multi_reduction <add>, %148, %cst_49 [1] : vector<32x32xf32> to vector<32xf32>
    %152 = vector.shape_cast %151 : vector<32xf32> to vector<32x1xf32>
    %cst_50 = arith.constant 3.200000e+01 : f32
    %153 = vector.broadcast %cst_50 : f32 to vector<32x1xf32>
    %154 = arith.divf %152, %153 : vector<32x1xf32>
    %155 = vector.broadcast %154 : vector<32x1xf32> to vector<32x32xf32>
    %156 = arith.subf %148, %155 : vector<32x32xf32>
    %157 = arith.mulf %156, %156 : vector<32x32xf32>
    %cst_51 = arith.constant dense<0.000000e+00> : vector<32xf32>
    %158 = vector.multi_reduction <add>, %157, %cst_51 [1] : vector<32x32xf32> to vector<32xf32>
    %159 = vector.shape_cast %158 : vector<32xf32> to vector<32x1xf32>
    %cst_52 = arith.constant 3.200000e+01 : f32
    %160 = vector.broadcast %cst_52 : f32 to vector<32x1xf32>
    %161 = arith.divf %159, %160 : vector<32x1xf32>
    %162 = vector.broadcast %154 : vector<32x1xf32> to vector<32x32xf32>
    %163 = arith.subf %148, %162 : vector<32x32xf32>
    %cst_53 = arith.constant 9.99999974E-6 : f32
    %164 = vector.broadcast %cst_53 : f32 to vector<32x1xf32>
    %165 = arith.addf %161, %164 : vector<32x1xf32>
    %166 = math.rsqrt %165 : vector<32x1xf32>
    %167 = vector.broadcast %166 : vector<32x1xf32> to vector<32x32xf32>
    %168 = arith.mulf %163, %167 : vector<32x32xf32>
    %169 = vector.broadcast %149 : vector<1x32xf32> to vector<32x32xf32>
    %170 = arith.mulf %168, %169 : vector<32x32xf32>
    %171 = vector.broadcast %150 : vector<1x32xf32> to vector<32x32xf32>
    %172 = arith.addf %170, %171 : vector<32x32xf32>
    %c32 = arith.constant 32 : index
    %c0_54 = arith.constant 0 : index
    %173 = vector.load %arg2[%c32, %c0_54] : memref<384x128xf32, #tpu.memory_space<vmem>>, vector<64x64xf32>
    %c192 = arith.constant 192 : index
    %c0_55 = arith.constant 0 : index
    %174 = vector.load %arg2[%c192, %c0_55] : memref<384x128xf32, #tpu.memory_space<vmem>>, vector<32x32xf32>
    %c3 = arith.constant 3 : index
    %c0_56 = arith.constant 0 : index
    %175 = vector.load %arg3[%c3, %c0_56] : memref<16x128xf32, #tpu.memory_space<vmem>>, vector<1x32xf32>
    %c224 = arith.constant 224 : index
    %c0_57 = arith.constant 0 : index
    %176 = vector.load %arg2[%c224, %c0_57] : memref<384x128xf32, #tpu.memory_space<vmem>>, vector<32x64xf32>
    %c4 = arith.constant 4 : index
    %c0_58 = arith.constant 0 : index
    %177 = vector.load %arg3[%c4, %c0_58] : memref<16x128xf32, #tpu.memory_space<vmem>>, vector<1x64xf32>
    %c256 = arith.constant 256 : index
    %c0_59 = arith.constant 0 : index
    %178 = vector.load %arg2[%c256, %c0_59] : memref<384x128xf32, #tpu.memory_space<vmem>>, vector<32x32xf32>
    %c5 = arith.constant 5 : index
    %c0_60 = arith.constant 0 : index
    %179 = vector.load %arg3[%c5, %c0_60] : memref<16x128xf32, #tpu.memory_space<vmem>>, vector<1x32xf32>
    %cst_61 = arith.constant dense<0.000000e+00> : vector<32x32xf32>
    %180 = tpu.matmul %172, %174, %cst_61 {dimension_numbers = #tpu.dot_dimension_numbers<[1], [0], [0], [1], [0, 0, 1, 1], [], []>} : vector<32x32xf32>, vector<32x32xf32>, vector<32x32xf32> -> vector<32x32xf32>
    %181 = vector.broadcast %175 : vector<1x32xf32> to vector<32x32xf32>
    %182 = arith.addf %180, %181 : vector<32x32xf32>
    %cst_62 = arith.constant dense<0.000000e+00> : vector<64x32xf32>
    %183 = tpu.matmul %173, %1, %cst_62 {dimension_numbers = #tpu.dot_dimension_numbers<[1], [0], [0], [1], [0, 0, 1, 1], [], []>} : vector<64x64xf32>, vector<64x32xf32>, vector<64x32xf32> -> vector<64x32xf32>
    %cst_63 = arith.constant dense<0.000000e+00> : vector<64x64xf32>
    %184 = tpu.matmul %183, %176, %cst_63 {dimension_numbers = #tpu.dot_dimension_numbers<[1], [0], [0], [1], [0, 0, 1, 1], [], []>} : vector<64x32xf32>, vector<32x64xf32>, vector<64x64xf32> -> vector<64x64xf32>
    %185 = vector.extract_strided_slice %184 {offsets = [0, 0], sizes = [32, 32], strides = [1, 1]} : vector<64x64xf32> to vector<32x32xf32>
    %186 = vector.extract_strided_slice %177 {offsets = [0, 0], sizes = [1, 32], strides = [1, 1]} : vector<1x64xf32> to vector<1x32xf32>
    %187 = vector.broadcast %186 : vector<1x32xf32> to vector<32x32xf32>
    %188 = arith.addf %185, %187 : vector<32x32xf32>
    %189 = vector.extract_strided_slice %184 {offsets = [32, 32], sizes = [32, 32], strides = [1, 1]} : vector<64x64xf32> to vector<32x32xf32>
    %190 = vector.extract_strided_slice %177 {offsets = [0, 32], sizes = [1, 32], strides = [1, 1]} : vector<1x64xf32> to vector<1x32xf32>
    %191 = vector.broadcast %190 : vector<1x32xf32> to vector<32x32xf32>
    %192 = arith.addf %189, %191 : vector<32x32xf32>
    %193 = vector.extract_strided_slice %182 {offsets = [0, 0], sizes = [16, 32], strides = [1, 1]} : vector<32x32xf32> to vector<16x32xf32>
    %194 = vector.extract_strided_slice %188 {offsets = [0, 0], sizes = [16, 32], strides = [1, 1]} : vector<32x32xf32> to vector<16x32xf32>
    %195 = tpu.transpose %194, [1, 0] : vector<16x32xf32> -> vector<32x16xf32>
    %196 = vector.extract_strided_slice %192 {offsets = [0, 0], sizes = [16, 32], strides = [1, 1]} : vector<32x32xf32> to vector<16x32xf32>
    %197 = vector.extract_strided_slice %193 {offsets = [0, 0], sizes = [16, 8], strides = [1, 1]} : vector<16x32xf32> to vector<16x8xf32>
    %198 = vector.extract_strided_slice %195 {offsets = [0, 0], sizes = [8, 16], strides = [1, 1]} : vector<32x16xf32> to vector<8x16xf32>
    %cst_64 = arith.constant dense<0.000000e+00> : vector<16x16xf32>
    %199 = tpu.matmul %197, %198, %cst_64 {dimension_numbers = #tpu.dot_dimension_numbers<[1], [0], [0], [1], [0, 0, 1, 1], [], []>} : vector<16x8xf32>, vector<8x16xf32>, vector<16x16xf32> -> vector<16x16xf32>
    %cst_65 = arith.constant dense<0xFF800000> : vector<16xf32>
    %200 = vector.multi_reduction <maximumf>, %199, %cst_65 [1] : vector<16x16xf32> to vector<16xf32>
    %201 = vector.shape_cast %200 : vector<16xf32> to vector<16x1xf32>
    %202 = vector.broadcast %201 : vector<16x1xf32> to vector<16x16xf32>
    %203 = arith.subf %199, %202 : vector<16x16xf32>
    %204 = math.exp %203 : vector<16x16xf32>
    %cst_66 = arith.constant dense<0.000000e+00> : vector<16xf32>
    %205 = vector.multi_reduction <add>, %204, %cst_66 [1] : vector<16x16xf32> to vector<16xf32>
    %206 = vector.shape_cast %205 : vector<16xf32> to vector<16x1xf32>
    %207 = vector.broadcast %206 : vector<16x1xf32> to vector<16x16xf32>
    %208 = arith.divf %204, %207 : vector<16x16xf32>
    %209 = vector.extract_strided_slice %196 {offsets = [0, 0], sizes = [16, 8], strides = [1, 1]} : vector<16x32xf32> to vector<16x8xf32>
    %cst_67 = arith.constant dense<0.000000e+00> : vector<16x8xf32>
    %210 = tpu.matmul %208, %209, %cst_67 {dimension_numbers = #tpu.dot_dimension_numbers<[1], [0], [0], [1], [0, 0, 1, 1], [], []>} : vector<16x16xf32>, vector<16x8xf32>, vector<16x8xf32> -> vector<16x8xf32>
    %211 = vector.extract_strided_slice %193 {offsets = [0, 8], sizes = [16, 8], strides = [1, 1]} : vector<16x32xf32> to vector<16x8xf32>
    %212 = vector.extract_strided_slice %195 {offsets = [8, 0], sizes = [8, 16], strides = [1, 1]} : vector<32x16xf32> to vector<8x16xf32>
    %cst_68 = arith.constant dense<0.000000e+00> : vector<16x16xf32>
    %213 = tpu.matmul %211, %212, %cst_68 {dimension_numbers = #tpu.dot_dimension_numbers<[1], [0], [0], [1], [0, 0, 1, 1], [], []>} : vector<16x8xf32>, vector<8x16xf32>, vector<16x16xf32> -> vector<16x16xf32>
    %cst_69 = arith.constant dense<0xFF800000> : vector<16xf32>
    %214 = vector.multi_reduction <maximumf>, %213, %cst_69 [1] : vector<16x16xf32> to vector<16xf32>
    %215 = vector.shape_cast %214 : vector<16xf32> to vector<16x1xf32>
    %216 = vector.broadcast %215 : vector<16x1xf32> to vector<16x16xf32>
    %217 = arith.subf %213, %216 : vector<16x16xf32>
    %218 = math.exp %217 : vector<16x16xf32>
    %cst_70 = arith.constant dense<0.000000e+00> : vector<16xf32>
    %219 = vector.multi_reduction <add>, %218, %cst_70 [1] : vector<16x16xf32> to vector<16xf32>
    %220 = vector.shape_cast %219 : vector<16xf32> to vector<16x1xf32>
    %221 = vector.broadcast %220 : vector<16x1xf32> to vector<16x16xf32>
    %222 = arith.divf %218, %221 : vector<16x16xf32>
    %223 = vector.extract_strided_slice %196 {offsets = [0, 8], sizes = [16, 8], strides = [1, 1]} : vector<16x32xf32> to vector<16x8xf32>
    %cst_71 = arith.constant dense<0.000000e+00> : vector<16x8xf32>
    %224 = tpu.matmul %222, %223, %cst_71 {dimension_numbers = #tpu.dot_dimension_numbers<[1], [0], [0], [1], [0, 0, 1, 1], [], []>} : vector<16x16xf32>, vector<16x8xf32>, vector<16x8xf32> -> vector<16x8xf32>
    %225 = vector.extract_strided_slice %193 {offsets = [0, 16], sizes = [16, 8], strides = [1, 1]} : vector<16x32xf32> to vector<16x8xf32>
    %226 = vector.extract_strided_slice %195 {offsets = [16, 0], sizes = [8, 16], strides = [1, 1]} : vector<32x16xf32> to vector<8x16xf32>
    %cst_72 = arith.constant dense<0.000000e+00> : vector<16x16xf32>
    %227 = tpu.matmul %225, %226, %cst_72 {dimension_numbers = #tpu.dot_dimension_numbers<[1], [0], [0], [1], [0, 0, 1, 1], [], []>} : vector<16x8xf32>, vector<8x16xf32>, vector<16x16xf32> -> vector<16x16xf32>
    %cst_73 = arith.constant dense<0xFF800000> : vector<16xf32>
    %228 = vector.multi_reduction <maximumf>, %227, %cst_73 [1] : vector<16x16xf32> to vector<16xf32>
    %229 = vector.shape_cast %228 : vector<16xf32> to vector<16x1xf32>
    %230 = vector.broadcast %229 : vector<16x1xf32> to vector<16x16xf32>
    %231 = arith.subf %227, %230 : vector<16x16xf32>
    %232 = math.exp %231 : vector<16x16xf32>
    %cst_74 = arith.constant dense<0.000000e+00> : vector<16xf32>
    %233 = vector.multi_reduction <add>, %232, %cst_74 [1] : vector<16x16xf32> to vector<16xf32>
    %234 = vector.shape_cast %233 : vector<16xf32> to vector<16x1xf32>
    %235 = vector.broadcast %234 : vector<16x1xf32> to vector<16x16xf32>
    %236 = arith.divf %232, %235 : vector<16x16xf32>
    %237 = vector.extract_strided_slice %196 {offsets = [0, 16], sizes = [16, 8], strides = [1, 1]} : vector<16x32xf32> to vector<16x8xf32>
    %cst_75 = arith.constant dense<0.000000e+00> : vector<16x8xf32>
    %238 = tpu.matmul %236, %237, %cst_75 {dimension_numbers = #tpu.dot_dimension_numbers<[1], [0], [0], [1], [0, 0, 1, 1], [], []>} : vector<16x16xf32>, vector<16x8xf32>, vector<16x8xf32> -> vector<16x8xf32>
    %239 = vector.extract_strided_slice %193 {offsets = [0, 24], sizes = [16, 8], strides = [1, 1]} : vector<16x32xf32> to vector<16x8xf32>
    %240 = vector.extract_strided_slice %195 {offsets = [24, 0], sizes = [8, 16], strides = [1, 1]} : vector<32x16xf32> to vector<8x16xf32>
    %cst_76 = arith.constant dense<0.000000e+00> : vector<16x16xf32>
    %241 = tpu.matmul %239, %240, %cst_76 {dimension_numbers = #tpu.dot_dimension_numbers<[1], [0], [0], [1], [0, 0, 1, 1], [], []>} : vector<16x8xf32>, vector<8x16xf32>, vector<16x16xf32> -> vector<16x16xf32>
    %cst_77 = arith.constant dense<0xFF800000> : vector<16xf32>
    %242 = vector.multi_reduction <maximumf>, %241, %cst_77 [1] : vector<16x16xf32> to vector<16xf32>
    %243 = vector.shape_cast %242 : vector<16xf32> to vector<16x1xf32>
    %244 = vector.broadcast %243 : vector<16x1xf32> to vector<16x16xf32>
    %245 = arith.subf %241, %244 : vector<16x16xf32>
    %246 = math.exp %245 : vector<16x16xf32>
    %cst_78 = arith.constant dense<0.000000e+00> : vector<16xf32>
    %247 = vector.multi_reduction <add>, %246, %cst_78 [1] : vector<16x16xf32> to vector<16xf32>
    %248 = vector.shape_cast %247 : vector<16xf32> to vector<16x1xf32>
    %249 = vector.broadcast %248 : vector<16x1xf32> to vector<16x16xf32>
    %250 = arith.divf %246, %249 : vector<16x16xf32>
    %251 = vector.extract_strided_slice %196 {offsets = [0, 24], sizes = [16, 8], strides = [1, 1]} : vector<16x32xf32> to vector<16x8xf32>
    %cst_79 = arith.constant dense<0.000000e+00> : vector<16x8xf32>
    %252 = tpu.matmul %250, %251, %cst_79 {dimension_numbers = #tpu.dot_dimension_numbers<[1], [0], [0], [1], [0, 0, 1, 1], [], []>} : vector<16x16xf32>, vector<16x8xf32>, vector<16x8xf32> -> vector<16x8xf32>
    %253 = tpu.concatenate %210, %224, %238, %252 in 1 : vector<16x8xf32>, vector<16x8xf32>, vector<16x8xf32>, vector<16x8xf32> -> vector<16x32xf32>
    %254 = vector.extract_strided_slice %182 {offsets = [16, 0], sizes = [16, 32], strides = [1, 1]} : vector<32x32xf32> to vector<16x32xf32>
    %255 = vector.extract_strided_slice %188 {offsets = [16, 0], sizes = [16, 32], strides = [1, 1]} : vector<32x32xf32> to vector<16x32xf32>
    %256 = tpu.transpose %255, [1, 0] : vector<16x32xf32> -> vector<32x16xf32>
    %257 = vector.extract_strided_slice %192 {offsets = [16, 0], sizes = [16, 32], strides = [1, 1]} : vector<32x32xf32> to vector<16x32xf32>
    %258 = vector.extract_strided_slice %254 {offsets = [0, 0], sizes = [16, 8], strides = [1, 1]} : vector<16x32xf32> to vector<16x8xf32>
    %259 = vector.extract_strided_slice %256 {offsets = [0, 0], sizes = [8, 16], strides = [1, 1]} : vector<32x16xf32> to vector<8x16xf32>
    %cst_80 = arith.constant dense<0.000000e+00> : vector<16x16xf32>
    %260 = tpu.matmul %258, %259, %cst_80 {dimension_numbers = #tpu.dot_dimension_numbers<[1], [0], [0], [1], [0, 0, 1, 1], [], []>} : vector<16x8xf32>, vector<8x16xf32>, vector<16x16xf32> -> vector<16x16xf32>
    %cst_81 = arith.constant dense<0xFF800000> : vector<16xf32>
    %261 = vector.multi_reduction <maximumf>, %260, %cst_81 [1] : vector<16x16xf32> to vector<16xf32>
    %262 = vector.shape_cast %261 : vector<16xf32> to vector<16x1xf32>
    %263 = vector.broadcast %262 : vector<16x1xf32> to vector<16x16xf32>
    %264 = arith.subf %260, %263 : vector<16x16xf32>
    %265 = math.exp %264 : vector<16x16xf32>
    %cst_82 = arith.constant dense<0.000000e+00> : vector<16xf32>
    %266 = vector.multi_reduction <add>, %265, %cst_82 [1] : vector<16x16xf32> to vector<16xf32>
    %267 = vector.shape_cast %266 : vector<16xf32> to vector<16x1xf32>
    %268 = vector.broadcast %267 : vector<16x1xf32> to vector<16x16xf32>
    %269 = arith.divf %265, %268 : vector<16x16xf32>
    %270 = vector.extract_strided_slice %257 {offsets = [0, 0], sizes = [16, 8], strides = [1, 1]} : vector<16x32xf32> to vector<16x8xf32>
    %cst_83 = arith.constant dense<0.000000e+00> : vector<16x8xf32>
    %271 = tpu.matmul %269, %270, %cst_83 {dimension_numbers = #tpu.dot_dimension_numbers<[1], [0], [0], [1], [0, 0, 1, 1], [], []>} : vector<16x16xf32>, vector<16x8xf32>, vector<16x8xf32> -> vector<16x8xf32>
    %272 = vector.extract_strided_slice %254 {offsets = [0, 8], sizes = [16, 8], strides = [1, 1]} : vector<16x32xf32> to vector<16x8xf32>
    %273 = vector.extract_strided_slice %256 {offsets = [8, 0], sizes = [8, 16], strides = [1, 1]} : vector<32x16xf32> to vector<8x16xf32>
    %cst_84 = arith.constant dense<0.000000e+00> : vector<16x16xf32>
    %274 = tpu.matmul %272, %273, %cst_84 {dimension_numbers = #tpu.dot_dimension_numbers<[1], [0], [0], [1], [0, 0, 1, 1], [], []>} : vector<16x8xf32>, vector<8x16xf32>, vector<16x16xf32> -> vector<16x16xf32>
    %cst_85 = arith.constant dense<0xFF800000> : vector<16xf32>
    %275 = vector.multi_reduction <maximumf>, %274, %cst_85 [1] : vector<16x16xf32> to vector<16xf32>
    %276 = vector.shape_cast %275 : vector<16xf32> to vector<16x1xf32>
    %277 = vector.broadcast %276 : vector<16x1xf32> to vector<16x16xf32>
    %278 = arith.subf %274, %277 : vector<16x16xf32>
    %279 = math.exp %278 : vector<16x16xf32>
    %cst_86 = arith.constant dense<0.000000e+00> : vector<16xf32>
    %280 = vector.multi_reduction <add>, %279, %cst_86 [1] : vector<16x16xf32> to vector<16xf32>
    %281 = vector.shape_cast %280 : vector<16xf32> to vector<16x1xf32>
    %282 = vector.broadcast %281 : vector<16x1xf32> to vector<16x16xf32>
    %283 = arith.divf %279, %282 : vector<16x16xf32>
    %284 = vector.extract_strided_slice %257 {offsets = [0, 8], sizes = [16, 8], strides = [1, 1]} : vector<16x32xf32> to vector<16x8xf32>
    %cst_87 = arith.constant dense<0.000000e+00> : vector<16x8xf32>
    %285 = tpu.matmul %283, %284, %cst_87 {dimension_numbers = #tpu.dot_dimension_numbers<[1], [0], [0], [1], [0, 0, 1, 1], [], []>} : vector<16x16xf32>, vector<16x8xf32>, vector<16x8xf32> -> vector<16x8xf32>
    %286 = vector.extract_strided_slice %254 {offsets = [0, 16], sizes = [16, 8], strides = [1, 1]} : vector<16x32xf32> to vector<16x8xf32>
    %287 = vector.extract_strided_slice %256 {offsets = [16, 0], sizes = [8, 16], strides = [1, 1]} : vector<32x16xf32> to vector<8x16xf32>
    %cst_88 = arith.constant dense<0.000000e+00> : vector<16x16xf32>
    %288 = tpu.matmul %286, %287, %cst_88 {dimension_numbers = #tpu.dot_dimension_numbers<[1], [0], [0], [1], [0, 0, 1, 1], [], []>} : vector<16x8xf32>, vector<8x16xf32>, vector<16x16xf32> -> vector<16x16xf32>
    %cst_89 = arith.constant dense<0xFF800000> : vector<16xf32>
    %289 = vector.multi_reduction <maximumf>, %288, %cst_89 [1] : vector<16x16xf32> to vector<16xf32>
    %290 = vector.shape_cast %289 : vector<16xf32> to vector<16x1xf32>
    %291 = vector.broadcast %290 : vector<16x1xf32> to vector<16x16xf32>
    %292 = arith.subf %288, %291 : vector<16x16xf32>
    %293 = math.exp %292 : vector<16x16xf32>
    %cst_90 = arith.constant dense<0.000000e+00> : vector<16xf32>
    %294 = vector.multi_reduction <add>, %293, %cst_90 [1] : vector<16x16xf32> to vector<16xf32>
    %295 = vector.shape_cast %294 : vector<16xf32> to vector<16x1xf32>
    %296 = vector.broadcast %295 : vector<16x1xf32> to vector<16x16xf32>
    %297 = arith.divf %293, %296 : vector<16x16xf32>
    %298 = vector.extract_strided_slice %257 {offsets = [0, 16], sizes = [16, 8], strides = [1, 1]} : vector<16x32xf32> to vector<16x8xf32>
    %cst_91 = arith.constant dense<0.000000e+00> : vector<16x8xf32>
    %299 = tpu.matmul %297, %298, %cst_91 {dimension_numbers = #tpu.dot_dimension_numbers<[1], [0], [0], [1], [0, 0, 1, 1], [], []>} : vector<16x16xf32>, vector<16x8xf32>, vector<16x8xf32> -> vector<16x8xf32>
    %300 = vector.extract_strided_slice %254 {offsets = [0, 24], sizes = [16, 8], strides = [1, 1]} : vector<16x32xf32> to vector<16x8xf32>
    %301 = vector.extract_strided_slice %256 {offsets = [24, 0], sizes = [8, 16], strides = [1, 1]} : vector<32x16xf32> to vector<8x16xf32>
    %cst_92 = arith.constant dense<0.000000e+00> : vector<16x16xf32>
    %302 = tpu.matmul %300, %301, %cst_92 {dimension_numbers = #tpu.dot_dimension_numbers<[1], [0], [0], [1], [0, 0, 1, 1], [], []>} : vector<16x8xf32>, vector<8x16xf32>, vector<16x16xf32> -> vector<16x16xf32>
    %cst_93 = arith.constant dense<0xFF800000> : vector<16xf32>
    %303 = vector.multi_reduction <maximumf>, %302, %cst_93 [1] : vector<16x16xf32> to vector<16xf32>
    %304 = vector.shape_cast %303 : vector<16xf32> to vector<16x1xf32>
    %305 = vector.broadcast %304 : vector<16x1xf32> to vector<16x16xf32>
    %306 = arith.subf %302, %305 : vector<16x16xf32>
    %307 = math.exp %306 : vector<16x16xf32>
    %cst_94 = arith.constant dense<0.000000e+00> : vector<16xf32>
    %308 = vector.multi_reduction <add>, %307, %cst_94 [1] : vector<16x16xf32> to vector<16xf32>
    %309 = vector.shape_cast %308 : vector<16xf32> to vector<16x1xf32>
    %310 = vector.broadcast %309 : vector<16x1xf32> to vector<16x16xf32>
    %311 = arith.divf %307, %310 : vector<16x16xf32>
    %312 = vector.extract_strided_slice %257 {offsets = [0, 24], sizes = [16, 8], strides = [1, 1]} : vector<16x32xf32> to vector<16x8xf32>
    %cst_95 = arith.constant dense<0.000000e+00> : vector<16x8xf32>
    %313 = tpu.matmul %311, %312, %cst_95 {dimension_numbers = #tpu.dot_dimension_numbers<[1], [0], [0], [1], [0, 0, 1, 1], [], []>} : vector<16x16xf32>, vector<16x8xf32>, vector<16x8xf32> -> vector<16x8xf32>
    %314 = tpu.concatenate %271, %285, %299, %313 in 1 : vector<16x8xf32>, vector<16x8xf32>, vector<16x8xf32>, vector<16x8xf32> -> vector<16x32xf32>
    %315 = tpu.concatenate %253, %314 in 0 : vector<16x32xf32>, vector<16x32xf32> -> vector<32x32xf32>
    %cst_96 = arith.constant dense<0.000000e+00> : vector<32x32xf32>
    %316 = tpu.matmul %315, %178, %cst_96 {dimension_numbers = #tpu.dot_dimension_numbers<[1], [0], [0], [1], [0, 0, 1, 1], [], []>} : vector<32x32xf32>, vector<32x32xf32>, vector<32x32xf32> -> vector<32x32xf32>
    %317 = vector.broadcast %179 : vector<1x32xf32> to vector<32x32xf32>
    %318 = arith.addf %316, %317 : vector<32x32xf32>
    %319 = arith.addf %172, %318 : vector<32x32xf32>
    %c10 = arith.constant 10 : index
    %c0_97 = arith.constant 0 : index
    %320 = vector.load %arg3[%c10, %c0_97] : memref<16x128xf32, #tpu.memory_space<vmem>>, vector<1x32xf32>
    %c11 = arith.constant 11 : index
    %c0_98 = arith.constant 0 : index
    %321 = vector.load %arg3[%c11, %c0_98] : memref<16x128xf32, #tpu.memory_space<vmem>>, vector<1x32xf32>
    %cst_99 = arith.constant dense<0.000000e+00> : vector<32xf32>
    %322 = vector.multi_reduction <add>, %319, %cst_99 [1] : vector<32x32xf32> to vector<32xf32>
    %323 = vector.shape_cast %322 : vector<32xf32> to vector<32x1xf32>
    %cst_100 = arith.constant 3.200000e+01 : f32
    %324 = vector.broadcast %cst_100 : f32 to vector<32x1xf32>
    %325 = arith.divf %323, %324 : vector<32x1xf32>
    %326 = vector.broadcast %325 : vector<32x1xf32> to vector<32x32xf32>
    %327 = arith.subf %319, %326 : vector<32x32xf32>
    %328 = arith.mulf %327, %327 : vector<32x32xf32>
    %cst_101 = arith.constant dense<0.000000e+00> : vector<32xf32>
    %329 = vector.multi_reduction <add>, %328, %cst_101 [1] : vector<32x32xf32> to vector<32xf32>
    %330 = vector.shape_cast %329 : vector<32xf32> to vector<32x1xf32>
    %cst_102 = arith.constant 3.200000e+01 : f32
    %331 = vector.broadcast %cst_102 : f32 to vector<32x1xf32>
    %332 = arith.divf %330, %331 : vector<32x1xf32>
    %333 = vector.broadcast %325 : vector<32x1xf32> to vector<32x32xf32>
    %334 = arith.subf %319, %333 : vector<32x32xf32>
    %cst_103 = arith.constant 9.99999974E-6 : f32
    %335 = vector.broadcast %cst_103 : f32 to vector<32x1xf32>
    %336 = arith.addf %332, %335 : vector<32x1xf32>
    %337 = math.rsqrt %336 : vector<32x1xf32>
    %338 = vector.broadcast %337 : vector<32x1xf32> to vector<32x32xf32>
    %339 = arith.mulf %334, %338 : vector<32x32xf32>
    %340 = vector.broadcast %320 : vector<1x32xf32> to vector<32x32xf32>
    %341 = arith.mulf %339, %340 : vector<32x32xf32>
    %342 = vector.broadcast %321 : vector<1x32xf32> to vector<32x32xf32>
    %343 = arith.addf %341, %342 : vector<32x32xf32>
    %c288 = arith.constant 288 : index
    %c0_104 = arith.constant 0 : index
    %344 = vector.load %arg2[%c288, %c0_104] : memref<384x128xf32, #tpu.memory_space<vmem>>, vector<32x64xf32>
    %cst_105 = arith.constant dense<0.000000e+00> : vector<32x64xf32>
    %345 = tpu.matmul %343, %344, %cst_105 {dimension_numbers = #tpu.dot_dimension_numbers<[1], [0], [0], [1], [0, 0, 1, 1], [], []>} : vector<32x32xf32>, vector<32x64xf32>, vector<32x64xf32> -> vector<32x64xf32>
    %c6 = arith.constant 6 : index
    %c0_106 = arith.constant 0 : index
    %346 = vector.load %arg3[%c6, %c0_106] : memref<16x128xf32, #tpu.memory_space<vmem>>, vector<1x64xf32>
    %347 = vector.broadcast %346 : vector<1x64xf32> to vector<32x64xf32>
    %348 = arith.addf %345, %347 : vector<32x64xf32>
    %cst_107 = arith.constant 0.000000e+00 : f32
    %349 = vector.broadcast %cst_107 : f32 to vector<32x64xf32>
    %350 = arith.maximumf %348, %349 : vector<32x64xf32>
    %c320 = arith.constant 320 : index
    %c0_108 = arith.constant 0 : index
    %351 = vector.load %arg2[%c320, %c0_108] : memref<384x128xf32, #tpu.memory_space<vmem>>, vector<64x32xf32>
    %cst_109 = arith.constant dense<0.000000e+00> : vector<32x32xf32>
    %352 = tpu.matmul %350, %351, %cst_109 {dimension_numbers = #tpu.dot_dimension_numbers<[1], [0], [0], [1], [0, 0, 1, 1], [], []>} : vector<32x64xf32>, vector<64x32xf32>, vector<32x32xf32> -> vector<32x32xf32>
    %c7 = arith.constant 7 : index
    %c0_110 = arith.constant 0 : index
    %353 = vector.load %arg3[%c7, %c0_110] : memref<16x128xf32, #tpu.memory_space<vmem>>, vector<1x32xf32>
    %354 = vector.broadcast %353 : vector<1x32xf32> to vector<32x32xf32>
    %355 = arith.addf %352, %354 : vector<32x32xf32>
    %356 = arith.addf %343, %355 : vector<32x32xf32>
    %c12 = arith.constant 12 : index
    %c0_111 = arith.constant 0 : index
    %357 = vector.load %arg3[%c12, %c0_111] : memref<16x128xf32, #tpu.memory_space<vmem>>, vector<1x32xf32>
    %c13 = arith.constant 13 : index
    %c0_112 = arith.constant 0 : index
    %358 = vector.load %arg3[%c13, %c0_112] : memref<16x128xf32, #tpu.memory_space<vmem>>, vector<1x32xf32>
    %cst_113 = arith.constant dense<0.000000e+00> : vector<32xf32>
    %359 = vector.multi_reduction <add>, %356, %cst_113 [1] : vector<32x32xf32> to vector<32xf32>
    %360 = vector.shape_cast %359 : vector<32xf32> to vector<32x1xf32>
    %cst_114 = arith.constant 3.200000e+01 : f32
    %361 = vector.broadcast %cst_114 : f32 to vector<32x1xf32>
    %362 = arith.divf %360, %361 : vector<32x1xf32>
    %363 = vector.broadcast %362 : vector<32x1xf32> to vector<32x32xf32>
    %364 = arith.subf %356, %363 : vector<32x32xf32>
    %365 = arith.mulf %364, %364 : vector<32x32xf32>
    %cst_115 = arith.constant dense<0.000000e+00> : vector<32xf32>
    %366 = vector.multi_reduction <add>, %365, %cst_115 [1] : vector<32x32xf32> to vector<32xf32>
    %367 = vector.shape_cast %366 : vector<32xf32> to vector<32x1xf32>
    %cst_116 = arith.constant 3.200000e+01 : f32
    %368 = vector.broadcast %cst_116 : f32 to vector<32x1xf32>
    %369 = arith.divf %367, %368 : vector<32x1xf32>
    %370 = vector.broadcast %362 : vector<32x1xf32> to vector<32x32xf32>
    %371 = arith.subf %356, %370 : vector<32x32xf32>
    %cst_117 = arith.constant 9.99999974E-6 : f32
    %372 = vector.broadcast %cst_117 : f32 to vector<32x1xf32>
    %373 = arith.addf %369, %372 : vector<32x1xf32>
    %374 = math.rsqrt %373 : vector<32x1xf32>
    %375 = vector.broadcast %374 : vector<32x1xf32> to vector<32x32xf32>
    %376 = arith.mulf %371, %375 : vector<32x32xf32>
    %377 = vector.broadcast %357 : vector<1x32xf32> to vector<32x32xf32>
    %378 = arith.mulf %376, %377 : vector<32x32xf32>
    %379 = vector.broadcast %358 : vector<1x32xf32> to vector<32x32xf32>
    %380 = arith.addf %378, %379 : vector<32x32xf32>
    %c0_118 = arith.constant 0 : index
    %c0_119 = arith.constant 0 : index
    %381 = vector.load %arg4[%c0_118, %c0_119] : memref<32x32xf32, #tpu.memory_space<vmem>>, vector<32x32xf32>
    tpu.vector_store %arg4[%c0_118, %c0_119], %380 {strides = array<i32>} : memref<32x32xf32, #tpu.memory_space<vmem>>, vector<32x32xf32>,
    return
  }
}

</mosaic_0001>

<bundles_post_ra>
// kernel: linformer_decoder_layer.1
= control target key start
LH: loop header
LB: loop body
LE: loop exit
PB: predicated region body
PF: predicated region fallthrough
CT: control target
= control target key end

     0   :  { %9 = vsyncpa [#allocation3], 0  ;;  %s3311_s18 = smov [#allocation2]   ;;  %s3312_s20 = smov 128   ;;  %s4254_s0 = inlined_call_operand.vmem [shape: f32[32,32], index: 0, kind: input, shape index: {}]   ;;  %s4255_s1 = inlined_call_operand.vmem [shape: f32[64,32], index: 1, kind: input, shape index: {}]   ;;  %s4256_s2 = inlined_call_operand.hbm [shape: f32[384,128], index: 2, kind: input, shape index: {}]   ;;  %s4257_s3 = inlined_call_operand.vmem [shape: f32[16,128], index: 3, kind: input, shape index: {}]   ;;  %s4258_s4 = inlined_call_operand.vmem [shape: f32[32,32], index: 4, kind: output, shape index: {}]  }
   0x1   :  { %s18_s17 = sshll.u32 %s4256_s2, 4  ;;  %s20_s19 = sshll.u32 %s3311_s18, 4  ;;  %s19_s17 = int_to_ptr.hbm [resolvable:$true] %s18_s17  ;;  %s21_s19 = int_to_ptr.vmem [resolvable:$true] %s20_s19 }
   0x2   :  { %s3313_s21 = smov 8  }
   0x3   :  { %26 = dma.hbm_to_vmem [thread:$0]  %s19_s17, 6144, %s21_s19, [#allocation3], %s3312_s20, %s3312_s20, %s3313_s21  }
   0x4   :  { %3309 = dma.done.wait [#allocation3], 6144  }
   0x5   :  { %3310 = vsyncadd [#allocation3], 4294961152  ;;  %v36_v0 = vld [vmem:[%s4254_s0 + $0x18] sm:$0xff]  ;;  %v35_v1 = vld [vmem:[%s4254_s0 + $0x10] sm:$0xff]  ;;  %vm65_vm0 = vcmask 261120   ;;  %vm194_vm1 = vcmask 64512  }
   0x6   :  { %131 = vmatpush.msra.mxu1 %v36_v0  ;;  %v34_v2 = vld [vmem:[%s4254_s0 + $0x8] sm:$0xff]  ;;  %v33_v3 = vld [vmem:[%s4254_s0] sm:$0xff]  ;;  %v57_v4 = vld [vmem:[#allocation2 + $0x98] sm:$0xff]  ;;  %s3314_s7 = smov 96   ;;  %s3315_s8 = smov 120  }
   0x7   :  { %v56_v5 = vld [vmem:[#allocation2 + $0x90] sm:$0xff]  ;;  %v45_v6 = vld [vmem:[#allocation2] sm:$0xff]  ;;  %172 = vmatpush.msra.mxu2 %v57_v4  ;;  %v55_v7 = vld [vmem:[#allocation2 + $0x88] sm:$0xff]  ;;  %s3316_s9 = smov 112   ;;  %s3317_s10 = smov 104  }
   0x8   :  { %132 = vmatpush.msra.mxu1 %v35_v1  ;;  %v46_v8 = vld [vmem:[#allocation2 + $0x8] sm:$0xff]  ;;  %v47_v9 = vld [vmem:[#allocation2 + $0x10] sm:$0xff]  ;;  %v54_v10 = vld [vmem:[#allocation2 + $0x80] sm:$0xff]  ;;  %s3318_s11 = smov 88   ;;  %s3319_s12 = smov 80  }
   0x9   :  { %173 = vmatpush.msra.mxu2 %v56_v5  ;;  %v52_v11 = vld [vmem:[#allocation2 + $0x78] sm:$0xff]  ;;  %v51_v12 = vld [vmem:[#allocation2 + $0x70] sm:$0xff]  ;;  %v50_v13 = vld [vmem:[#allocation2 + $0x68] sm:$0xff]  ;;  %s3320_s13 = smov 72   ;;  %s3321_s14 = smov 16  }
   0xa   :  { %133 = vmatpush.msra.mxu1 %v34_v2  ;;  %90 = vmatpush.msra.mxu0 %v52_v11  ;;  %v49_v14 = vld [vmem:[#allocation2 + $0x60] sm:$0xff]  ;;  %v48_v34 = vld [vmem:[#allocation2 + $0x18] sm:$0xff]  ;;  %s3322_s15 = smov 24  }
   0xb   :  { %174 = vmatpush.msra.mxu2 %v55_v7  ;;  %v3378_v18 = vld [vmem:[%s4257_s3 + $0x1] ss:$0 sm:$0xff]  ;;  %v3114_v20 = vld [vmem:[%s4257_s3] ss:$0 sm:$0xff] }
   0xc   :  { %134 = vmatpush.msra.mxu1 %v33_v3  ;;  %91 = vmatpush.msra.mxu0 %v51_v12 }
   0xd   :  { %2928 = vmatmul.msk.f32.vlgmr.msra.gmra.mxu1 %vm65_vm0, %v45_v6  ;;  %175 = vmatpush.msra.mxu2 %v54_v10 }
   0xe   :  { %92 = vmatpush.msra.mxu0 %v50_v13 }
  0x10   :  { %93 = vmatpush.msra.mxu0 %v49_v14 }
  0x11   :  { %2924 = vmatmul.msk.f32.vlgmr.msra.gmra.mxu0 %vm65_vm0, %v33_v3 }
  0x15   :  { %2929 = vmatmul.msk.f32.gmra.mxu1 %vm65_vm0, %v46_v8 }
  0x19   :  { %2925 = vmatmul.msk.f32.gmra.mxu0 %vm65_vm0, %v34_v2 }
  0x1d   :  { %2930 = vmatmul.msk.f32.gmra.mxu1 %vm65_vm0, %v47_v9 }
  0x21   :  { %2926 = vmatmul.msk.f32.gmra.mxu0 %vm65_vm0, %v35_v1 }
  0x25   :  { %2931 = vmatmul.msk.f32.gmra.mxu1 %vm65_vm0, %v48_v34 }
  0x29   :  { %2927 = vmatmul.msk.f32.gmra.mxu0 %vm65_vm0, %v36_v0 }
  0x8a   :  { %v136_v15 = vpop.f32.mrf.mxu1 }
  0x8b   :  { %2932 = vmatmul.msk.f32.vlgmr.msra.gmra.mxu2 %vm65_vm0, %v136_v15 }
  0x8e   :  { %v95_v19 = vpop.f32.mrf.mxu0 }
  0x8f   :  { %v96_v23 = vadd.f32 %v3114_v20, %v95_v19 }
  0x92   :  { %v139_v16 = vpop.f32.mrf.mxu1 }
  0x93   :  { %2933 = vmatmul.msk.f32.gmra.mxu2 %vm65_vm0, %v139_v16 }
  0x96   :  { %v98_v24 = vpop.f32.mrf.mxu0 }
  0x97   :  { %v3386_v26 = vadd.f32 %v3114_v20, %v98_v24 }
  0x9a   :  { %v142_v17 = vpop.f32.mrf.mxu1 }
  0x9b   :  { %2934 = vmatmul.msk.f32.gmra.mxu2 %vm65_vm0, %v142_v17 }
  0x9e   :  { %v101_v29 = vpop.f32.mrf.mxu0 }
  0x9f   :  { %v3401_v30 = vadd.f32 %v3114_v20, %v101_v29 }
  0xa2   :  { %v145_v45 = vpop.f32.mrf.mxu1 }
  0xa3   :  { %2935 = vmatmul.msk.f32.gmra.mxu2 %vm65_vm0, %v145_v45 }
  0xa6   :  { %v104_v32 = vpop.f32.mrf.mxu0 }
  0xa7   :  { %v105_v33 = vadd.f32 %v3114_v20, %v104_v32 }
 0x10e   :  { %v177_v21 = vpop.f32.mrf.mxu2 }
 0x10f   :  { %v190_v22 = vadd.f32 %v3378_v18, %v177_v21 }
 0x111   :  { %2936 = vmatpush.xpose.msk.msrb.mxu0 %vm194_vm1, %v190_v22 }
 0x114   :  { %2937 = vmatmul.msk.f32.vlgmr.msrb.gmra.mxu0 %vm194_vm1, %v96_v23 }
 0x116   :  { %v180_v25 = vpop.f32.mrf.mxu2 }
 0x117   :  { %v191_v31 = vadd.f32 %v3378_v18, %v180_v25 }
 0x11c   :  { %2938 = vmatmul.msk.f32.gmra.mxu0 %vm194_vm1, %v3386_v26 }
 0x11e   :  { %v183_v27 = vpop.f32.mrf.mxu2 }
 0x11f   :  { %v3391_v28 = vadd.f32 %v3378_v18, %v183_v27 }
 0x121   :  { %276 = vrot.lane.b32.xlu2 %v3391_v28, %s3314_s7 }
 0x129   :  { %312 = vrot.lane.b32.xlu2 %v190_v22, %s3315_s8 }
 0x131   :  { %427 = vrot.lane.b32.xlu2 %v190_v22, %s3316_s9 }
 0x139   :  { %542 = vrot.lane.b32.xlu2 %v190_v22, %s3317_s10 }
 0x141   :  { %423 = vrot.lane.b32.xlu2 %v96_v23, %s3316_s9 }
 0x149   :  { %425 = vrot.lane.b32.xlu2 %v3386_v26, %s3316_s9 }
 0x151   :  { %798 = vrot.lane.b32.xlu2 %v3401_v30, %s3315_s8 }
 0x159   :  { %1032 = vrot.lane.b32.xlu2 %v191_v31, %s3317_s10 }
 0x161   :  { %915 = vrot.lane.b32.xlu2 %v105_v33, %s3316_s9 }
 0x17b   :  { %v277_v35 = vpop.permute.xlu2 %276 }
 0x17c   :  { %300 = vmatpush.msra.mxu3 %v277_v35 }
 0x183   :  { %v313_v36 = vpop.permute.xlu2 %312 }
 0x184   :  { %2941 = vmatpush.xpose.msk.msrb.mxu3 %vm194_vm1, %v313_v36 }
 0x18b   :  { %v428_v37 = vpop.permute.xlu2 %427 }
 0x18c   :  { %2946 = vmatpush.xpose.msk.msrb.mxu1 %vm194_vm1, %v428_v37 }
 0x190   :  { %2956 = vmatpush.xpose.msk.msra.mxu1 %vm194_vm1, %v191_v31 }
 0x191   :  { %v221_v38 = vpop.f32.mrf.mxu0 }
 0x192   :  { %v227_v39 = vsel %vm194_vm1, %v221_v38, -inf }
 0x193   :  { %v3413_v40 = vpop.permute.xlu2 %542  ;;  %228 = vmax.xlane.f32.xlu0 %v227_v39 }
 0x199   :  { %v224_v41 = vpop.f32.mrf.mxu0 }
 0x19a   :  { %v230_v42 = vsel %vm194_vm1, %v224_v41, -inf }
 0x19b   :  { %v424_v43 = vpop.permute.xlu2 %423  ;;  %231 = vmax.xlane.f32.xlu0 %v230_v42 }
 0x19c   :  { %2947 = vmatmul.msk.f32.vlgmr.msrb.gmra.mxu1 %vm194_vm1, %v424_v43 }
 0x1a3   :  { %v426_v44 = vpop.permute.xlu2 %425 }
 0x1a4   :  { %2948 = vmatmul.msk.f32.gmra.mxu1 %vm194_vm1, %v426_v44 }
 0x1ab   :  { %v799_v1 = vpop.permute.xlu2 %798 }
 0x1ac   :  { %2957 = vmatmul.msk.f32.vlgmr.msra.gmra.mxu1 %vm194_vm1, %v3401_v30 }
 0x1af   :  { %308 = vrot.lane.b32.xlu0 %v96_v23, %s3315_s8 }
 0x1b3   :  { %v1033_v3 = vpop.permute.xlu2 %1032 }
 0x1b4   :  { %2958 = vmatmul.msk.f32.gmra.mxu1 %vm194_vm1, %v105_v33 }
 0x1b7   :  { %538 = vrot.lane.b32.xlu0 %v96_v23, %s3317_s10 }
 0x1bb   :  { %v916_v6 = vpop.permute.xlu2 %915 }
 0x1bf   :  { %802 = vrot.lane.b32.xlu0 %v191_v31, %s3315_s8 }
 0x1c7   :  { %917 = vrot.lane.b32.xlu0 %v191_v31, %s3316_s9 }
 0x1cf   :  { %1028 = vrot.lane.b32.xlu0 %v3401_v30, %s3317_s10 }
 0x206   :  { %v229_v46 = vpop.xlane.xlu0 %228 }
 0x207   :  { %v233_v47 = vsub.f32 %v221_v38, %v229_v46 }
 0x209   :  { %v235_v48 = vmul.f32 1.442695, %v233_v47 }
 0x20b   :  { %3127 = vpow2.f32 %v235_v48 }
 0x20e   :  { %v232_v49 = vpop.xlane.xlu0 %231 }
 0x20f   :  { %v234_v50 = vsub.f32 %v224_v41, %v232_v49 }
 0x211   :  { %v3128_v51 = vpop.eup %3127  ;;  %v237_v52 = vmul.f32 1.442695, %v234_v50 }
 0x212   :  { %v239_v53 = vsel %vm194_vm1, %v3128_v51, 0.0 }
 0x213   :  { %3129 = vpow2.f32 %v237_v52  ;;  %240 = vadd.xlane.f32.xlu1 %v239_v53 }
 0x219   :  { %v3429_v54 = vpop.eup %3129  ;;  %v3431_v55 = vpop.f32.mrf.mxu1 }
 0x21a   :  { %v242_v56 = vsel %vm194_vm1, %v3429_v54, 0.0  ;;  %v458_v2 = vsel %vm194_vm1, %v3431_v55, -inf }
 0x21b   :  { %243 = vadd.xlane.f32.xlu1 %v242_v56 }
 0x221   :  { %v3435_v57 = vpop.f32.mrf.mxu1  ;;  %v3437_v58 = vpop.permute.xlu0 %308 }
 0x222   :  { %v461_v59 = vsel %vm194_vm1, %v3435_v57, -inf }
 0x223   :  { %462 = vmax.xlane.f32.xlu2 %v461_v59 }
 0x229   :  { %v3441_v60 = vpop.f32.mrf.mxu1  ;;  %v3443_v61 = vpop.permute.xlu0 %538 }
 0x22a   :  { %v717_v62 = vsel %vm194_vm1, %v3441_v60, -inf }
 0x22b   :  { %718 = vmax.xlane.f32.xlu0 %v717_v62 }
 0x231   :  { %v803_v63 = vpop.permute.xlu0 %802  ;;  %v714_v36 = vpop.f32.mrf.mxu1 }
 0x232   :  { %v720_v38 = vsel %vm194_vm1, %v714_v36, -inf }
 0x234   :  { %310 = vrot.lane.b32.xlu1 %v3386_v26, %s3315_s8 }
 0x239   :  { %v918_v0 = vpop.permute.xlu0 %917 }
 0x23a   :  { %2966 = vmatpush.xpose.msk.msrb.mxu1 %vm194_vm1, %v918_v0 }
 0x23b   :  { %391 = vrot.lane.b32.xlu2 %v3391_v28, %s3318_s11 }
 0x23c   :  { %540 = vrot.lane.b32.xlu1 %v3386_v26, %s3317_s10 }
 0x241   :  { %v1029_v39 = vpop.permute.xlu0 %1028 }
 0x244   :  { %800 = vrot.lane.b32.xlu1 %v105_v33, %s3315_s8 }
 0x24c   :  { %913 = vrot.lane.b32.xlu1 %v3401_v30, %s3316_s9 }
 0x254   :  { %1030 = vrot.lane.b32.xlu1 %v105_v33, %s3317_s10 }
 0x27e   :  { %459 = vmax.xlane.f32.xlu1 %v458_v2 }
 0x286   :  { %v241_v4 = vpop.xlane.xlu1 %240 }
 0x287   :  { %3131 = vrcp.f32 %v241_v4  ;;  %v256_v10 = vand.u32 2147483648, %v241_v4  ;;  %v254_v12 = vand.u32 2147483647, %v241_v4  ;;  %vm250_vm3 = vweird.f32 %v241_v4 }
 0x289   :  { %v257_v15 = vor.u32 1.1754944e-38, %v256_v10  ;;  %vm255_vm5 = vcmp.eq.f32.partialorder %v254_v12, 8.507059e+37 }
 0x28d   :  { %v3132_v5 = vpop.eup %3131 }
 0x28e   :  { %v246_v7 = vmul.f32 %v3132_v5, %v241_v4  ;;  %v244_v8 = vpop.xlane.xlu1 %243  ;;  %vm251_vm2 = vweird.f32 %v3132_v5 }
 0x28f   :  { %3133 = vrcp.f32 %v244_v8  ;;  %vm252_vm4 = vmor %vm250_vm3, %vm251_vm2  ;;  %v271_v23 = vand.u32 2147483648, %v244_v8  ;;  %v269_v25 = vand.u32 2147483647, %v244_v8  ;;  %vm265_vm7 = vweird.f32 %v244_v8 }
 0x290   :  { %v247_v9 = vsub.f32 1.0, %v246_v7 }
 0x291   :  { %v272_v27 = vor.u32 1.1754944e-38, %v271_v23  ;;  %vm270_vm9 = vcmp.eq.f32.partialorder %v269_v25, 8.507059e+37 }
 0x292   :  { %v248_v11 = vmul.f32 %v3132_v5, %v247_v9 }
 0x294   :  { %v249_v13 = vadd.f32 %v3132_v5, %v248_v11 }
 0x295   :  { %v3134_v14 = vpop.eup %3133 }
 0x296   :  { %v261_v16 = vmul.f32 %v3134_v14, %v244_v8  ;;  %v463_v17 = vpop.xlane.xlu2 %462  ;;  %v253_v19 = vsel %vm252_vm4, %v3132_v5, %v249_v13  ;;  %vm266_vm6 = vweird.f32 %v3134_v14 }
 0x297   :  { %506 = vrot.lane.b32.xlu1 %v3391_v28, %s3319_s12  ;;  %v258_v20 = vsel %vm255_vm5, %v257_v15, %v253_v19  ;;  %vm267_vm8 = vmor %vm265_vm7, %vm266_vm6  ;;  %v465_v49 = vsub.f32 %v3435_v57, %v463_v17 }
 0x298   :  { %v262_v21 = vsub.f32 1.0, %v261_v16  ;;  %v259_v22 = vmul.f32 %v3128_v51, %v258_v20  ;;  %v186_v20 = vpop.f32.mrf.mxu2 }
 0x299   :  { %v468_v53 = vmul.f32 1.442695, %v465_v49 }
 0x29a   :  { %2939 = vmatmul.msk.f32.vlgmr.msra.gmra.mxu3 %vm194_vm1, %v259_v22  ;;  %v263_v24 = vmul.f32 %v3134_v14, %v262_v21  ;;  %v3546_v21 = vadd.f32 %v3378_v18, %v186_v20 }
 0x29b   :  { %2951 = vmatpush.xpose.msk.msra.mxu3 %vm194_vm1, %v3413_v40 }
 0x29c   :  { %v264_v26 = vadd.f32 %v3134_v14, %v263_v24 }
 0x29e   :  { %v392_v29 = vpop.permute.xlu2 %391  ;;  %v268_v30 = vsel %vm267_vm8, %v3134_v14, %v264_v26 }
 0x29f   :  { %415 = vmatpush.msra.mxu0 %v392_v29  ;;  %v273_v31 = vsel %vm270_vm9, %v272_v27, %v268_v30 }
 0x2a0   :  { %v274_v32 = vmul.f32 %v3429_v54, %v273_v31  ;;  %v719_v54 = vpop.xlane.xlu0 %718 }
 0x2a2   :  { %2940 = vmatmul.msk.f32.gmra.mxu3 %vm194_vm1, %v274_v32 }
 0x2a6   :  { %v311_v33 = vpop.permute.xlu1 %310 }
 0x2aa   :  { %2942 = vmatmul.msk.f32.vlgmr.msrb.gmra.mxu3 %vm194_vm1, %v3437_v58 }
 0x2ab   :  { %2961 = vmatpush.xpose.msk.msrb.mxu3 %vm194_vm1, %v803_v63 }
 0x2ae   :  { %v541_v34 = vpop.permute.xlu1 %540 }
 0x2b2   :  { %2943 = vmatmul.msk.f32.gmra.mxu3 %vm194_vm1, %v311_v33 }
 0x2b6   :  { %v801_v35 = vpop.permute.xlu1 %800 }
 0x2ba   :  { %2952 = vmatmul.msk.f32.vlgmr.msra.gmra.mxu3 %vm194_vm1, %v3443_v61 }
 0x2bb   :  { %2971 = vmatpush.xpose.msk.msra.mxu3 %vm194_vm1, %v1033_v3 }
 0x2be   :  { %v914_v37 = vpop.permute.xlu1 %913 }
 0x2bf   :  { %2967 = vmatmul.msk.f32.vlgmr.msrb.gmra.mxu1 %vm194_vm1, %v914_v37 }
 0x2c1   :  { %721 = vmax.xlane.f32.xlu1 %v720_v38 }
 0x2c2   :  { %2953 = vmatmul.msk.f32.gmra.mxu3 %vm194_vm1, %v541_v34 }
 0x2c6   :  { %v1031_v40 = vpop.permute.xlu1 %1030 }
 0x2c7   :  { %2968 = vmatmul.msk.f32.gmra.mxu1 %vm194_vm1, %v916_v6 }
 0x2ca   :  { %2962 = vmatmul.msk.f32.vlgmr.msrb.gmra.mxu3 %vm194_vm1, %v799_v1 }
 0x2d2   :  { %2963 = vmatmul.msk.f32.gmra.mxu3 %vm194_vm1, %v801_v35 }
 0x2da   :  { %2972 = vmatmul.msk.f32.vlgmr.msra.gmra.mxu3 %vm194_vm1, %v1029_v39 }
 0x2e2   :  { %2973 = vmatmul.msk.f32.gmra.mxu3 %vm194_vm1, %v1031_v40 }
 0x2f1   :  { %v460_v41 = vpop.xlane.xlu1 %459 }
 0x2f2   :  { %v464_v46 = vsub.f32 %v3431_v55, %v460_v41  ;;  %v723_v55 = vsub.f32 %v3441_v60, %v719_v54 }
 0x2f4   :  { %v466_v48 = vmul.f32 1.442695, %v464_v46  ;;  %v725_v63 = vmul.f32 1.442695, %v723_v55 }
 0x2f6   :  { %3135 = vpow2.f32 %v466_v48 }
 0x2f7   :  { %3137 = vpow2.f32 %v468_v53 }
 0x2f8   :  { %3139 = vpow2.f32 %v725_v63 }
 0x2fc   :  { %v3498_v56 = vpop.eup %3135 }
 0x2fd   :  { %v470_v57 = vsel %vm194_vm1, %v3498_v56, 0.0  ;;  %v3511_v1 = vpop.eup %3137 }
 0x2fe   :  { %v473_v4 = vsel %vm194_vm1, %v3511_v1, 0.0  ;;  %v3519_v6 = vpop.eup %3139 }
 0x2ff   :  { %v729_v9 = vsel %vm194_vm1, %v3519_v6, 0.0 }
 0x309   :  { %v507_v42 = vpop.permute.xlu1 %506 }
 0x30a   :  { %530 = vmatpush.msrb.mxu2 %v507_v42 }
 0x31d   :  { %v3482_v43 = vpop.f32.mrf.mxu3 }
 0x325   :  { %v3484_v44 = vpop.f32.mrf.mxu3 }
 0x32d   :  { %v3486_v45 = vpop.f32.mrf.mxu3 }
 0x32e   :  { %v343_v15 = vsel %vm194_vm1, %v3486_v45, -inf }
 0x334   :  { %v722_v0 = vpop.xlane.xlu1 %721 }
 0x335   :  { %v3489_v47 = vpop.f32.mrf.mxu3  ;;  %v724_v60 = vsub.f32 %v714_v36, %v722_v0 }
 0x336   :  { %v346_v3 = vsel %vm194_vm1, %v3489_v47, -inf }
 0x337   :  { %v727_v5 = vmul.f32 1.442695, %v724_v60 }
 0x339   :  { %3141 = vpow2.f32 %v727_v5 }
 0x33c   :  { %v3492_v50 = vpop.f32.mrf.mxu1 }
 0x33d   :  { %v3494_v51 = vpop.f32.mrf.mxu3  ;;  %v948_v52 = vsel %vm194_vm1, %v3492_v50, -inf }
 0x33e   :  { %949 = vmax.xlane.f32.xlu2 %v948_v52  ;;  %v573_v17 = vsel %vm194_vm1, %v3494_v51, -inf }
 0x33f   :  { %v3527_v10 = vpop.eup %3141 }
 0x340   :  { %v732_v12 = vsel %vm194_vm1, %v3527_v10, 0.0 }
 0x344   :  { %v3501_v58 = vpop.f32.mrf.mxu1 }
 0x345   :  { %v3503_v59 = vpop.f32.mrf.mxu3  ;;  %v951_v61 = vsel %vm194_vm1, %v3501_v58, -inf }
 0x346   :  { %471 = vadd.xlane.f32.xlu2 %v470_v57  ;;  %952 = vmax.xlane.f32.xlu0 %v951_v61  ;;  %v576_v62 = vsel %vm194_vm1, %v3503_v59, -inf }
 0x347   :  { %577 = vmax.xlane.f32.xlu1 %v576_v62 }
 0x34d   :  { %v3513_v2 = vpop.f32.mrf.mxu3 }
 0x34e   :  { %347 = vmax.xlane.f32.xlu2 %v346_v3  ;;  %474 = vadd.xlane.f32.xlu0 %v473_v4  ;;  %v833_v8 = vsel %vm194_vm1, %v3513_v2, -inf }
 0x355   :  { %v3521_v7 = vpop.f32.mrf.mxu3 }
 0x356   :  { %834 = vmax.xlane.f32.xlu2 %v833_v8  ;;  %730 = vadd.xlane.f32.xlu0 %v729_v9  ;;  %v836_v19 = vsel %vm194_vm1, %v3521_v7, -inf }
 0x35d   :  { %v3529_v11 = vpop.f32.mrf.mxu3 }
 0x35e   :  { %733 = vadd.xlane.f32.xlu0 %v732_v12  ;;  %v1063_v13 = vsel %vm194_vm1, %v3529_v11, -inf }
 0x35f   :  { %1064 = vmax.xlane.f32.xlu1 %v1063_v13 }
 0x365   :  { %v3535_v14 = vpop.f32.mrf.mxu3 }
 0x366   :  { %344 = vmax.xlane.f32.xlu0 %v343_v15  ;;  %v1066_v16 = vsel %vm194_vm1, %v3535_v14, -inf }
 0x367   :  { %1067 = vmax.xlane.f32.xlu1 %v1066_v16 }
 0x36e   :  { %574 = vmax.xlane.f32.xlu0 %v573_v17 }
 0x376   :  { %837 = vmax.xlane.f32.xlu0 %v836_v19 }
 0x380   :  { %766 = vrot.lane.b32.xlu1 %v3546_v21, %s3314_s7 }
 0x3b1   :  { %v3550_v22 = vpop.xlane.xlu2 %949 }
 0x3b9   :  { %v472_v23 = vpop.xlane.xlu2 %471  ;;  %v3552_v24 = vpop.xlane.xlu0 %952 }
 0x3ba   :  { %3143 = vrcp.f32 %v472_v23  ;;  %v487_v33 = vand.u32 2147483648, %v472_v23  ;;  %v485_v34 = vand.u32 2147483647, %v472_v23  ;;  %vm481_vm11 = vweird.f32 %v472_v23  ;;  %v578_v63 = vpop.xlane.xlu1 %577 }
 0x3bc   :  { %v488_v37 = vor.u32 1.1754944e-38, %v487_v33  ;;  %vm486_vm13 = vcmp.eq.f32.partialorder %v485_v34, 8.507059e+37 }
 0x3c0   :  { %v3144_v25 = vpop.eup %3143 }
 0x3c1   :  { %v477_v26 = vmul.f32 %v3144_v25, %v472_v23  ;;  %v348_v27 = vpop.xlane.xlu2 %347  ;;  %v475_v29 = vpop.xlane.xlu0 %474  ;;  %vm482_vm10 = vweird.f32 %v3144_v25 }
 0x3c2   :  { %v350_v30 = vsub.f32 %v3489_v47, %v348_v27  ;;  %3145 = vrcp.f32 %v475_v29  ;;  %vm483_vm12 = vmor %vm481_vm11, %vm482_vm10  ;;  %v502_v48 = vand.u32 2147483648, %v475_v29  ;;  %v500_v53 = vand.u32 2147483647, %v475_v29 }
 0x3c3   :  { %v478_v31 = vsub.f32 1.0, %v477_v26  ;;  %vm496_vm15 = vweird.f32 %v475_v29 }
 0x3c4   :  { %v353_v32 = vmul.f32 1.442695, %v350_v30  ;;  %v503_v55 = vor.u32 1.1754944e-38, %v502_v48  ;;  %vm501_vm3 = vcmp.eq.f32.partialorder %v500_v53, 8.507059e+37  ;;  %v955_v30 = vsub.f32 %v3501_v58, %v3552_v24 }
 0x3c5   :  { %v479_v18 = vmul.f32 %v3144_v25, %v478_v31 }
 0x3c6   :  { %3147 = vpow2.f32 %v353_v32 }
 0x3c7   :  { %v480_v35 = vadd.f32 %v3144_v25, %v479_v18 }
 0x3c8   :  { %v3146_v36 = vpop.eup %3145 }
 0x3c9   :  { %v492_v38 = vmul.f32 %v3146_v36, %v475_v29  ;;  %v3555_v39 = vpop.xlane.xlu0 %730  ;;  %v484_v40 = vsel %vm483_vm12, %v3144_v25, %v480_v35  ;;  %vm497_vm14 = vweird.f32 %v3146_v36  ;;  %v958_v35 = vmul.f32 1.442695, %v955_v30 }
 0x3ca   :  { %v489_v42 = vsel %vm486_vm13, %v488_v37, %v484_v40  ;;  %vm498_vm2 = vmor %vm496_vm15, %vm497_vm14  ;;  %3149 = vrcp.f32 %v3555_v39  ;;  %v746_v26 = vand.u32 2147483648, %v3555_v39  ;;  %vm740_vm5 = vweird.f32 %v3555_v39 }
 0x3cb   :  { %v493_v41 = vsub.f32 1.0, %v492_v38  ;;  %v490_v47 = vmul.f32 %v3498_v56, %v489_v42  ;;  %v744_v27 = vand.u32 2147483647, %v3555_v39 }
 0x3cc   :  { %v3557_v46 = vpop.eup %3147  ;;  %v747_v18 = vor.u32 1.1754944e-38, %v746_v26 }
 0x3cd   :  { %v358_v49 = vsel %vm194_vm1, %v3557_v46, 0.0  ;;  %v494_v52 = vmul.f32 %v3146_v36, %v493_v41  ;;  %2949 = vmatmul.msk.f32.vlgmr.msrb.gmra.mxu2 %vm194_vm1, %v490_v47  ;;  %vm745_vm7 = vcmp.eq.f32.partialorder %v744_v27, 8.507059e+37  ;;  %v835_v47 = vpop.xlane.xlu2 %834 }
 0x3ce   :  { %359 = vadd.xlane.f32.xlu0 %v358_v49 }
 0x3cf   :  { %v495_v54 = vadd.f32 %v3146_v36, %v494_v52 }
 0x3d0   :  { %v3150_v0 = vpop.eup %3149 }
 0x3d1   :  { %v3563_v57 = vpop.xlane.xlu0 %733  ;;  %v499_v61 = vsel %vm498_vm2, %v3146_v36, %v495_v54  ;;  %v736_v4 = vmul.f32 %v3150_v0, %v3555_v39  ;;  %vm741_vm4 = vweird.f32 %v3150_v0 }
 0x3d2   :  { %v504_v62 = vsel %vm501_vm3, %v503_v55, %v499_v61  ;;  %3151 = vrcp.f32 %v3563_v57  ;;  %v3571_v9 = vpop.xlane.xlu1 %1064  ;;  %vm742_vm6 = vmor %vm740_vm5, %vm741_vm4  ;;  %v761_v37 = vand.u32 2147483648, %v3563_v57  ;;  %vm755_vm9 = vweird.f32 %v3563_v57 }
 0x3d3   :  { %v505_v56 = vmul.f32 %v3511_v1, %v504_v62  ;;  %v737_v8 = vsub.f32 1.0, %v736_v4  ;;  %v759_v39 = vand.u32 2147483647, %v3563_v57 }
 0x3d4   :  { %v762_v41 = vor.u32 1.1754944e-38, %v761_v37 }
 0x3d5   :  { %2950 = vmatmul.msk.f32.gmra.mxu2 %vm194_vm1, %v505_v56  ;;  %v738_v16 = vmul.f32 %v3150_v0, %v737_v8  ;;  %vm760_vm11 = vcmp.eq.f32.partialorder %v759_v39, 8.507059e+37 }
 0x3d7   :  { %v739_v25 = vadd.f32 %v3150_v0, %v738_v16 }
 0x3d8   :  { %v3152_v12 = vpop.eup %3151 }
 0x3d9   :  { %v345_v60 = vpop.xlane.xlu0 %344  ;;  %v751_v17 = vmul.f32 %v3152_v12, %v3563_v57  ;;  %v743_v31 = vsel %vm742_vm6, %v3150_v0, %v739_v25  ;;  %vm756_vm8 = vweird.f32 %v3152_v12  ;;  %v954_v0 = vsub.f32 %v3492_v50, %v3550_v22 }
 0x3da   :  { %v349_v3 = vsub.f32 %v3486_v45, %v345_v60  ;;  %v580_v45 = vsub.f32 %v3503_v59, %v578_v63  ;;  %v1068_v59 = vpop.xlane.xlu1 %1067  ;;  %v748_v34 = vsel %vm745_vm7, %v747_v18, %v743_v31  ;;  %vm757_vm10 = vmor %vm755_vm9, %vm756_vm8 }
 0x3db   :  { %v749_v24 = vmul.f32 %v3519_v6, %v748_v34  ;;  %v839_v6 = vsub.f32 %v3513_v2, %v835_v47  ;;  %v1069_v2 = vsub.f32 %v3529_v11, %v3571_v9 }
 0x3dc   :  { %v351_v5 = vmul.f32 1.442695, %v349_v3  ;;  %v583_v23 = vmul.f32 1.442695, %v580_v45  ;;  %v956_v3 = vmul.f32 1.442695, %v954_v0 }
 0x3dd   :  { %v841_v54 = vmul.f32 1.442695, %v839_v6  ;;  %v1071_v56 = vmul.f32 1.442695, %v1069_v2 }
 0x3de   :  { %3153 = vpow2.f32 %v351_v5 }
 0x3e1   :  { %v575_v13 = vpop.xlane.xlu0 %574 }
 0x3e2   :  { %v579_v1 = vsub.f32 %v3494_v51, %v575_v13  ;;  %881 = vrot.lane.b32.xlu0 %v3546_v21, %s3318_s11  ;;  %v752_v51 = vsub.f32 1.0, %v751_v17 }
 0x3e4   :  { %v3576_v15 = vpop.eup %3153  ;;  %v581_v19 = vmul.f32 1.442695, %v579_v1  ;;  %v753_v32 = vmul.f32 %v3152_v12, %v752_v51 }
 0x3e5   :  { %v355_v20 = vsel %vm194_vm1, %v3576_v15, 0.0 }
 0x3e6   :  { %3155 = vpow2.f32 %v581_v19  ;;  %356 = vadd.xlane.f32.xlu2 %v355_v20  ;;  %v754_v36 = vadd.f32 %v3152_v12, %v753_v32 }
 0x3e7   :  { %3157 = vpow2.f32 %v583_v23 }
 0x3e8   :  { %3159 = vpow2.f32 %v958_v35  ;;  %v758_v40 = vsel %vm757_vm10, %v3152_v12, %v754_v36 }
 0x3e9   :  { %v763_v48 = vsel %vm760_vm11, %v762_v41, %v758_v40  ;;  %v838_v55 = vpop.xlane.xlu0 %837  ;;  %3161 = vpow2.f32 %v841_v54 }
 0x3ea   :  { %v764_v52 = vmul.f32 %v3527_v10, %v763_v48  ;;  %v840_v57 = vsub.f32 %v3521_v7, %v838_v55 }
 0x3ec   :  { %v3585_v29 = vpop.eup %3155  ;;  %v843_v61 = vmul.f32 1.442695, %v840_v57 }
 0x3ed   :  { %v585_v33 = vsel %vm194_vm1, %v3585_v29, 0.0  ;;  %v3592_v38 = vpop.eup %3157 }
 0x3ee   :  { %586 = vadd.xlane.f32.xlu1 %v585_v33  ;;  %v588_v42 = vsel %vm194_vm1, %v3592_v38, 0.0  ;;  %v3600_v49 = vpop.eup %3159  ;;  %3163 = vpow2.f32 %v843_v61 }
 0x3ef   :  { %v963_v53 = vsel %vm194_vm1, %v3600_v49, 0.0  ;;  %v3610_v62 = vpop.eup %3161  ;;  %3165 = vpow2.f32 %v1071_v56 }
 0x3f0   :  { %v845_v10 = vsel %vm194_vm1, %v3610_v62, 0.0 }
 0x3f2   :  { %v767_v58 = vpop.permute.xlu1 %766 }
 0x3f3   :  { %790 = vmatpush.msra.mxu2 %v767_v58 }
 0x3f4   :  { %2959 = vmatmul.msk.f32.vlgmr.msra.gmra.mxu2 %vm194_vm1, %v749_v24  ;;  %v3616_v63 = vpop.eup %3163 }
 0x3f5   :  { %v848_v7 = vsel %vm194_vm1, %v3616_v63, 0.0  ;;  %v3625_v11 = vpop.eup %3165 }
 0x3f6   :  { %589 = vadd.xlane.f32.xlu1 %v588_v42  ;;  %v1075_v4 = vsel %vm194_vm1, %v3625_v11, 0.0 }
 0x3fc   :  { %2960 = vmatmul.msk.f32.gmra.mxu2 %vm194_vm1, %v764_v52 }
 0x3fe   :  { %621 = vrot.lane.b32.xlu2 %v3391_v28, %s3320_s13  ;;  %964 = vadd.xlane.f32.xlu1 %v963_v53  ;;  %v1070_v28 = vsub.f32 %v3535_v14, %v1068_v59 }
 0x400   :  { %v1073_v60 = vmul.f32 1.442695, %v1070_v28 }
 0x402   :  { %3167 = vpow2.f32 %v1073_v60 }
 0x403   :  { %3169 = vpow2.f32 %v956_v3 }
 0x408   :  { %v3629_v14 = vpop.eup %3167 }
 0x409   :  { %v3631_v5 = vpop.eup %3169  ;;  %v1078_v50 = vsel %vm194_vm1, %v3629_v14, 0.0 }
 0x40a   :  { %v960_v22 = vsel %vm194_vm1, %v3631_v5, 0.0 }
 0x40c   :  { %846 = vadd.xlane.f32.xlu0 %v845_v10 }
 0x414   :  { %849 = vadd.xlane.f32.xlu0 %v848_v7 }
 0x417   :  { %1111 = vrot.lane.b32.xlu1 %v3546_v21, %s3320_s13 }
 0x41c   :  { %1076 = vadd.xlane.f32.xlu0 %v1075_v4 }
 0x424   :  { %1079 = vadd.xlane.f32.xlu0 %v1078_v50 }
 0x427   :  { %961 = vadd.xlane.f32.xlu2 %v960_v22 }
 0x43f   :  { %996 = vrot.lane.b32.xlu2 %v3546_v21, %s3319_s12 }
 0x441   :  { %v360_v8 = vpop.xlane.xlu0 %359 }
 0x442   :  { %3171 = vrcp.f32 %v360_v8  ;;  %v387_v33 = vand.u32 2147483648, %v360_v8  ;;  %vm381_vm3 = vweird.f32 %v360_v8  ;;  %v385_v37 = vand.u32 2147483647, %v360_v8 }
 0x444   :  { %v388_v40 = vor.u32 1.1754944e-38, %v387_v33  ;;  %vm386_vm5 = vcmp.eq.f32.partialorder %v385_v37, 8.507059e+37 }
 0x448   :  { %v3172_v12 = vpop.eup %3171 }
 0x449   :  { %v377_v13 = vmul.f32 %v3172_v12, %v360_v8  ;;  %vm382_vm15 = vweird.f32 %v3172_v12 }
 0x44a   :  { %vm383_vm4 = vmor %vm381_vm3, %vm382_vm15 }
 0x44b   :  { %v378_v45 = vsub.f32 1.0, %v377_v13 }
 0x44d   :  { %v379_v25 = vmul.f32 %v3172_v12, %v378_v45 }
 0x44f   :  { %v380_v18 = vadd.f32 %v3172_v12, %v379_v25 }
 0x451   :  { %v384_v39 = vsel %vm383_vm4, %v3172_v12, %v380_v18 }
 0x452   :  { %v389_v42 = vsel %vm386_vm5, %v388_v40, %v384_v39 }
 0x454   :  { %v882_v58 = vpop.permute.xlu0 %881 }
 0x459   :  { %v357_v9 = vpop.xlane.xlu2 %356 }
 0x45a   :  { %3173 = vrcp.f32 %v357_v9  ;;  %v372_v23 = vand.u32 2147483648, %v357_v9  ;;  %v370_v26 = vand.u32 2147483647, %v357_v9  ;;  %vm366_vm13 = vweird.f32 %v357_v9 }
 0x45c   :  { %v373_v59 = vor.u32 1.1754944e-38, %v372_v23  ;;  %vm371_vm2 = vcmp.eq.f32.partialorder %v370_v26, 8.507059e+37 }
 0x460   :  { %v3174_v1 = vpop.eup %3173 }
 0x461   :  { %v362_v16 = vmul.f32 %v3174_v1, %v357_v9  ;;  %v622_v17 = vpop.permute.xlu2 %621  ;;  %v587_v19 = vpop.xlane.xlu1 %586  ;;  %vm367_vm12 = vweird.f32 %v3174_v1 }
 0x462   :  { %3175 = vrcp.f32 %v587_v19  ;;  %645 = vmatpush.msrb.mxu0 %v622_v17  ;;  %vm368_vm14 = vmor %vm366_vm13, %vm367_vm12  ;;  %v602_v6 = vand.u32 2147483648, %v587_v19  ;;  %vm596_vm7 = vweird.f32 %v587_v19  ;;  %v600_v52 = vand.u32 2147483647, %v587_v19 }
 0x463   :  { %v363_v20 = vsub.f32 1.0, %v362_v16 }
 0x464   :  { %v603_v57 = vor.u32 1.1754944e-38, %v602_v6  ;;  %vm601_vm9 = vcmp.eq.f32.partialorder %v600_v52, 8.507059e+37 }
 0x465   :  { %v364_v51 = vmul.f32 %v3174_v1, %v363_v20 }
 0x467   :  { %v365_v21 = vadd.f32 %v3174_v1, %v364_v51 }
 0x468   :  { %v3176_v27 = vpop.eup %3175 }
 0x469   :  { %v369_v30 = vsel %vm368_vm14, %v3174_v1, %v365_v21  ;;  %v592_v31 = vmul.f32 %v3176_v27, %v587_v19  ;;  %v590_v32 = vpop.xlane.xlu1 %589  ;;  %vm597_vm6 = vweird.f32 %v3176_v27 }
 0x46a   :  { %v374_v34 = vsel %vm371_vm2, %v373_v59, %v369_v30  ;;  %3177 = vrcp.f32 %v590_v32  ;;  %vm598_vm8 = vmor %vm596_vm7, %vm597_vm6  ;;  %v617_v10 = vand.u32 2147483648, %v590_v32  ;;  %vm611_vm11 = vweird.f32 %v590_v32 }
 0x46b   :  { %v593_v35 = vsub.f32 1.0, %v592_v31  ;;  %v375_v36 = vmul.f32 %v3576_v15, %v374_v34  ;;  %v390_v15 = vmul.f32 %v3557_v46, %v389_v42  ;;  %v615_v28 = vand.u32 2147483647, %v590_v32 }
 0x46c   :  { %v618_v46 = vor.u32 1.1754944e-38, %v617_v10 }
 0x46d   :  { %v594_v24 = vmul.f32 %v3176_v27, %v593_v35  ;;  %2944 = vmatmul.msk.f32.vlgmr.msra.gmra.mxu0 %vm194_vm1, %v375_v36  ;;  %vm616_vm13 = vcmp.eq.f32.partialorder %v615_v28, 8.507059e+37 }
 0x46e   :  { %905 = vmatpush.msra.mxu0 %v882_v58 }
 0x46f   :  { %v595_v47 = vadd.f32 %v3176_v27, %v594_v24 }
 0x470   :  { %v3178_v41 = vpop.eup %3177 }
 0x471   :  { %v607_v48 = vmul.f32 %v3178_v41, %v590_v32  ;;  %v599_v54 = vsel %vm598_vm8, %v3176_v27, %v595_v47  ;;  %vm612_vm10 = vweird.f32 %v3178_v41  ;;  %v3645_v3 = vpop.xlane.xlu1 %964 }
 0x472   :  { %v604_v61 = vsel %vm601_vm9, %v603_v57, %v599_v54  ;;  %vm613_vm12 = vmor %vm611_vm11, %vm612_vm10 }
 0x473   :  { %v608_v53 = vsub.f32 1.0, %v607_v48  ;;  %v605_v56 = vmul.f32 %v3585_v29, %v604_v61 }
 0x475   :  { %v609_v55 = vmul.f32 %v3178_v41, %v608_v53  ;;  %2945 = vmatmul.msk.f32.gmra.mxu0 %vm194_vm1, %v390_v15 }
 0x477   :  { %v610_v2 = vadd.f32 %v3178_v41, %v609_v55 }
 0x479   :  { %v614_v7 = vsel %vm613_vm12, %v3178_v41, %v610_v2 }
 0x47a   :  { %v619_v60 = vsel %vm616_vm13, %v618_v46, %v614_v7 }
 0x47b   :  { %v620_v4 = vmul.f32 %v3592_v38, %v619_v60 }
 0x47d   :  { %2954 = vmatmul.msk.f32.vlgmr.msrb.gmra.mxu0 %vm194_vm1, %v605_v56 }
 0x47f   :  { %v847_v0 = vpop.xlane.xlu0 %846 }
 0x480   :  { %3179 = vrcp.f32 %v847_v0  ;;  %v862_v12 = vand.u32 2147483648, %v847_v0  ;;  %v860_v1 = vand.u32 2147483647, %v847_v0  ;;  %vm856_vm15 = vweird.f32 %v847_v0 }
 0x482   :  { %v863_v17 = vor.u32 1.1754944e-38, %v862_v12  ;;  %vm861_vm3 = vcmp.eq.f32.partialorder %v860_v1, 8.507059e+37 }
 0x485   :  { %2955 = vmatmul.msk.f32.gmra.mxu0 %vm194_vm1, %v620_v4 }
 0x486   :  { %v3180_v50 = vpop.eup %3179 }
 0x487   :  { %v852_v22 = vmul.f32 %v3180_v50, %v847_v0  ;;  %v850_v8 = vpop.xlane.xlu0 %849  ;;  %vm857_vm14 = vweird.f32 %v3180_v50 }
 0x488   :  { %3181 = vrcp.f32 %v850_v8  ;;  %vm858_vm2 = vmor %vm856_vm15, %vm857_vm14  ;;  %v877_v26 = vand.u32 2147483648, %v850_v8  ;;  %v875_v27 = vand.u32 2147483647, %v850_v8  ;;  %vm871_vm5 = vweird.f32 %v850_v8 }
 0x489   :  { %v853_v29 = vsub.f32 1.0, %v852_v22  ;;  %v1112_v9 = vpop.permute.xlu1 %1111 }
 0x48a   :  { %1135 = vmatpush.msrb.mxu0 %v1112_v9  ;;  %v878_v31 = vor.u32 1.1754944e-38, %v877_v26  ;;  %vm876_vm7 = vcmp.eq.f32.partialorder %v875_v27, 8.507059e+37 }
 0x48b   :  { %v854_v13 = vmul.f32 %v3180_v50, %v853_v29 }
 0x48d   :  { %v855_v45 = vadd.f32 %v3180_v50, %v854_v13  ;;  %v992_v13 = vand.u32 2147483648, %v3645_v3 }
 0x48e   :  { %v3182_v16 = vpop.eup %3181 }
 0x48f   :  { %v859_v19 = vsel %vm858_vm2, %v3180_v50, %v855_v45  ;;  %v867_v38 = vmul.f32 %v3182_v16, %v850_v8  ;;  %v1077_v20 = vpop.xlane.xlu0 %1076  ;;  %vm872_vm4 = vweird.f32 %v3182_v16 }
 0x490   :  { %v864_v23 = vsel %vm861_vm3, %v863_v17, %v859_v19  ;;  %3183 = vrcp.f32 %v1077_v20  ;;  %vm873_vm6 = vmor %vm871_vm5, %vm872_vm4  ;;  %v1092_v37 = vand.u32 2147483648, %v1077_v20  ;;  %v1090_v39 = vand.u32 2147483647, %v1077_v20 }
 0x491   :  { %v868_v25 = vsub.f32 1.0, %v867_v38  ;;  %v865_v51 = vmul.f32 %v3610_v62, %v864_v23  ;;  %3185 = vrcp.f32 %v3645_v3  ;;  %vm1086_vm9 = vweird.f32 %v1077_v20  ;;  %v532_v23 = vpop.f32.mrf.mxu2 }
 0x492   :  { %v1093_v47 = vor.u32 1.1754944e-38, %v1092_v37  ;;  %vm1091_vm11 = vcmp.eq.f32.partialorder %v1090_v39, 8.507059e+37  ;;  %v993_v17 = vor.u32 1.1754944e-38, %v992_v13  ;;  %v3282_v13 = vld [vmem:[%s4254_s0 + $0x8] sm:$0xff] }
 0x493   :  { %v869_v21 = vmul.f32 %v3182_v16, %v868_v25  ;;  %2964 = vmatmul.msk.f32.vlgmr.msra.gmra.mxu0 %vm194_vm1, %v865_v51 }
 0x495   :  { %v870_v59 = vadd.f32 %v3182_v16, %v869_v21 }
 0x496   :  { %v3184_v30 = vpop.eup %3183 }
 0x497   :  { %v1082_v32 = vmul.f32 %v3184_v30, %v1077_v20  ;;  %v1080_v18 = vpop.xlane.xlu0 %1079  ;;  %v874_v33 = vsel %vm873_vm6, %v3182_v16, %v870_v59  ;;  %v3653_v36 = vpop.eup %3185  ;;  %vm1087_vm8 = vweird.f32 %v3184_v30  ;;  %v990_v16 = vand.u32 2147483647, %v3645_v3 }
 0x498   :  { %3187 = vrcp.f32 %v1080_v18  ;;  %v879_v34 = vsel %vm876_vm7, %v878_v31, %v874_v33  ;;  %v982_v40 = vmul.f32 %v3653_v36, %v3645_v3  ;;  %vm1088_vm10 = vmor %vm1086_vm9, %vm1087_vm8  ;;  %v1107_v55 = vand.u32 2147483648, %v1080_v18  ;;  %v61_v33 = vld [vmem:[#allocation2 + $0xb0] sm:$0xff] }
 0x499   :  { %v1083_v62 = vsub.f32 1.0, %v1082_v32  ;;  %v880_v35 = vmul.f32 %v3616_v63, %v879_v34  ;;  %v1105_v10 = vand.u32 2147483647, %v1080_v18  ;;  %vm1101_vm13 = vweird.f32 %v1080_v18  ;;  %v60_v34 = vld [vmem:[#allocation2 + $0xa8] sm:$0xff] }
 0x49a   :  { %v962_v58 = vpop.xlane.xlu2 %961  ;;  %v983_v53 = vsub.f32 1.0, %v982_v40  ;;  %v1108_v0 = vor.u32 1.1754944e-38, %v1107_v55  ;;  %vm987_vm6 = vweird.f32 %v3653_v36  ;;  %vm986_vm7 = vweird.f32 %v3645_v3 }
 0x49b   :  { %v1084_v24 = vmul.f32 %v3184_v30, %v1083_v62  ;;  %3189 = vrcp.f32 %v962_v58  ;;  %2965 = vmatmul.msk.f32.gmra.mxu0 %vm194_vm1, %v880_v35  ;;  %v977_v7 = vand.u32 2147483648, %v962_v58  ;;  %v975_v4 = vand.u32 2147483647, %v962_v58  ;;  %vm988_vm8 = vmor %vm986_vm7, %vm987_vm6  ;;  %v59_v62 = vld [vmem:[#allocation2 + $0xa0] sm:$0xff] }
 0x49c   :  { %v984_v28 = vmul.f32 %v3653_v36, %v983_v53  ;;  %vm1106_vm2 = vcmp.eq.f32.partialorder %v1105_v10, 8.507059e+37  ;;  %vm971_vm3 = vweird.f32 %v962_v58  ;;  %vm991_vm9 = vcmp.eq.f32.partialorder %v990_v16, 8.507059e+37  ;;  %v38_v16 = vld [vmem:[%s4255_s1 + $0x8] sm:$0xff] }
 0x49d   :  { %v1085_v41 = vadd.f32 %v3184_v30, %v1084_v24  ;;  %v978_v8 = vor.u32 1.1754944e-38, %v977_v7  ;;  %vm976_vm5 = vcmp.eq.f32.partialorder %v975_v4, 8.507059e+37  ;;  %v42_v7 = vld [vmem:[%s4255_s1 + $0x28] sm:$0xff]  ;;  %v3115_v4 = vld [vmem:[%s4257_s3 + $0x2] ss:$0 sm:$0xff] }
 0x49e   :  { %v3188_v42 = vpop.eup %3187  ;;  %v985_v12 = vadd.f32 %v3653_v36, %v984_v28  ;;  %v43_v28 = vld [vmem:[%s4255_s1 + $0x30] sm:$0xff] }
 0x49f   :  { %v1089_v48 = vsel %vm1088_vm10, %v3184_v30, %v1085_v41  ;;  %v1097_v63 = vmul.f32 %v3188_v42, %v1080_v18  ;;  %vm1102_vm12 = vweird.f32 %v3188_v42  ;;  %v62_v18 = vld [vmem:[#allocation2 + $0xb8] sm:$0xff]  ;;  %vm679_vm10 = vcmask 130048  }
 0x4a0   :  { %v1094_v6 = vsel %vm1091_vm11, %v1093_v47, %v1089_v48  ;;  %vm1103_vm15 = vmor %vm1101_vm13, %vm1102_vm12  ;;  %1198 = vmatpush.msra.mxu1 %v62_v18  ;;  %vm682_vm11 = vcmask 195584   ;;  %vm1391_vm12 = vcmask 523264  }
 0x4a1   :  { %v3190_v52 = vpop.eup %3189  ;;  %v1098_v15 = vsub.f32 1.0, %v1097_v63  ;;  %v1095_v54 = vmul.f32 %v3625_v11, %v1094_v6 }
 0x4a2   :  { %v967_v57 = vmul.f32 %v3190_v52, %v962_v58  ;;  %v997_v61 = vpop.permute.xlu2 %996  ;;  %vm972_vm14 = vweird.f32 %v3190_v52  ;;  %1199 = vmatpush.msra.mxu1 %v61_v33  ;;  %v1329_v33 = vld [vmem:[#allocation2 + $0x38] sm:$0xff] }
 0x4a3   :  { %v1099_v2 = vmul.f32 %v3188_v42, %v1098_v15  ;;  %1020 = vmatpush.msrb.mxu2 %v997_v61  ;;  %2974 = vmatmul.msk.f32.vlgmr.msrb.gmra.mxu0 %vm194_vm1, %v1095_v54  ;;  %vm973_vm4 = vmor %vm971_vm3, %vm972_vm14 }
 0x4a4   :  { %v968_v56 = vsub.f32 1.0, %v967_v57  ;;  %1200 = vmatpush.msra.mxu1 %v60_v34 }
 0x4a5   :  { %v1100_v46 = vadd.f32 %v3188_v42, %v1099_v2 }
 0x4a6   :  { %v969_v60 = vmul.f32 %v3190_v52, %v968_v56  ;;  %1201 = vmatpush.msra.mxu1 %v59_v62  ;;  %v44_v56 = vld [vmem:[%s4255_s1 + $0x38] sm:$0xff] }
 0x4a7   :  { %v1104_v11 = vsel %vm1103_vm15, %v3188_v42, %v1100_v46  ;;  %1424 = vmatpush.msrb.mxu3 %v44_v56  ;;  %v41_v46 = vld [vmem:[%s4255_s1 + $0x20] sm:$0xff] }
 0x4a8   :  { %v970_v50 = vadd.f32 %v3190_v52, %v969_v60  ;;  %v1109_v22 = vsel %vm1106_vm2, %v1108_v0, %v1104_v11  ;;  %v40_v0 = vld [vmem:[%s4255_s1 + $0x18] sm:$0xff]  ;;  %v39_v60 = vld [vmem:[%s4255_s1 + $0x10] sm:$0xff] }
 0x4a9   :  { %v1110_v29 = vmul.f32 %v3629_v14, %v1109_v22  ;;  %v989_v14 = vsel %vm988_vm8, %v3653_v36, %v985_v12  ;;  %1425 = vmatpush.msrb.mxu3 %v43_v28  ;;  %v3281_v22 = vld [vmem:[%s4254_s0] sm:$0xff] }
 0x4aa   :  { %v974_v9 = vsel %vm973_vm4, %v3190_v52, %v970_v50  ;;  %v994_v19 = vsel %vm991_vm9, %v993_v17, %v989_v14  ;;  %v37_v14 = vld [vmem:[%s4255_s1] sm:$0xff] }
 0x4ab   :  { %v979_v1 = vsel %vm976_vm5, %v978_v8, %v974_v9  ;;  %2975 = vmatmul.msk.f32.gmra.mxu0 %vm194_vm1, %v1110_v29  ;;  %v995_v38 = vmul.f32 %v3600_v49, %v994_v19  ;;  %1426 = vmatpush.msrb.mxu3 %v42_v7  ;;  %v1326_v17 = vld [vmem:[#allocation2 + $0x20] sm:$0xff]  ;;  %v1327_v19 = vld [vmem:[#allocation2 + $0x28] sm:$0xff]  ;;  %v1337_v7 = vld [vmem:[#allocation2 + $0xd8] sm:$0xff] }
 0x4ac   :  { %v980_v45 = vmul.f32 %v3631_v5, %v979_v1  ;;  %v535_v5 = vpop.f32.mrf.mxu2  ;;  %1374 = vmatpush.msra.mxu2 %v1337_v7 }
 0x4ad   :  { %1427 = vmatpush.msrb.mxu3 %v41_v46  ;;  %v1336_v46 = vld [vmem:[#allocation2 + $0xd0] sm:$0xff] }
 0x4ae   :  { %2969 = vmatmul.msk.f32.vlgmr.msrb.gmra.mxu2 %vm194_vm1, %v980_v45 }
 0x4af   :  { %1428 = vmatpush.msrb.mxu3 %v40_v0  ;;  %1375 = vmatpush.msra.mxu2 %v1336_v46  ;;  %v1335_v0 = vld [vmem:[#allocation2 + $0xc8] sm:$0xff] }
 0x4b1   :  { %1429 = vmatpush.msrb.mxu3 %v39_v60  ;;  %1376 = vmatpush.msra.mxu2 %v1335_v0  ;;  %v1334_v60 = vld [vmem:[#allocation2 + $0xc0] sm:$0xff] }
 0x4b3   :  { %1430 = vmatpush.msrb.mxu3 %v38_v16  ;;  %1377 = vmatpush.msra.mxu2 %v1334_v60 }
 0x4b4   :  { %v792_v21 = vpop.f32.mrf.mxu2 }
 0x4b5   :  { %1431 = vmatpush.msrb.mxu3 %v37_v14 }
 0x4b6   :  { %2970 = vmatmul.msk.f32.gmra.mxu2 %vm194_vm1, %v995_v38  ;;  %2984 = vmatmul.msk.f32.vlgmr.msrb.gmra.mxu3 %vm1391_vm12, %v1326_v17 }
 0x4bc   :  { %v795_v30 = vpop.f32.mrf.mxu2 }
 0x4be   :  { %2985 = vmatmul.msk.f32.gmra.mxu3 %vm1391_vm12, %v1327_v19 }
 0x4ea   :  { %v417_v20 = vpop.f32.mrf.mxu0 }
 0x4eb   :  { %655 = vrot.lane.b32.xlu2 %v417_v20, %s3313_s21 }
 0x4f2   :  { %v420_v25 = vpop.f32.mrf.mxu0 }
 0x4f3   :  { %663 = vrot.lane.b32.xlu2 %v532_v23, %s3321_s14  ;;  %657 = vrot.lane.b32.xlu1 %v420_v25, %s3313_s21  ;;  %v3283_v23 = vld [vmem:[%s4254_s0 + $0x10] sm:$0xff] }
 0x4fa   :  { %v647_v3 = vpop.f32.mrf.mxu0 }
 0x4fb   :  { %665 = vrot.lane.b32.xlu2 %v535_v5, %s3321_s14  ;;  %671 = vrot.lane.b32.xlu0 %v647_v3, %s3322_s15 }
 0x502   :  { %v650_v49 = vpop.f32.mrf.mxu0 }
 0x503   :  { %673 = vrot.lane.b32.xlu1 %v650_v49, %s3322_s15 }
 0x510   :  { %v907_v51 = vpop.f32.mrf.mxu0 }
 0x511   :  { %1145 = vrot.lane.b32.xlu2 %v907_v51, %s3313_s21  ;;  %v3284_v51 = vld [vmem:[%s4254_s0 + $0x18] sm:$0xff] }
 0x518   :  { %v910_v26 = vpop.f32.mrf.mxu0 }
 0x519   :  { %1147 = vrot.lane.b32.xlu2 %v910_v26, %s3313_s21 }
 0x520   :  { %v1137_v27 = vpop.f32.mrf.mxu0 }
 0x521   :  { %1161 = vrot.lane.b32.xlu0 %v1137_v27, %s3322_s15  ;;  %v3323_v27 = vmov 32.0  }
 0x522   :  { %3191 = vrcp.f32 %v3323_v27 }
 0x528   :  { %v1140_v59 = vpop.f32.mrf.mxu0 }
 0x529   :  { %1163 = vrot.lane.b32.xlu0 %v1140_v59, %s3322_s15  ;;  %v3192_v59 = vpop.eup %3191 }
 0x52a   :  { %vm1238_vm13 = vweird.f32 %v3192_v59 }
 0x531   :  { %v1022_v31 = vpop.f32.mrf.mxu2 }
 0x532   :  { %1153 = vrot.lane.b32.xlu1 %v1022_v31, %s3321_s14  ;;  %v1328_v31 = vld [vmem:[#allocation2 + $0x30] sm:$0xff] }
 0x533   :  { %2986 = vmatmul.msk.f32.gmra.mxu3 %vm1391_vm12, %v1328_v31 }
 0x539   :  { %v1025_v32 = vpop.f32.mrf.mxu2 }
 0x53a   :  { %1155 = vrot.lane.b32.xlu1 %v1025_v32, %s3321_s14 }
 0x53b   :  { %2987 = vmatmul.msk.f32.gmra.mxu3 %vm1391_vm12, %v1329_v33  ;;  %v3809_v33 = vld [vmem:[%s4257_s3 + $0x4] ss:$0 sm:$0xff] }
 0x545   :  { %v656_v35 = vpop.permute.xlu2 %655 }
 0x546   :  { %v677_v37 = vsel %vm194_vm1, %v3482_v43, %v656_v35 }
 0x54d   :  { %v664_v36 = vpop.permute.xlu2 %663 }
 0x54e   :  { %v680_v58 = vsel %vm679_vm10, %v677_v37, %v664_v36 }
 0x555   :  { %v666_v42 = vpop.permute.xlu2 %665 }
 0x565   :  { %v658_v24 = vpop.permute.xlu1 %657 }
 0x566   :  { %v678_v41 = vsel %vm194_vm1, %v3484_v44, %v658_v24 }
 0x567   :  { %v681_v48 = vsel %vm679_vm10, %v678_v41, %v666_v42 }
 0x56b   :  { %v1146_v43 = vpop.permute.xlu2 %1145 }
 0x56c   :  { %v1167_v52 = vsel %vm194_vm1, %v792_v21, %v1146_v43  ;;  %v1340_v43 = vld [vmem:[#allocation2 + $0xe8] sm:$0xff] }
 0x56d   :  { %v672_v39 = vpop.permute.xlu0 %671 }
 0x56e   :  { %v683_v40 = vsel %vm682_vm11, %v680_v58, %v672_v39 }
 0x56f   :  { %2976 = vmatmul.msk.f32.vlgmr.msra.gmra.mxu1 %vm65_vm0, %v683_v40 }
 0x573   :  { %v1148_v44 = vpop.permute.xlu2 %1147 }
 0x574   :  { %v1168_v55 = vsel %vm194_vm1, %v795_v30, %v1148_v44  ;;  %v1234_v30 = vmul.f32 32.0, %v3192_v59 }
 0x575   :  { %v674_v47 = vpop.permute.xlu1 %673 }
 0x576   :  { %v684_v63 = vsel %vm682_vm11, %v681_v48, %v674_v47  ;;  %v1235_v32 = vsub.f32 1.0, %v1234_v30  ;;  %v1342_v48 = vld [vmem:[#allocation2 + $0xf8] sm:$0xff] }
 0x577   :  { %2977 = vmatmul.msk.f32.gmra.mxu1 %vm65_vm0, %v684_v63  ;;  %1493 = vmatpush.msra.mxu0 %v1342_v48  ;;  %v1341_v63 = vld [vmem:[#allocation2 + $0xf0] sm:$0xff]  ;;  %v1331_v48 = vld [vmem:[#allocation2 + $0x48] sm:$0xff] }
 0x578   :  { %v1236_v18 = vmul.f32 %v3192_v59, %v1235_v32 }
 0x579   :  { %1494 = vmatpush.msra.mxu0 %v1341_v63 }
 0x57a   :  { %v1237_v34 = vadd.f32 %v3192_v59, %v1236_v18 }
 0x57b   :  { %1495 = vmatpush.msra.mxu0 %v1340_v43 }
 0x57c   :  { %v3750_v62 = vsel %vm1238_vm13, %v3192_v59, %v1237_v34 }
 0x593   :  { %v1162_v6 = vpop.permute.xlu0 %1161 }
 0x59b   :  { %v1164_v61 = vpop.permute.xlu0 %1163 }
 0x5a4   :  { %v1154_v53 = vpop.permute.xlu1 %1153 }
 0x5a5   :  { %v1169_v15 = vsel %vm679_vm10, %v1167_v52, %v1154_v53  ;;  %v1433_v52 = vpop.f32.mrf.mxu3 }
 0x5a6   :  { %v1171_v54 = vsel %vm682_vm11, %v1169_v15, %v1162_v6  ;;  %v1339_v6 = vld [vmem:[#allocation2 + $0xe0] sm:$0xff] }
 0x5a7   :  { %2978 = vmatmul.msk.f32.gmra.mxu1 %vm65_vm0, %v1171_v54  ;;  %1496 = vmatpush.msra.mxu0 %v1339_v6 }
 0x5a8   :  { %2992 = vmatmul.msk.f32.vlgmr.msra.gmra.mxu0 %vm65_vm0, %v1433_v52 }
 0x5ac   :  { %v1156_v57 = vpop.permute.xlu1 %1155 }
 0x5ad   :  { %v1170_v2 = vsel %vm679_vm10, %v1168_v55, %v1156_v57  ;;  %v1436_v53 = vpop.f32.mrf.mxu3 }
 0x5ae   :  { %v1172_v10 = vsel %vm682_vm11, %v1170_v2, %v1164_v61 }
 0x5af   :  { %2979 = vmatmul.msk.f32.gmra.mxu1 %vm65_vm0, %v1172_v10 }
 0x5b0   :  { %2993 = vmatmul.msk.f32.gmra.mxu0 %vm65_vm0, %v1436_v53 }
 0x5ec   :  { %v1203_v11 = vpop.f32.mrf.mxu1 }
 0x5ed   :  { %v1204_v50 = vadd.f32 %v3115_v4, %v1203_v11 }
 0x5ef   :  { %v1215_v8 = vadd.f32 %v3281_v22, %v1204_v50  ;;  %v1439_v22 = vpop.f32.mrf.mxu3 }
 0x5f0   :  { %2994 = vmatmul.msk.f32.gmra.mxu0 %vm65_vm0, %v1439_v22 }
 0x5f1   :  { %v1221_v29 = vsel %vm65_vm0, %v1215_v8, 0.0 }
 0x5f2   :  { %1222 = vadd.xlane.f32.xlu2 %v1221_v29 }
 0x5f4   :  { %v1206_v9 = vpop.f32.mrf.mxu1 }
 0x5f5   :  { %v1207_v12 = vadd.f32 %v3115_v4, %v1206_v9 }
 0x5f7   :  { %v1216_v1 = vadd.f32 %v3282_v13, %v1207_v12 }
 0x5f9   :  { %v1224_v45 = vsel %vm65_vm0, %v1216_v1, 0.0 }
 0x5fa   :  { %1225 = vadd.xlane.f32.xlu1 %v1224_v45 }
 0x624   :  { %v1209_v38 = vpop.f32.mrf.mxu1 }
 0x625   :  { %v1210_v20 = vadd.f32 %v3115_v4, %v1209_v38  ;;  %v1498_v18 = vpop.f32.mrf.mxu0 }
 0x627   :  { %v1217_v25 = vadd.f32 %v3283_v23, %v1210_v20  ;;  %v3785_v20 = vld [vmem:[%s4257_s3 + $0x8] ss:$0 sm:$0xff] }
 0x629   :  { %v1227_v5 = vsel %vm65_vm0, %v1217_v25, 0.0 }
 0x62a   :  { %1228 = vadd.xlane.f32.xlu0 %v1227_v5 }
 0x62c   :  { %v1212_v3 = vpop.f32.mrf.mxu1 }
 0x62d   :  { %v1213_v49 = vadd.f32 %v3115_v4, %v1212_v3  ;;  %v3791_v3 = vld [vmem:[%s4257_s3 + $0x9] ss:$0 sm:$0xff] }
 0x62f   :  { %v1218_v26 = vadd.f32 %v3284_v51, %v1213_v49 }
 0x631   :  { %v1230_v21 = vsel %vm65_vm0, %v1218_v26, 0.0 }
 0x632   :  { %1231 = vadd.xlane.f32.xlu2 %v1230_v21 }
 0x665   :  { %v1223_v35 = vpop.xlane.xlu2 %1222 }
 0x666   :  { %v1240_v36 = vmul.f32 %v3750_v62, %v1223_v35  ;;  %v1523_v35 = vadd.f32 %v3809_v33, %v1498_v18 }
 0x668   :  { %v3753_v37 = vsub.f32 %v1215_v8, %v1240_v36 }
 0x66a   :  { %v1248_v58 = vmul.f32 %v3753_v37, %v3753_v37 }
 0x66c   :  { %v1252_v24 = vsel %vm65_vm0, %v1248_v58, 0.0  ;;  %v1330_v58 = vld [vmem:[#allocation2 + $0x40] sm:$0xff] }
 0x66d   :  { %v1226_v39 = vpop.xlane.xlu1 %1225  ;;  %1253 = vadd.xlane.f32.xlu1 %v1252_v24  ;;  %v1501_v24 = vpop.f32.mrf.mxu0  ;;  %2988 = vmatmul.msk.f32.gmra.mxu3 %vm1391_vm12, %v1330_v58 }
 0x66e   :  { %v1241_v40 = vmul.f32 %v3750_v62, %v1226_v39  ;;  %v1524_v39 = vadd.f32 %v3809_v33, %v1501_v24 }
 0x670   :  { %v3759_v41 = vsub.f32 %v1216_v1, %v1241_v40  ;;  %v1442_v1 = vpop.f32.mrf.mxu3  ;;  %3000 = vmatpush.xpose.msk.msrb.mxu1 %vm194_vm1, %v1524_v39 }
 0x671   :  { %2995 = vmatmul.msk.f32.gmra.mxu0 %vm65_vm0, %v1442_v1 }
 0x672   :  { %v1249_v42 = vmul.f32 %v3759_v41, %v3759_v41 }
 0x674   :  { %v1255_v47 = vsel %vm65_vm0, %v1249_v42, 0.0  ;;  %3001 = vmatpush.xpose.msk.msrb.mxu1 %vm194_vm1, %v1523_v35 }
 0x675   :  { %1256 = vadd.xlane.f32.xlu0 %v1255_v47  ;;  %2989 = vmatmul.msk.f32.gmra.mxu3 %vm1391_vm12, %v1331_v48 }
 0x689   :  { %1657 = vrot.lane.b32.xlu0 %v1524_v39, %s3315_s8 }
 0x691   :  { %1901 = vrot.lane.b32.xlu0 %v1524_v39, %s3317_s10 }
 0x69d   :  { %v1229_v15 = vpop.xlane.xlu0 %1228 }
 0x69e   :  { %v1242_v54 = vmul.f32 %v3750_v62, %v1229_v15 }
 0x6a0   :  { %v3767_v44 = vsub.f32 %v1217_v25, %v1242_v54 }
 0x6a2   :  { %v1250_v55 = vmul.f32 %v3767_v44, %v3767_v44 }
 0x6a4   :  { %v1258_v57 = vsel %vm65_vm0, %v1250_v55, 0.0 }
 0x6a5   :  { %v1232_v61 = vpop.xlane.xlu2 %1231  ;;  %1259 = vadd.xlane.f32.xlu2 %v1258_v57 }
 0x6a6   :  { %v1243_v2 = vmul.f32 %v3750_v62, %v1232_v61 }
 0x6a8   :  { %v3773_v10 = vsub.f32 %v1218_v26, %v1243_v2 }
 0x6aa   :  { %v1251_v56 = vmul.f32 %v3773_v10, %v3773_v10 }
 0x6ac   :  { %v1261_v28 = vsel %vm65_vm0, %v1251_v56, 0.0 }
 0x6ad   :  { %1262 = vadd.xlane.f32.xlu1 %v1261_v28 }
 0x6bd   :  { %1655 = vrot.lane.b32.xlu2 %v1523_v35, %s3315_s8 }
 0x6c5   :  { %1779 = vrot.lane.b32.xlu2 %v1524_v39, %s3316_s9 }
 0x6c6   :  { %1777 = vrot.lane.b32.xlu1 %v1523_v35, %s3316_s9 }
 0x6cd   :  { %1899 = vrot.lane.b32.xlu2 %v1523_v35, %s3317_s10 }
 0x6e0   :  { %v1254_v4 = vpop.xlane.xlu1 %1253 }
 0x6e1   :  { %v1264_v11 = vmul.f32 %v1254_v4, %v3750_v62 }
 0x6e3   :  { %v1268_v50 = vadd.f32 1e-05, %v1264_v11  ;;  %v3119_v11 = vld [vmem:[%s4257_s3 + $0x3] ss:$0 sm:$0xff] }
 0x6e5   :  { %3193 = vrsqrt.f32 %v1268_v50  ;;  %vm1278_vm15 = vweird.f32 %v1268_v50 }
 0x6e8   :  { %v1257_v8 = vpop.xlane.xlu0 %1256 }
 0x6e9   :  { %v1265_v29 = vmul.f32 %v1257_v8, %v3750_v62  ;;  %v1504_v8 = vpop.f32.mrf.mxu0 }
 0x6eb   :  { %v3194_v9 = vpop.eup %3193  ;;  %v1269_v12 = vadd.f32 1e-05, %v1265_v29 }
 0x6ec   :  { %v1273_v13 = vmul.f32 %v3194_v9, %v1268_v50  ;;  %vm1279_vm14 = vweird.f32 %v3194_v9 }
 0x6ed   :  { %3195 = vrsqrt.f32 %v1269_v12  ;;  %vm1280_vm2 = vmor %vm1278_vm15, %vm1279_vm14  ;;  %vm1288_vm4 = vweird.f32 %v1269_v12 }
 0x6ee   :  { %v1274_v45 = vmul.f32 %v3194_v9, %v1273_v13  ;;  %v1525_v13 = vadd.f32 %v3809_v33, %v1504_v8 }
 0x6f0   :  { %v1275_v16 = vmul.f32 0.5, %v1274_v45 }
 0x6f2   :  { %v1276_v14 = vsub.f32 1.5, %v1275_v16 }
 0x6f3   :  { %v3196_v17 = vpop.eup %3195 }
 0x6f4   :  { %v1277_v19 = vmul.f32 %v3194_v9, %v1276_v14  ;;  %v1283_v38 = vmul.f32 %v3196_v17, %v1269_v12  ;;  %vm1289_vm3 = vweird.f32 %v3196_v17  ;;  %v1507_v12 = vpop.f32.mrf.mxu0 }
 0x6f5   :  { %vm1290_vm5 = vmor %vm1288_vm4, %vm1289_vm3  ;;  %v1526_v1 = vadd.f32 %v3809_v33, %v1507_v12 }
 0x6f6   :  { %v1281_v23 = vsel %vm1280_vm2, %v3194_v9, %v1277_v19  ;;  %v1284_v25 = vmul.f32 %v3196_v17, %v1283_v38  ;;  %v1445_v19 = vpop.f32.mrf.mxu3 }
 0x6f7   :  { %v1312_v5 = vmul.f32 %v1281_v23, %v3753_v37  ;;  %2996 = vmatmul.msk.f32.gmra.mxu0 %vm65_vm0, %v1445_v19 }
 0x6f8   :  { %v1285_v49 = vmul.f32 0.5, %v1284_v25  ;;  %v1333_v25 = vld [vmem:[#allocation2 + $0x58] sm:$0xff] }
 0x6f9   :  { %v1317_v51 = vmul.f32 %v3785_v20, %v1312_v5 }
 0x6fa   :  { %v1286_v26 = vsub.f32 1.5, %v1285_v49 }
 0x6fb   :  { %v3795_v21 = vadd.f32 %v3791_v3, %v1317_v51  ;;  %v1658_v45 = vpop.permute.xlu0 %1657 }
 0x6fc   :  { %v1287_v27 = vmul.f32 %v3196_v17, %v1286_v26  ;;  %3006 = vmatpush.xpose.msk.msra.mxu1 %vm194_vm1, %v1658_v45 }
 0x6fd   :  { %2980 = vmatmul.msk.f32.vlgmr.msra.gmra.mxu2 %vm65_vm0, %v3795_v21 }
 0x6fe   :  { %v1291_v59 = vsel %vm1290_vm5, %v3196_v17, %v1287_v27  ;;  %v1448_v23 = vpop.f32.mrf.mxu3 }
 0x6ff   :  { %v1313_v30 = vmul.f32 %v1291_v59, %v3759_v41  ;;  %2997 = vmatmul.msk.f32.gmra.mxu0 %vm65_vm0, %v1448_v23 }
 0x701   :  { %v1318_v31 = vmul.f32 %v3785_v20, %v1313_v30 }
 0x703   :  { %v3802_v32 = vadd.f32 %v3791_v3, %v1318_v31  ;;  %v1902_v14 = vpop.permute.xlu0 %1901 }
 0x704   :  { %3018 = vmatpush.xpose.msk.msra.mxu3 %vm194_vm1, %v1902_v14 }
 0x705   :  { %2981 = vmatmul.msk.f32.gmra.mxu2 %vm65_vm0, %v3802_v32 }
 0x718   :  { %v1260_v34 = vpop.xlane.xlu2 %1259 }
 0x719   :  { %v1266_v36 = vmul.f32 %v1260_v34, %v3750_v62 }
 0x71b   :  { %v1270_v37 = vadd.f32 1e-05, %v1266_v36 }
 0x71d   :  { %3197 = vrsqrt.f32 %v1270_v37  ;;  %vm1298_vm7 = vweird.f32 %v1270_v37 }
 0x720   :  { %v1263_v40 = vpop.xlane.xlu1 %1262  ;;  %v1656_v9 = vpop.permute.xlu2 %1655 }
 0x721   :  { %v1267_v41 = vmul.f32 %v1263_v40, %v3750_v62  ;;  %3007 = vmatpush.xpose.msk.msra.mxu1 %vm194_vm1, %v1656_v9 }
 0x723   :  { %v3198_v42 = vpop.eup %3197  ;;  %v1271_v47 = vadd.f32 1e-05, %v1267_v41 }
 0x724   :  { %v1293_v63 = vmul.f32 %v3198_v42, %v1270_v37  ;;  %vm1299_vm6 = vweird.f32 %v3198_v42 }
 0x725   :  { %3199 = vrsqrt.f32 %v1271_v47  ;;  %vm1300_vm8 = vmor %vm1298_vm7, %vm1299_vm6  ;;  %vm1308_vm13 = vweird.f32 %v1271_v47 }
 0x726   :  { %v1294_v43 = vmul.f32 %v3198_v42, %v1293_v63 }
 0x728   :  { %v1295_v6 = vmul.f32 0.5, %v1294_v43  ;;  %v1780_v16 = vpop.permute.xlu2 %1779 }
 0x72a   :  { %v1296_v52 = vsub.f32 1.5, %v1295_v6 }
 0x72b   :  { %v3200_v53 = vpop.eup %3199 }
 0x72c   :  { %v1297_v15 = vmul.f32 %v3198_v42, %v1296_v52  ;;  %v1303_v54 = vmul.f32 %v3200_v53, %v1271_v47  ;;  %vm1309_vm9 = vweird.f32 %v3200_v53 }
 0x72d   :  { %vm1310_vm14 = vmor %vm1308_vm13, %vm1309_vm9 }
 0x72e   :  { %v1301_v55 = vsel %vm1300_vm8, %v3198_v42, %v1297_v15  ;;  %v1304_v57 = vmul.f32 %v3200_v53, %v1303_v54 }
 0x72f   :  { %v1314_v61 = vmul.f32 %v1301_v55, %v3767_v44 }
 0x730   :  { %v1305_v2 = vmul.f32 0.5, %v1304_v57  ;;  %v1900_v17 = vpop.permute.xlu2 %1899 }
 0x731   :  { %v1319_v56 = vmul.f32 %v3785_v20, %v1314_v61  ;;  %3019 = vmatpush.xpose.msk.msra.mxu3 %vm194_vm1, %v1900_v17 }
 0x732   :  { %v1306_v28 = vsub.f32 1.5, %v1305_v2 }
 0x733   :  { %v3828_v7 = vadd.f32 %v3791_v3, %v1319_v56 }
 0x734   :  { %v1307_v46 = vmul.f32 %v3200_v53, %v1306_v28 }
 0x735   :  { %2982 = vmatmul.msk.f32.gmra.mxu2 %vm65_vm0, %v3828_v7 }
 0x736   :  { %v1311_v0 = vsel %vm1310_vm14, %v3200_v53, %v1307_v46 }
 0x737   :  { %v1315_v60 = vmul.f32 %v1311_v0, %v3773_v10 }
 0x738   :  { %v1778_v38 = vpop.permute.xlu1 %1777 }
 0x739   :  { %v1320_v4 = vmul.f32 %v3785_v20, %v1315_v60  ;;  %v1332_v20 = vld [vmem:[#allocation2 + $0x50] sm:$0xff] }
 0x73a   :  { %2990 = vmatmul.msk.f32.gmra.mxu3 %vm1391_vm12, %v1332_v20 }
 0x73b   :  { %v3835_v44 = vadd.f32 %v3791_v3, %v1320_v4 }
 0x73d   :  { %2983 = vmatmul.msk.f32.gmra.mxu2 %vm65_vm0, %v3835_v44 }
 0x742   :  { %2991 = vmatmul.msk.f32.gmra.mxu3 %vm1391_vm12, %v1333_v25 }
 0x774   :  { %v1510_v41 = vpop.f32.mrf.mxu0 }
 0x775   :  { %v1527_v42 = vadd.f32 %v3809_v33, %v1510_v41 }
 0x77c   :  { %v1513_v47 = vpop.f32.mrf.mxu0 }
 0x77d   :  { %v1528_v48 = vadd.f32 %v3809_v33, %v1513_v47 }
 0x77f   :  { %v3893_v43 = vpack.i.bf16 %v1527_v42, %v1528_v48 }
 0x780   :  { %v1379_v50 = vpop.f32.mrf.mxu2 }
 0x781   :  { %v1380_v22 = vadd.f32 %v3119_v11, %v1379_v50 }
 0x783   :  { %3002 = vmatmul.msk.f32.vlgmr.msrb.gmra.mxu1 %vm194_vm1, %v1380_v22  ;;  %1651 = vrot.lane.b32.xlu1 %v1380_v22, %s3315_s8 }
 0x784   :  { %3012 = vmatpush.xpose.msk.msrb.mxu1 %vm194_vm1, %v1780_v16 }
 0x788   :  { %v1382_v10 = vpop.f32.mrf.mxu2  ;;  %3013 = vmatpush.xpose.msk.msrb.mxu1 %vm194_vm1, %v1778_v38 }
 0x789   :  { %v1383_v29 = vadd.f32 %v3119_v11, %v1382_v10 }
 0x78b   :  { %1895 = vrot.lane.b32.xlu1 %v1380_v22, %s3317_s10  ;;  %1775 = vrot.lane.b32.xlu2 %v1383_v29, %s3316_s9 }
 0x78c   :  { %1653 = vrot.lane.b32.xlu0 %v1383_v29, %s3315_s8  ;;  %3003 = vmatmul.msk.f32.gmra.mxu1 %vm194_vm1, %v1383_v29 }
 0x793   :  { %2173 = vrot.lane.b32.xlu1 %v1526_v1, %s3315_s8  ;;  %2171 = vrot.lane.b32.xlu2 %v1525_v13, %s3315_s8 }
 0x794   :  { %1773 = vrot.lane.b32.xlu0 %v1380_v22, %s3316_s9 }
 0x79b   :  { %2295 = vrot.lane.b32.xlu2 %v1526_v1, %s3316_s9  ;;  %2293 = vrot.lane.b32.xlu1 %v1525_v13, %s3316_s9 }
 0x79c   :  { %1897 = vrot.lane.b32.xlu0 %v1383_v29, %s3317_s10 }
 0x7a3   :  { %2415 = vrot.lane.b32.xlu2 %v1525_v13, %s3317_s10 }
 0x7b8   :  { %v1385_v5 = vpop.f32.mrf.mxu2 }
 0x7b9   :  { %v1386_v3 = vadd.f32 %v3119_v11, %v1385_v5 }
 0x7bb   :  { %2411 = vrot.lane.b32.xlu1 %v1386_v3, %s3317_s10  ;;  %2167 = vrot.lane.b32.xlu0 %v1386_v3, %s3315_s8 }
 0x7bd   :  { %v1451_v63 = vpop.f32.mrf.mxu3 }
 0x7be   :  { %2998 = vmatmul.msk.f32.gmra.mxu0 %vm65_vm0, %v1451_v63 }
 0x7c0   :  { %v1388_v49 = vpop.f32.mrf.mxu2 }
 0x7c1   :  { %v1389_v51 = vadd.f32 %v3119_v11, %v1388_v49 }
 0x7c3   :  { %2169 = vrot.lane.b32.xlu1 %v1389_v51, %s3315_s8  ;;  %2291 = vrot.lane.b32.xlu2 %v1389_v51, %s3316_s9 }
 0x7c4   :  { %2417 = vrot.lane.b32.xlu0 %v1526_v1, %s3317_s10 }
 0x7c5   :  { %v1454_v53 = vpop.f32.mrf.mxu3 }
 0x7c6   :  { %2999 = vmatmul.msk.f32.gmra.mxu0 %vm65_vm0, %v1454_v53 }
 0x7cc   :  { %2289 = vrot.lane.b32.xlu0 %v1386_v3, %s3316_s9 }
 0x7d4   :  { %2413 = vrot.lane.b32.xlu0 %v1389_v51, %s3317_s10 }
 0x7e5   :  { %v1776_v26 = vpop.permute.xlu2 %1775 }
 0x7ed   :  { %v2172_v30 = vpop.permute.xlu2 %2171 }
 0x7f5   :  { %v1652_v27 = vpop.permute.xlu1 %1651  ;;  %v2296_v37 = vpop.permute.xlu2 %2295 }
 0x7f6   :  { %3008 = vmatmul.msk.f32.vlgmr.msra.gmra.mxu1 %vm194_vm1, %v1652_v27 }
 0x7f7   :  { %3024 = vmatpush.xpose.msk.msra.mxu1 %vm194_vm1, %v1526_v1 }
 0x7fb   :  { %3025 = vmatpush.xpose.msk.msra.mxu1 %vm194_vm1, %v1525_v13 }
 0x7fd   :  { %v1896_v59 = vpop.permute.xlu1 %1895  ;;  %v2416_v55 = vpop.permute.xlu2 %2415 }
 0x7fe   :  { %v1654_v31 = vpop.permute.xlu0 %1653  ;;  %3020 = vmatmul.msk.f32.vlgmr.msra.gmra.mxu3 %vm194_vm1, %v1896_v59 }
 0x7ff   :  { %3009 = vmatmul.msk.f32.gmra.mxu1 %vm194_vm1, %v1654_v31 }
 0x800   :  { %v1560_v18 = vpop.f32.mrf.mxu1 }
 0x801   :  { %v1566_v34 = vsel %vm679_vm10, %v1560_v18, -inf }
 0x802   :  { %1567 = vmax.xlane.f32.xlu1 %v1566_v34 }
 0x805   :  { %v2174_v35 = vpop.permute.xlu1 %2173 }
 0x806   :  { %v1774_v36 = vpop.permute.xlu0 %1773  ;;  %3030 = vmatpush.xpose.msk.msrb.mxu3 %vm194_vm1, %v2174_v35 }
 0x807   :  { %3014 = vmatmul.msk.f32.vlgmr.msrb.gmra.mxu1 %vm194_vm1, %v1774_v36 }
 0x808   :  { %3036 = vmatpush.xpose.msk.msrb.mxu1 %vm194_vm1, %v2296_v37 }
 0x809   :  { %v1563_v58 = vpop.f32.mrf.mxu1 }
 0x80a   :  { %v1569_v24 = vsel %vm679_vm10, %v1563_v58, -inf  ;;  %3031 = vmatpush.xpose.msk.msrb.mxu3 %vm194_vm1, %v2172_v30 }
 0x80b   :  { %1570 = vmax.xlane.f32.xlu2 %v1569_v24 }
 0x80d   :  { %v2294_v39 = vpop.permute.xlu1 %2293 }
 0x80e   :  { %v1898_v40 = vpop.permute.xlu0 %1897  ;;  %3037 = vmatpush.xpose.msk.msrb.mxu1 %vm194_vm1, %v2294_v39 }
 0x80f   :  { %3015 = vmatmul.msk.f32.gmra.mxu1 %vm194_vm1, %v1776_v26  ;;  %3021 = vmatmul.msk.f32.gmra.mxu3 %vm194_vm1, %v1898_v40 }
 0x817   :  { %3026 = vmatmul.msk.f32.vlgmr.msra.gmra.mxu1 %vm194_vm1, %v1386_v3 }
 0x81b   :  { %3079 = vrot.lane.b32.xlu1 %v3893_v43, %s3318_s11 }
 0x81d   :  { %v2292_v61 = vpop.permute.xlu2 %2291 }
 0x81f   :  { %3027 = vmatmul.msk.f32.gmra.mxu1 %vm194_vm1, %v1389_v51 }
 0x823   :  { %3074 = vrot.lane.b32.xlu2 %v3893_v43, %s3314_s7  ;;  %3084 = vrot.lane.b32.xlu1 %v3893_v43, %s3319_s12 }
 0x82d   :  { %v2412_v6 = vpop.permute.xlu1 %2411  ;;  %v2168_v52 = vpop.permute.xlu0 %2167 }
 0x82e   :  { %3032 = vmatmul.msk.f32.vlgmr.msrb.gmra.mxu3 %vm194_vm1, %v2168_v52 }
 0x835   :  { %v2170_v15 = vpop.permute.xlu1 %2169 }
 0x836   :  { %v2418_v54 = vpop.permute.xlu0 %2417  ;;  %3033 = vmatmul.msk.f32.gmra.mxu3 %vm194_vm1, %v2170_v15 }
 0x837   :  { %3042 = vmatpush.xpose.msk.msra.mxu3 %vm194_vm1, %v2418_v54 }
 0x83b   :  { %3043 = vmatpush.xpose.msk.msra.mxu3 %vm194_vm1, %v2416_v55  ;;  %v1516_v30 = vpop.f32.mrf.mxu0 }
 0x83c   :  { %v1529_v36 = vadd.f32 %v3809_v33, %v1516_v30 }
 0x83e   :  { %v2290_v57 = vpop.permute.xlu0 %2289  ;;  %3044 = vmatmul.msk.f32.vlgmr.msra.gmra.mxu3 %vm194_vm1, %v2412_v6 }
 0x83f   :  { %3038 = vmatmul.msk.f32.vlgmr.msrb.gmra.mxu1 %vm194_vm1, %v2290_v57 }
 0x843   :  { %v1519_v34 = vpop.f32.mrf.mxu0 }
 0x844   :  { %v1530_v37 = vadd.f32 %v3809_v33, %v1519_v34 }
 0x846   :  { %v2414_v2 = vpop.permute.xlu0 %2413  ;;  %v3960_v24 = vpack.i.bf16 %v1529_v36, %v1530_v37 }
 0x847   :  { %3039 = vmatmul.msk.f32.gmra.mxu1 %vm194_vm1, %v2292_v61  ;;  %3045 = vmatmul.msk.f32.gmra.mxu3 %vm194_vm1, %v2414_v2 }
 0x873   :  { %v3910_v56 = vpop.f32.mrf.mxu1 }
 0x874   :  { %v1690_v28 = vsel %vm679_vm10, %v3910_v56, -inf }
 0x875   :  { %v1568_v46 = vpop.xlane.xlu1 %1567  ;;  %1691 = vmax.xlane.f32.xlu0 %v1690_v28 }
 0x876   :  { %v1572_v0 = vsub.f32 %v1560_v18, %v1568_v46 }
 0x878   :  { %v1574_v60 = vmul.f32 1.442695, %v1572_v0 }
 0x87a   :  { %3201 = vpow2.f32 %v1574_v60 }
 0x87c   :  { %v3914_v4 = vpop.f32.mrf.mxu1 }
 0x87d   :  { %v1693_v11 = vsel %vm679_vm10, %v3914_v4, -inf }
 0x87e   :  { %v1571_v50 = vpop.xlane.xlu2 %1570  ;;  %1694 = vmax.xlane.f32.xlu1 %v1693_v11 }
 0x87f   :  { %v1573_v22 = vsub.f32 %v1563_v58, %v1571_v50 }
 0x880   :  { %v3920_v29 = vpop.eup %3201 }
 0x881   :  { %v1576_v8 = vmul.f32 1.442695, %v1573_v22  ;;  %v3918_v10 = vpop.f32.mrf.mxu3  ;;  %v1578_v13 = vsel %vm679_vm10, %v3920_v29, 0.0 }
 0x882   :  { %v1934_v9 = vsel %vm679_vm10, %v3918_v10, -inf }
 0x883   :  { %1935 = vmax.xlane.f32.xlu0 %v1934_v9  ;;  %3203 = vpow2.f32 %v1576_v8 }
 0x884   :  { %v3924_v12 = vpop.f32.mrf.mxu1 }
 0x885   :  { %v1812_v3 = vsel %vm679_vm10, %v3924_v12, -inf }
 0x886   :  { %1579 = vadd.xlane.f32.xlu1 %v1578_v13  ;;  %v3075_v14 = vpop.permute.xlu2 %3074 }
 0x887   :  { %v3076_v17 = vunpack.i.l.bf16 %v3075_v14  ;;  %v3077_v19 = vunpack.i.h.bf16 %v3075_v14 }
 0x889   :  { %v3928_v1 = vpop.eup %3203  ;;  %1642 = vmatpush.msrb.mxu2 %v3076_v17 }
 0x88a   :  { %v1581_v16 = vsel %vm679_vm10, %v3928_v1, 0.0 }
 0x88b   :  { %1643 = vmatpush.msrb.mxu2 %v3077_v19 }
 0x88c   :  { %v3930_v45 = vpop.f32.mrf.mxu1 }
 0x88d   :  { %v1815_v5 = vsel %vm679_vm10, %v3930_v45, -inf  ;;  %v3080_v26 = vpop.permute.xlu1 %3079 }
 0x88e   :  { %1582 = vadd.xlane.f32.xlu1 %v1581_v16  ;;  %v3081_v27 = vunpack.i.l.bf16 %v3080_v26  ;;  %v3082_v59 = vunpack.i.h.bf16 %v3080_v26 }
 0x890   :  { %1764 = vmatpush.msra.mxu2 %v3081_v27 }
 0x892   :  { %v3934_v38 = vpop.f32.mrf.mxu3  ;;  %1765 = vmatpush.msra.mxu2 %v3082_v59 }
 0x893   :  { %v1937_v20 = vsel %vm679_vm10, %v3934_v38, -inf }
 0x894   :  { %v3938_v23 = vpop.f32.mrf.mxu1  ;;  %1938 = vmax.xlane.f32.xlu2 %v1937_v20 }
 0x895   :  { %v2082_v25 = vsel %vm679_vm10, %v3938_v23, -inf  ;;  %v3085_v52 = vpop.permute.xlu1 %3084 }
 0x896   :  { %2083 = vmax.xlane.f32.xlu0 %v2082_v25  ;;  %1816 = vmax.xlane.f32.xlu1 %v1815_v5 }
 0x89c   :  { %v3946_v49 = vpop.f32.mrf.mxu1  ;;  %1813 = vmax.xlane.f32.xlu2 %v1812_v3 }
 0x89d   :  { %v2085_v51 = vsel %vm679_vm10, %v3946_v49, -inf }
 0x89e   :  { %2086 = vmax.xlane.f32.xlu0 %v2085_v51 }
 0x8b1   :  { %v3950_v31 = vpop.f32.mrf.mxu3 }
 0x8b2   :  { %v2206_v18 = vsel %vm679_vm10, %v3950_v31, -inf }
 0x8b3   :  { %2207 = vmax.xlane.f32.xlu2 %v2206_v18  ;;  %v3086_v18 = vunpack.i.l.bf16 %v3085_v52 }
 0x8b9   :  { %v3954_v35 = vpop.f32.mrf.mxu3 }
 0x8ba   :  { %v2209_v58 = vsel %vm679_vm10, %v3954_v35, -inf }
 0x8bb   :  { %2210 = vmax.xlane.f32.xlu2 %v2209_v58  ;;  %v3087_v58 = vunpack.i.h.bf16 %v3085_v52 }
 0x8bc   :  { %v3962_v39 = vpop.f32.mrf.mxu1 }
 0x8bd   :  { %v2328_v40 = vsel %vm679_vm10, %v3962_v39, -inf }
 0x8be   :  { %2329 = vmax.xlane.f32.xlu0 %v2328_v40 }
 0x8c1   :  { %v3966_v41 = vpop.f32.mrf.mxu3 }
 0x8c2   :  { %v2450_v47 = vsel %vm679_vm10, %v3966_v41, -inf }
 0x8c4   :  { %v3968_v42 = vpop.f32.mrf.mxu1 }
 0x8c5   :  { %v2331_v33 = vsel %vm679_vm10, %v3968_v42, -inf }
 0x8c6   :  { %2451 = vmax.xlane.f32.xlu0 %v2450_v47  ;;  %2332 = vmax.xlane.f32.xlu1 %v2331_v33 }
 0x8ca   :  { %v3974_v48 = vpop.f32.mrf.mxu3 }
 0x8cb   :  { %v2453_v63 = vsel %vm679_vm10, %v3974_v48, -inf }
 0x8ce   :  { %2454 = vmax.xlane.f32.xlu1 %v2453_v63 }
 0x8da   :  { %3094 = vrot.lane.b32.xlu0 %v3960_v24, %s3314_s7 }
 0x8e8   :  { %v1692_v6 = vpop.xlane.xlu0 %1691 }
 0x8e9   :  { %v1696_v53 = vsub.f32 %v3910_v56, %v1692_v6 }
 0x8eb   :  { %v1698_v15 = vmul.f32 1.442695, %v1696_v53 }
 0x8ed   :  { %3205 = vpow2.f32 %v1698_v15 }
 0x8f1   :  { %v1695_v54 = vpop.xlane.xlu1 %1694 }
 0x8f2   :  { %v1697_v55 = vsub.f32 %v3914_v4, %v1695_v54 }
 0x8f3   :  { %v3982_v57 = vpop.eup %3205 }
 0x8f4   :  { %v1702_v61 = vsel %vm679_vm10, %v3982_v57, 0.0  ;;  %v1700_v2 = vmul.f32 1.442695, %v1697_v55 }
 0x8f5   :  { %1703 = vadd.xlane.f32.xlu1 %v1702_v61 }
 0x8f6   :  { %v1936_v28 = vpop.xlane.xlu0 %1935  ;;  %3207 = vpow2.f32 %v1700_v2 }
 0x8f7   :  { %v1940_v46 = vsub.f32 %v3918_v10, %v1936_v28 }
 0x8f9   :  { %v1942_v0 = vmul.f32 1.442695, %v1940_v46  ;;  %v1580_v60 = vpop.xlane.xlu1 %1579 }
 0x8fa   :  { %3209 = vrcp.f32 %v1580_v60  ;;  %v1595_v13 = vand.u32 2147483648, %v1580_v60  ;;  %v1593_v14 = vand.u32 2147483647, %v1580_v60  ;;  %vm1589_vm2 = vweird.f32 %v1580_v60 }
 0x8fb   :  { %3211 = vpow2.f32 %v1942_v0 }
 0x8fc   :  { %v3987_v56 = vpop.eup %3207  ;;  %v1596_v25 = vor.u32 1.1754944e-38, %v1595_v13  ;;  %vm1594_vm4 = vcmp.eq.f32.partialorder %v1593_v14, 8.507059e+37 }
 0x8fd   :  { %v1705_v10 = vsel %vm679_vm10, %v3987_v56, 0.0 }
 0x900   :  { %v3210_v11 = vpop.eup %3209 }
 0x901   :  { %v3989_v50 = vpop.eup %3211  ;;  %v1585_v4 = vmul.f32 %v3210_v11, %v1580_v60  ;;  %v1583_v22 = vpop.xlane.xlu1 %1582  ;;  %vm1590_vm15 = vweird.f32 %v3210_v11 }
 0x902   :  { %3213 = vrcp.f32 %v1583_v22  ;;  %v1946_v8 = vsel %vm679_vm10, %v3989_v50, 0.0  ;;  %vm1591_vm3 = vmor %vm1589_vm2, %vm1590_vm15  ;;  %v1610_v34 = vand.u32 2147483648, %v1583_v22  ;;  %v1608_v37 = vand.u32 2147483647, %v1583_v22 }
 0x903   :  { %v1586_v9 = vsub.f32 1.0, %v1585_v4  ;;  %1947 = vadd.xlane.f32.xlu2 %v1946_v8  ;;  %vm1604_vm6 = vweird.f32 %v1583_v22 }
 0x904   :  { %1706 = vadd.xlane.f32.xlu0 %v1705_v10  ;;  %v1611_v33 = vor.u32 1.1754944e-38, %v1610_v34  ;;  %vm1609_vm8 = vcmp.eq.f32.partialorder %v1608_v37, 8.507059e+37 }
 0x905   :  { %v1587_v16 = vmul.f32 %v3210_v11, %v1586_v9 }
 0x907   :  { %v1588_v17 = vadd.f32 %v3210_v11, %v1587_v16  ;;  %v1939_v19 = vpop.xlane.xlu2 %1938 }
 0x908   :  { %v3214_v20 = vpop.eup %3213  ;;  %v1941_v5 = vsub.f32 %v3934_v38, %v1939_v19 }
 0x909   :  { %v1592_v3 = vsel %vm1591_vm3, %v3210_v11, %v1588_v17  ;;  %v1600_v51 = vmul.f32 %v3214_v20, %v1583_v22  ;;  %vm1605_vm5 = vweird.f32 %v3214_v20  ;;  %v1817_v38 = vpop.xlane.xlu1 %1816 }
 0x90a   :  { %v1597_v26 = vsel %vm1594_vm4, %v1596_v25, %v1592_v3  ;;  %v1944_v27 = vmul.f32 1.442695, %v1941_v5  ;;  %vm1606_vm7 = vmor %vm1604_vm6, %vm1605_vm5  ;;  %v1819_v53 = vsub.f32 %v3930_v45, %v1817_v38 }
 0x90b   :  { %v1601_v59 = vsub.f32 1.0, %v1600_v51  ;;  %v1598_v30 = vmul.f32 %v3920_v29, %v1597_v26 }
 0x90c   :  { %3215 = vpow2.f32 %v1944_v27  ;;  %v1822_v55 = vmul.f32 1.442695, %v1819_v53 }
 0x90d   :  { %v1602_v36 = vmul.f32 %v3214_v20, %v1601_v59  ;;  %3004 = vmatmul.msk.f32.vlgmr.msrb.gmra.mxu2 %vm679_vm10, %v1598_v30 }
 0x90e   :  { %1886 = vmatpush.msrb.mxu2 %v3086_v18  ;;  %3089 = vrot.lane.b32.xlu1 %v3893_v43, %s3320_s13 }
 0x90f   :  { %v1814_v40 = vpop.xlane.xlu2 %1813  ;;  %v1603_v47 = vadd.f32 %v3214_v20, %v1602_v36 }
 0x910   :  { %1887 = vmatpush.msrb.mxu2 %v3087_v58  ;;  %v1818_v29 = vsub.f32 %v3924_v12, %v1814_v40  ;;  %v2084_v12 = vpop.xlane.xlu0 %2083 }
 0x911   :  { %v1607_v63 = vsel %vm1606_vm7, %v3214_v20, %v1603_v47  ;;  %v2088_v2 = vsub.f32 %v3938_v23, %v2084_v12 }
 0x912   :  { %v4001_v6 = vpop.eup %3215  ;;  %v1820_v52 = vmul.f32 1.442695, %v1818_v29  ;;  %v1612_v15 = vsel %vm1609_vm8, %v1611_v33, %v1607_v63 }
 0x913   :  { %v1949_v43 = vsel %vm679_vm10, %v4001_v6, 0.0  ;;  %v1613_v54 = vmul.f32 %v3928_v1, %v1612_v15  ;;  %v2090_v28 = vmul.f32 1.442695, %v2088_v2 }
 0x914   :  { %3217 = vpow2.f32 %v1820_v52  ;;  %1950 = vadd.xlane.f32.xlu0 %v1949_v43 }
 0x915   :  { %3005 = vmatmul.msk.f32.gmra.mxu2 %vm679_vm10, %v1613_v54  ;;  %3219 = vpow2.f32 %v1822_v55 }
 0x916   :  { %3221 = vpow2.f32 %v2090_v28 }
 0x918   :  { %v2087_v60 = vpop.xlane.xlu0 %2086 }
 0x919   :  { %v2089_v22 = vsub.f32 %v3946_v49, %v2087_v60 }
 0x91a   :  { %v4008_v61 = vpop.eup %3217 }
 0x91b   :  { %v1824_v45 = vsel %vm679_vm10, %v4008_v61, 0.0  ;;  %3099 = vrot.lane.b32.xlu2 %v3960_v24, %s3318_s11  ;;  %v4015_v1 = vpop.eup %3219  ;;  %v2092_v9 = vmul.f32 1.442695, %v2089_v22 }
 0x91c   :  { %1825 = vadd.xlane.f32.xlu0 %v1824_v45  ;;  %v1827_v46 = vsel %vm679_vm10, %v4015_v1, 0.0  ;;  %v4020_v23 = vpop.eup %3221 }
 0x91d   :  { %v2094_v8 = vsel %vm679_vm10, %v4020_v23, 0.0 }
 0x924   :  { %1828 = vadd.xlane.f32.xlu0 %v1827_v46 }
 0x926   :  { %v2208_v0 = vpop.xlane.xlu2 %2207 }
 0x927   :  { %v2212_v11 = vsub.f32 %v3950_v31, %v2208_v0 }
 0x929   :  { %v2214_v4 = vmul.f32 1.442695, %v2212_v11 }
 0x92b   :  { %3223 = vpow2.f32 %v2214_v4 }
 0x92c   :  { %2095 = vadd.xlane.f32.xlu0 %v2094_v8  ;;  %3225 = vpow2.f32 %v2092_v9 }
 0x92e   :  { %v2211_v10 = vpop.xlane.xlu2 %2210 }
 0x92f   :  { %v2213_v13 = vsub.f32 %v3954_v35, %v2211_v10 }
 0x931   :  { %v4026_v16 = vpop.eup %3223  ;;  %v2216_v14 = vmul.f32 1.442695, %v2213_v13  ;;  %v2330_v17 = vpop.xlane.xlu0 %2329 }
 0x932   :  { %v2334_v31 = vsub.f32 %v3962_v39, %v2330_v17  ;;  %v2218_v19 = vsel %vm679_vm10, %v4026_v16, 0.0  ;;  %v4031_v20 = vpop.eup %3225 }
 0x933   :  { %3227 = vpow2.f32 %v2216_v14  ;;  %v2097_v26 = vsel %vm679_vm10, %v4031_v20, 0.0 }
 0x934   :  { %2219 = vadd.xlane.f32.xlu0 %v2218_v19  ;;  %v2336_v49 = vmul.f32 1.442695, %v2334_v31 }
 0x936   :  { %3229 = vpow2.f32 %v2336_v49 }
 0x939   :  { %v4033_v25 = vpop.eup %3227  ;;  %v2333_v5 = vpop.xlane.xlu1 %2332 }
 0x93a   :  { %v2452_v3 = vpop.xlane.xlu0 %2451  ;;  %v2335_v35 = vsub.f32 %v3968_v42, %v2333_v5  ;;  %v2221_v39 = vsel %vm679_vm10, %v4033_v25, 0.0 }
 0x93b   :  { %v2456_v51 = vsub.f32 %v3966_v41, %v2452_v3  ;;  %2222 = vadd.xlane.f32.xlu1 %v2221_v39 }
 0x93c   :  { %v2338_v27 = vmul.f32 1.442695, %v2335_v35  ;;  %2098 = vadd.xlane.f32.xlu0 %v2097_v26  ;;  %v4041_v30 = vpop.eup %3229 }
 0x93d   :  { %v2458_v59 = vmul.f32 1.442695, %v2456_v51  ;;  %v2340_v41 = vsel %vm679_vm10, %v4041_v30, 0.0 }
 0x93e   :  { %3231 = vpow2.f32 %v2338_v27 }
 0x93f   :  { %3233 = vpow2.f32 %v2458_v59 }
 0x941   :  { %v2455_v18 = vpop.xlane.xlu1 %2454 }
 0x942   :  { %v2457_v34 = vsub.f32 %v3974_v48, %v2455_v18 }
 0x944   :  { %v4046_v42 = vpop.eup %3231  ;;  %2341 = vadd.xlane.f32.xlu2 %v2340_v41  ;;  %v2460_v37 = vmul.f32 1.442695, %v2457_v34 }
 0x945   :  { %v2343_v36 = vsel %vm679_vm10, %v4046_v42, 0.0  ;;  %v4050_v58 = vpop.eup %3233 }
 0x946   :  { %2344 = vadd.xlane.f32.xlu0 %v2343_v36  ;;  %3235 = vpow2.f32 %v2460_v37  ;;  %v2462_v38 = vsel %vm679_vm10, %v4050_v58, 0.0 }
 0x94c   :  { %2463 = vadd.xlane.f32.xlu2 %v2462_v38  ;;  %v4054_v40 = vpop.eup %3235  ;;  %v3095_v29 = vpop.permute.xlu0 %3094 }
 0x94d   :  { %v2465_v48 = vsel %vm679_vm10, %v4054_v40, 0.0  ;;  %v3096_v46 = vunpack.i.l.bf16 %v3095_v29  ;;  %v3097_v60 = vunpack.i.h.bf16 %v3095_v29 }
 0x954   :  { %3104 = vrot.lane.b32.xlu1 %v3960_v24, %s3319_s12  ;;  %2466 = vadd.xlane.f32.xlu2 %v2465_v48 }
 0x95a   :  { %3109 = vrot.lane.b32.xlu0 %v3960_v24, %s3320_s13 }
 0x968   :  { %v1704_v47 = vpop.xlane.xlu1 %1703 }
 0x969   :  { %3237 = vrcp.f32 %v1704_v47  ;;  %v1719_v52 = vand.u32 2147483648, %v1704_v47  ;;  %v1717_v43 = vand.u32 2147483647, %v1704_v47  ;;  %vm1713_vm13 = vweird.f32 %v1704_v47 }
 0x96b   :  { %v1720_v12 = vor.u32 1.1754944e-38, %v1719_v52  ;;  %vm1718_vm15 = vcmp.eq.f32.partialorder %v1717_v43, 8.507059e+37 }
 0x96f   :  { %v3238_v33 = vpop.eup %3237 }
 0x970   :  { %v1709_v63 = vmul.f32 %v3238_v33, %v1704_v47  ;;  %vm1714_vm9 = vweird.f32 %v3238_v33 }
 0x971   :  { %vm1715_vm14 = vmor %vm1713_vm13, %vm1714_vm9 }
 0x972   :  { %v1710_v53 = vsub.f32 1.0, %v1709_v63 }
 0x974   :  { %v1711_v15 = vmul.f32 %v3238_v33, %v1710_v53 }
 0x976   :  { %v1712_v54 = vadd.f32 %v3238_v33, %v1711_v15  ;;  %v1948_v55 = vpop.xlane.xlu2 %1947 }
 0x977   :  { %3239 = vrcp.f32 %v1948_v55  ;;  %v1707_v2 = vpop.xlane.xlu0 %1706  ;;  %v1963_v10 = vand.u32 2147483648, %v1948_v55  ;;  %v1961_v19 = vand.u32 2147483647, %v1948_v55  ;;  %vm1957_vm4 = vweird.f32 %v1948_v55 }
 0x978   :  { %v1716_v45 = vsel %vm1715_vm14, %v3238_v33, %v1712_v54  ;;  %3241 = vrcp.f32 %v1707_v2  ;;  %v1732_v3 = vand.u32 2147483647, %v1707_v2  ;;  %vm1728_vm6 = vweird.f32 %v1707_v2 }
 0x979   :  { %v1721_v24 = vsel %vm1718_vm15, %v1720_v12, %v1716_v45  ;;  %v1964_v39 = vor.u32 1.1754944e-38, %v1963_v10  ;;  %vm1962_vm7 = vcmp.eq.f32.partialorder %v1961_v19, 8.507059e+37 }
 0x97a   :  { %v1722_v28 = vmul.f32 %v3982_v57, %v1721_v24  ;;  %v1734_v57 = vand.u32 2147483648, %v1707_v2  ;;  %vm1733_vm9 = vcmp.eq.f32.partialorder %v1732_v3, 8.507059e+37 }
 0x97c   :  { %3010 = vmatmul.msk.f32.vlgmr.msra.gmra.mxu2 %vm679_vm10, %v1722_v28  ;;  %v1735_v59 = vor.u32 1.1754944e-38, %v1734_v57 }
 0x97d   :  { %v3240_v0 = vpop.eup %3239  ;;  %2158 = vmatpush.msra.mxu2 %v3096_v46 }
 0x97e   :  { %v3242_v11 = vpop.eup %3241  ;;  %v1953_v4 = vmul.f32 %v3240_v0, %v1948_v55  ;;  %v3100_v14 = vpop.permute.xlu2 %3099  ;;  %vm1958_vm2 = vweird.f32 %v3240_v0 }
 0x97f   :  { %v1724_v22 = vmul.f32 %v3242_v11, %v1707_v2  ;;  %2159 = vmatpush.msra.mxu2 %v3097_v60  ;;  %vm1729_vm3 = vweird.f32 %v3242_v11  ;;  %v3101_v51 = vunpack.i.l.bf16 %v3100_v14  ;;  %vm1959_vm5 = vmor %vm1957_vm4, %vm1958_vm2  ;;  %v3102_v18 = vunpack.i.h.bf16 %v3100_v14 }
 0x980   :  { %v1954_v8 = vsub.f32 1.0, %v1953_v4  ;;  %v3090_v9 = vpop.permute.xlu1 %3089  ;;  %vm1730_vm8 = vmor %vm1728_vm6, %vm1729_vm3 }
 0x981   :  { %v1725_v13 = vsub.f32 1.0, %v1724_v22  ;;  %v3091_v17 = vunpack.i.l.bf16 %v3090_v9  ;;  %v3092_v5 = vunpack.i.h.bf16 %v3090_v9 }
 0x982   :  { %v1955_v31 = vmul.f32 %v3240_v0, %v1954_v8 }
 0x983   :  { %v1726_v49 = vmul.f32 %v3242_v11, %v1725_v13  ;;  %2008 = vmatpush.msrb.mxu0 %v3091_v17 }
 0x984   :  { %v1956_v35 = vadd.f32 %v3240_v0, %v1955_v31 }
 0x985   :  { %2009 = vmatpush.msrb.mxu0 %v3092_v5  ;;  %v1727_v26 = vadd.f32 %v3242_v11, %v1726_v49 }
 0x986   :  { %v1960_v27 = vsel %vm1959_vm5, %v3240_v0, %v1956_v35 }
 0x987   :  { %2280 = vmatpush.msra.mxu0 %v3101_v51  ;;  %v1965_v34 = vsel %vm1962_vm7, %v1964_v39, %v1960_v27  ;;  %v1951_v41 = vpop.xlane.xlu0 %1950  ;;  %v1731_v36 = vsel %vm1730_vm8, %v3242_v11, %v1727_v26 }
 0x988   :  { %3243 = vrcp.f32 %v1951_v41  ;;  %v1736_v37 = vsel %vm1733_vm9, %v1735_v59, %v1731_v36  ;;  %v1966_v48 = vmul.f32 %v3989_v50, %v1965_v34  ;;  %v1978_v53 = vand.u32 2147483648, %v1951_v41 }
 0x989   :  { %2281 = vmatpush.msra.mxu0 %v3102_v18  ;;  %v1737_v38 = vmul.f32 %v3987_v56, %v1736_v37  ;;  %v1976_v15 = vand.u32 2147483647, %v1951_v41  ;;  %vm1972_vm14 = vweird.f32 %v1951_v41 }
 0x98a   :  { %3022 = vmatmul.msk.f32.vlgmr.msrb.gmra.mxu0 %vm679_vm10, %v1966_v48  ;;  %v1979_v55 = vor.u32 1.1754944e-38, %v1978_v53 }
 0x98b   :  { %3011 = vmatmul.msk.f32.gmra.mxu2 %vm679_vm10, %v1737_v38  ;;  %vm1977_vm2 = vcmp.eq.f32.partialorder %v1976_v15, 8.507059e+37 }
 0x98e   :  { %v3244_v47 = vpop.eup %3243 }
 0x98f   :  { %v1968_v33 = vmul.f32 %v3244_v47, %v1951_v41  ;;  %v1826_v29 = vpop.xlane.xlu0 %1825  ;;  %vm1973_vm13 = vweird.f32 %v3244_v47 }
 0x990   :  { %3245 = vrcp.f32 %v1826_v29  ;;  %vm1974_vm15 = vmor %vm1972_vm14, %vm1973_vm13  ;;  %v1841_v28 = vand.u32 2147483648, %v1826_v29  ;;  %v1839_v0 = vand.u32 2147483647, %v1826_v29  ;;  %vm1835_vm4 = vweird.f32 %v1826_v29 }
 0x991   :  { %v1969_v63 = vsub.f32 1.0, %v1968_v33 }
 0x992   :  { %v1842_v4 = vor.u32 1.1754944e-38, %v1841_v28  ;;  %vm1840_vm6 = vcmp.eq.f32.partialorder %v1839_v0, 8.507059e+37 }
 0x993   :  { %v1970_v52 = vmul.f32 %v3244_v47, %v1969_v63 }
 0x995   :  { %v1971_v43 = vadd.f32 %v3244_v47, %v1970_v52 }
 0x996   :  { %v3246_v54 = vpop.eup %3245 }
 0x997   :  { %v1831_v56 = vmul.f32 %v3246_v54, %v1826_v29  ;;  %v1829_v50 = vpop.xlane.xlu0 %1828  ;;  %v1975_v12 = vsel %vm1974_vm15, %v3244_v47, %v1971_v43  ;;  %vm1836_vm3 = vweird.f32 %v3246_v54 }
 0x998   :  { %3247 = vrcp.f32 %v1829_v50  ;;  %v1980_v2 = vsel %vm1977_vm2, %v1979_v55, %v1975_v12  ;;  %vm1837_vm5 = vmor %vm1835_vm4, %vm1836_vm3  ;;  %v1856_v17 = vand.u32 2147483648, %v1829_v50  ;;  %v1854_v31 = vand.u32 2147483647, %v1829_v50 }
 0x999   :  { %v1832_v45 = vsub.f32 1.0, %v1831_v56  ;;  %v1981_v24 = vmul.f32 %v4001_v6, %v1980_v2  ;;  %vm1850_vm8 = vweird.f32 %v1829_v50 }
 0x99a   :  { %v1857_v49 = vor.u32 1.1754944e-38, %v1856_v17  ;;  %vm1855_vm13 = vcmp.eq.f32.partialorder %v1854_v31, 8.507059e+37 }
 0x99b   :  { %v1833_v46 = vmul.f32 %v3246_v54, %v1832_v45  ;;  %3023 = vmatmul.msk.f32.gmra.mxu0 %vm679_vm10, %v1981_v24 }
 0x99d   :  { %v1834_v60 = vadd.f32 %v3246_v54, %v1833_v46 }
 0x99e   :  { %v3248_v11 = vpop.eup %3247 }
 0x99f   :  { %v1838_v22 = vsel %vm1837_vm5, %v3246_v54, %v1834_v60  ;;  %v1846_v8 = vmul.f32 %v3248_v11, %v1829_v50  ;;  %v2096_v9 = vpop.xlane.xlu0 %2095  ;;  %vm1851_vm7 = vweird.f32 %v3248_v11 }
 0x9a0   :  { %v1843_v10 = vsel %vm1840_vm6, %v1842_v4, %v1838_v22  ;;  %3249 = vrcp.f32 %v2096_v9  ;;  %vm1852_vm9 = vmor %vm1850_vm8, %vm1851_vm7  ;;  %v2111_v26 = vand.u32 2147483648, %v2096_v9  ;;  %v2109_v59 = vand.u32 2147483647, %v2096_v9 }
 0x9a1   :  { %v1847_v13 = vsub.f32 1.0, %v1846_v8  ;;  %v1844_v6 = vmul.f32 %v4008_v61, %v1843_v10  ;;  %vm2105_vm15 = vweird.f32 %v2096_v9 }
 0x9a2   :  { %v2112_v41 = vor.u32 1.1754944e-38, %v2111_v26  ;;  %vm2110_vm3 = vcmp.eq.f32.partialorder %v2109_v59, 8.507059e+37 }
 0x9a3   :  { %v1848_v14 = vmul.f32 %v3248_v11, %v1847_v13  ;;  %3016 = vmatmul.msk.f32.vlgmr.msrb.gmra.mxu2 %vm679_vm10, %v1844_v6 }
 0x9a5   :  { %v1849_v19 = vadd.f32 %v3248_v11, %v1848_v14 }
 0x9a6   :  { %v3250_v57 = vpop.eup %3249 }
 0x9a7   :  { %v2101_v5 = vmul.f32 %v3250_v57, %v2096_v9  ;;  %v2220_v3 = vpop.xlane.xlu0 %2219  ;;  %v1853_v35 = vsel %vm1852_vm9, %v3248_v11, %v1849_v19  ;;  %vm2106_vm14 = vweird.f32 %v3250_v57 }
 0x9a8   :  { %3251 = vrcp.f32 %v2220_v3  ;;  %v1858_v39 = vsel %vm1855_vm13, %v1857_v49, %v1853_v35  ;;  %vm2107_vm2 = vmor %vm2105_vm15, %vm2106_vm14  ;;  %v2233_v53 = vand.u32 2147483647, %v2220_v3  ;;  %vm2229_vm5 = vweird.f32 %v2220_v3 }
 0x9a9   :  { %v2102_v51 = vsub.f32 1.0, %v2101_v5  ;;  %v1859_v61 = vmul.f32 %v4015_v1, %v1858_v39  ;;  %v2235_v1 = vand.u32 2147483648, %v2220_v3 }
 0x9aa   :  { %vm2234_vm7 = vcmp.eq.f32.partialorder %v2233_v53, 8.507059e+37 }
 0x9ab   :  { %v2103_v27 = vmul.f32 %v3250_v57, %v2102_v51  ;;  %3017 = vmatmul.msk.f32.gmra.mxu2 %vm679_vm10, %v1859_v61  ;;  %v2236_v43 = vor.u32 1.1754944e-38, %v2235_v1 }
 0x9ad   :  { %v2104_v18 = vadd.f32 %v3250_v57, %v2103_v27 }
 0x9ae   :  { %v3252_v34 = vpop.eup %3251  ;;  %v2223_v36 = vpop.xlane.xlu1 %2222 }
 0x9af   :  { %v2108_v37 = vsel %vm2107_vm2, %v3250_v57, %v2104_v18  ;;  %v2225_v38 = vmul.f32 %v3252_v34, %v2220_v3  ;;  %3253 = vrcp.f32 %v2223_v36  ;;  %v2099_v48 = vpop.xlane.xlu0 %2098  ;;  %vm2230_vm4 = vweird.f32 %v3252_v34 }
 0x9b0   :  { %v2113_v47 = vsel %vm2110_vm3, %v2112_v41, %v2108_v37  ;;  %3255 = vrcp.f32 %v2099_v48  ;;  %vm2231_vm6 = vmor %vm2229_vm5, %vm2230_vm4  ;;  %v2248_v24 = vand.u32 2147483647, %v2223_v36  ;;  %v2250_v28 = vand.u32 2147483648, %v2223_v36 }
 0x9b1   :  { %v2226_v33 = vsub.f32 1.0, %v2225_v38  ;;  %v2114_v29 = vmul.f32 %v4020_v23, %v2113_v47  ;;  %vm2244_vm9 = vweird.f32 %v2223_v36  ;;  %v2126_v22 = vand.u32 2147483648, %v2099_v48 }
 0x9b2   :  { %v2124_v8 = vand.u32 2147483647, %v2099_v48  ;;  %v2251_v9 = vor.u32 1.1754944e-38, %v2250_v28  ;;  %vm2249_vm15 = vcmp.eq.f32.partialorder %v2248_v24, 8.507059e+37  ;;  %vm2120_vm2 = vweird.f32 %v2099_v48 }
 0x9b3   :  { %v2227_v63 = vmul.f32 %v3252_v34, %v2226_v33  ;;  %3028 = vmatmul.msk.f32.vlgmr.msra.gmra.mxu2 %vm679_vm10, %v2114_v29  ;;  %v2127_v19 = vor.u32 1.1754944e-38, %v2126_v22 }
 0x9b4   :  { %vm2125_vm4 = vcmp.eq.f32.partialorder %v2124_v8, 8.507059e+37 }
 0x9b5   :  { %v3254_v52 = vpop.eup %3253  ;;  %v2228_v15 = vadd.f32 %v3252_v34, %v2227_v63 }
 0x9b6   :  { %v2240_v54 = vmul.f32 %v3254_v52, %v2223_v36  ;;  %v3256_v55 = vpop.eup %3255  ;;  %vm2245_vm8 = vweird.f32 %v3254_v52 }
 0x9b7   :  { %v2232_v56 = vsel %vm2231_vm6, %v3252_v34, %v2228_v15  ;;  %v2342_v50 = vpop.xlane.xlu2 %2341  ;;  %v2116_v45 = vmul.f32 %v3256_v55, %v2099_v48  ;;  %vm2246_vm13 = vmor %vm2244_vm9, %vm2245_vm8  ;;  %vm2121_vm14 = vweird.f32 %v3256_v55 }
 0x9b8   :  { %v2237_v12 = vsel %vm2234_vm7, %v2236_v43, %v2232_v56  ;;  %v2241_v2 = vsub.f32 1.0, %v2240_v54  ;;  %3257 = vrcp.f32 %v2342_v50  ;;  %vm2122_vm3 = vmor %vm2120_vm2, %vm2121_vm14  ;;  %v2355_v35 = vand.u32 2147483647, %v2342_v50 }
 0x9b9   :  { %v2238_v23 = vmul.f32 %v4026_v16, %v2237_v12  ;;  %v4078_v46 = vpop.xlane.xlu0 %2344  ;;  %v2117_v60 = vsub.f32 1.0, %v2116_v45  ;;  %v2357_v51 = vand.u32 2147483648, %v2342_v50  ;;  %vm2351_vm6 = vweird.f32 %v2342_v50 }
 0x9ba   :  { %v2242_v0 = vmul.f32 %v3254_v52, %v2241_v2  ;;  %3259 = vrcp.f32 %v4078_v46  ;;  %vm2356_vm8 = vcmp.eq.f32.partialorder %v2355_v35, 8.507059e+37 }
 0x9bb   :  { %3034 = vmatmul.msk.f32.vlgmr.msra.gmra.mxu0 %vm679_vm10, %v2238_v23  ;;  %v2118_v4 = vmul.f32 %v3256_v55, %v2117_v60  ;;  %v2358_v34 = vor.u32 1.1754944e-38, %v2357_v51 }
 0x9bc   :  { %v2243_v11 = vadd.f32 %v3254_v52, %v2242_v0 }
 0x9bd   :  { %v2119_v10 = vadd.f32 %v3256_v55, %v2118_v4 }
 0x9be   :  { %v3258_v16 = vpop.eup %3257  ;;  %v2247_v13 = vsel %vm2246_vm13, %v3254_v52, %v2243_v11  ;;  %v2370_v52 = vand.u32 2147483647, %v4078_v46  ;;  %vm2366_vm13 = vweird.f32 %v4078_v46 }
 0x9bf   :  { %v2347_v6 = vmul.f32 %v3258_v16, %v2342_v50  ;;  %v2464_v14 = vpop.xlane.xlu2 %2463  ;;  %v2252_v17 = vsel %vm2249_vm15, %v2251_v9, %v2247_v13  ;;  %v2123_v5 = vsel %vm2122_vm3, %v3256_v55, %v2119_v10  ;;  %vm2352_vm5 = vweird.f32 %v3258_v16 }
 0x9c0   :  { %v4082_v31 = vpop.eup %3259  ;;  %3261 = vrcp.f32 %v2464_v14  ;;  %v2253_v3 = vmul.f32 %v4033_v25, %v2252_v17  ;;  %v2128_v39 = vsel %vm2125_vm4, %v2127_v19, %v2123_v5  ;;  %vm2353_vm7 = vmor %vm2351_vm6, %vm2352_vm5  ;;  %v2479_v29 = vand.u32 2147483648, %v2464_v14 }
 0x9c1   :  { %v2348_v57 = vsub.f32 1.0, %v2347_v6  ;;  %v2362_v49 = vmul.f32 %v4082_v31, %v4078_v46  ;;  %v2129_v27 = vmul.f32 %v4031_v20, %v2128_v39  ;;  %v2372_v20 = vand.u32 2147483648, %v4078_v46 }
 0x9c2   :  { %vm2367_vm9 = vweird.f32 %v4082_v31  ;;  %v2477_v43 = vand.u32 2147483647, %v2464_v14  ;;  %vm2473_vm2 = vweird.f32 %v2464_v14  ;;  %v2480_v45 = vor.u32 1.1754944e-38, %v2479_v29 }
 0x9c3   :  { %v2349_v26 = vmul.f32 %v3258_v16, %v2348_v57  ;;  %v2363_v61 = vsub.f32 1.0, %v2362_v49  ;;  %3035 = vmatmul.msk.f32.gmra.mxu0 %vm679_vm10, %v2253_v3  ;;  %3029 = vmatmul.msk.f32.gmra.mxu2 %vm679_vm10, %v2129_v27  ;;  %vm4097_vm15 = vmor %vm2366_vm13, %vm2367_vm9  ;;  %v2373_v2 = vor.u32 1.1754944e-38, %v2372_v20  ;;  %vm2371_vm4 = vcmp.eq.f32.partialorder %v2370_v52, 8.507059e+37 }
 0x9c4   :  { %vm2478_vm5 = vcmp.eq.f32.partialorder %v2477_v43, 8.507059e+37 }
 0x9c5   :  { %v2350_v59 = vadd.f32 %v3258_v16, %v2349_v26  ;;  %v2364_v41 = vmul.f32 %v4082_v31, %v2363_v61 }
 0x9c6   :  { %v3262_v18 = vpop.eup %3261  ;;  %v3105_v25 = vpop.permute.xlu1 %3104 }
 0x9c7   :  { %v2354_v36 = vsel %vm2353_vm7, %v3258_v16, %v2350_v59  ;;  %v2469_v37 = vmul.f32 %v3262_v18, %v2464_v14  ;;  %v2467_v38 = vpop.xlane.xlu2 %2466  ;;  %v3106_v47 = vunpack.i.l.bf16 %v3105_v25  ;;  %v3107_v63 = vunpack.i.h.bf16 %v3105_v25  ;;  %v1645_v14 = vpop.f32.mrf.mxu2  ;;  %v1347_v59 = vld [vmem:[#allocation2 + $0x118] sm:$0xff] }
 0x9c8   :  { %v2359_v48 = vsel %vm2356_vm8, %v2358_v34, %v2354_v36  ;;  %3263 = vrcp.f32 %v2467_v38  ;;  %v2365_v53 = vadd.f32 %v4082_v31, %v2364_v41  ;;  %vm2474_vm14 = vweird.f32 %v3262_v18  ;;  %2588 = vmatpush.msra.mxu1 %v1347_v59  ;;  %v1345_v34 = vld [vmem:[#allocation2 + $0x108] sm:$0xff]  ;;  %v1344_v41 = vld [vmem:[#allocation2 + $0x100] sm:$0xff] }
 0x9c9   :  { %v2470_v33 = vsub.f32 1.0, %v2469_v37  ;;  %v2360_v1 = vmul.f32 %v4041_v30, %v2359_v48  ;;  %2402 = vmatpush.msrb.mxu2 %v3106_v47  ;;  %vm2475_vm3 = vmor %vm2473_vm2, %vm2474_vm14  ;;  %v2494_v4 = vand.u32 2147483648, %v2467_v38  ;;  %v2492_v8 = vand.u32 2147483647, %v2467_v38 }
 0x9ca   :  { %v2369_v50 = vsel %vm4097_vm15, %v4082_v31, %v2365_v53  ;;  %vm2488_vm7 = vweird.f32 %v2467_v38 }
 0x9cb   :  { %v2471_v15 = vmul.f32 %v3262_v18, %v2470_v33  ;;  %2403 = vmatpush.msrb.mxu2 %v3107_v63  ;;  %v2374_v0 = vsel %vm2371_vm4, %v2373_v2, %v2369_v50  ;;  %v2495_v10 = vor.u32 1.1754944e-38, %v2494_v4  ;;  %vm2493_vm9 = vcmp.eq.f32.partialorder %v2492_v8, 8.507059e+37 }
 0x9cc   :  { %v3110_v54 = vpop.permute.xlu0 %3109  ;;  %3040 = vmatmul.msk.f32.vlgmr.msrb.gmra.mxu2 %vm679_vm10, %v2360_v1  ;;  %v2375_v9 = vmul.f32 %v4046_v42, %v2374_v0 }
 0x9cd   :  { %v2472_v30 = vadd.f32 %v3262_v18, %v2471_v15  ;;  %v3111_v56 = vunpack.i.l.bf16 %v3110_v54  ;;  %v3112_v28 = vunpack.i.h.bf16 %v3110_v54 }
 0x9ce   :  { %v3264_v12 = vpop.eup %3263 }
 0x9cf   :  { %v2476_v23 = vsel %vm2475_vm3, %v3262_v18, %v2472_v30  ;;  %v2484_v24 = vmul.f32 %v3264_v12, %v2467_v38  ;;  %2524 = vmatpush.msrb.mxu0 %v3111_v56  ;;  %vm2489_vm6 = vweird.f32 %v3264_v12  ;;  %v1648_v17 = vpop.f32.mrf.mxu2  ;;  %v1346_v18 = vld [vmem:[#allocation2 + $0x110] sm:$0xff] }
 0x9d0   :  { %v2481_v46 = vsel %vm2478_vm5, %v2480_v45, %v2476_v23  ;;  %vm2490_vm8 = vmor %vm2488_vm7, %vm2489_vm6  ;;  %2589 = vmatpush.msra.mxu1 %v1346_v18 }
 0x9d1   :  { %v2482_v60 = vmul.f32 %v4050_v58, %v2481_v46  ;;  %v2485_v11 = vsub.f32 1.0, %v2484_v24  ;;  %2525 = vmatpush.msrb.mxu0 %v3112_v28  ;;  %v3120_v24 = vld [vmem:[%s4257_s3 + $0x5] ss:$0 sm:$0xff] }
 0x9d2   :  { %2590 = vmatpush.msra.mxu1 %v1345_v34  ;;  %v2712_v34 = vld [vmem:[#allocation2 + $0x138] sm:$0xff] }
 0x9d3   :  { %v2486_v22 = vmul.f32 %v3264_v12, %v2485_v11  ;;  %3046 = vmatmul.msk.f32.vlgmr.msrb.gmra.mxu0 %vm679_vm10, %v2482_v60  ;;  %2739 = vmatpush.msra.mxu2 %v2712_v34 }
 0x9d4   :  { %3041 = vmatmul.msk.f32.gmra.mxu2 %vm679_vm10, %v2375_v9  ;;  %2591 = vmatpush.msra.mxu1 %v1344_v41  ;;  %v2711_v41 = vld [vmem:[#allocation2 + $0x130] sm:$0xff] }
 0x9d5   :  { %v2487_v16 = vadd.f32 %v3264_v12, %v2486_v22  ;;  %2740 = vmatpush.msra.mxu2 %v2711_v41 }
 0x9d7   :  { %v2491_v13 = vsel %vm2490_vm8, %v3264_v12, %v2487_v16 }
 0x9d8   :  { %v2496_v6 = vsel %vm2493_vm9, %v2495_v10, %v2491_v13 }
 0x9d9   :  { %v2497_v58 = vmul.f32 %v4054_v40, %v2496_v6 }
 0x9db   :  { %3047 = vmatmul.msk.f32.gmra.mxu0 %vm679_vm10, %v2497_v58 }
 0x9ff   :  { %v1767_v31 = vpop.f32.mrf.mxu2 }
 0xa00   :  { %2019 = vrot.lane.b32.xlu1 %v1767_v31, %s3313_s21 }
 0xa07   :  { %v2011_v19 = vpop.f32.mrf.mxu0 }
 0xa08   :  { %2035 = vrot.lane.b32.xlu2 %v2011_v19, %s3322_s15 }
 0xa0e   :  { %v1770_v42 = vpop.f32.mrf.mxu2 }
 0xa0f   :  { %2021 = vrot.lane.b32.xlu1 %v1770_v42, %s3313_s21 }
 0xa18   :  { %v2014_v49 = vpop.f32.mrf.mxu0 }
 0xa26   :  { %v1889_v57 = vpop.f32.mrf.mxu2 }
 0xa27   :  { %2027 = vrot.lane.b32.xlu1 %v1889_v57, %s3321_s14 }
 0xa2e   :  { %v1892_v5 = vpop.f32.mrf.mxu2 }
 0xa2f   :  { %2037 = vrot.lane.b32.xlu1 %v2014_v49, %s3322_s15  ;;  %2029 = vrot.lane.b32.xlu0 %v1892_v5, %s3321_s14 }
 0xa36   :  { %v2161_v3 = vpop.f32.mrf.mxu2 }
 0xa38   :  { %v2283_v40 = vpop.f32.mrf.mxu0 }
 0xa39   :  { %2535 = vrot.lane.b32.xlu0 %v2283_v40, %s3313_s21 }
 0xa40   :  { %v2286_v35 = vpop.f32.mrf.mxu0 }
 0xa41   :  { %2537 = vrot.lane.b32.xlu2 %v2286_v35, %s3313_s21 }
 0xa46   :  { %v2164_v51 = vpop.f32.mrf.mxu2 }
 0xa4f   :  { %v2405_v39 = vpop.f32.mrf.mxu2 }
 0xa50   :  { %v2527_v26 = vpop.f32.mrf.mxu0  ;;  %2543 = vrot.lane.b32.xlu1 %v2405_v39, %s3321_s14 }
 0xa51   :  { %2551 = vrot.lane.b32.xlu0 %v2527_v26, %s3322_s15 }
 0xa57   :  { %v2408_v61 = vpop.f32.mrf.mxu2 }
 0xa58   :  { %v2530_v27 = vpop.f32.mrf.mxu0  ;;  %2545 = vrot.lane.b32.xlu1 %v2408_v61, %s3321_s14 }
 0xa59   :  { %2553 = vrot.lane.b32.xlu0 %v2530_v27, %s3322_s15 }
 0xa62   :  { %v2036_v48 = vpop.permute.xlu2 %2035 }
 0xa72   :  { %v2020_v25 = vpop.permute.xlu1 %2019 }
 0xa73   :  { %v2041_v37 = vsel %vm194_vm1, %v1645_v14, %v2020_v25  ;;  %v2710_v25 = vld [vmem:[#allocation2 + $0x128] sm:$0xff] }
 0xa74   :  { %2741 = vmatpush.msra.mxu2 %v2710_v25  ;;  %v2761_v25 = vld [vmem:[#allocation2 + $0x148] sm:$0xff] }
 0xa81   :  { %v2022_v36 = vpop.permute.xlu1 %2021 }
 0xa82   :  { %v2042_v1 = vsel %vm194_vm1, %v1648_v17, %v2022_v36  ;;  %v2709_v36 = vld [vmem:[#allocation2 + $0x120] sm:$0xff] }
 0xa83   :  { %2742 = vmatpush.msra.mxu2 %v2709_v36  ;;  %v2760_v36 = vld [vmem:[#allocation2 + $0x140] sm:$0xff] }
 0xa99   :  { %v2028_v38 = vpop.permute.xlu1 %2027 }
 0xa9a   :  { %v2043_v47 = vsel %vm679_vm10, %v2041_v37, %v2028_v38 }
 0xa9b   :  { %v2045_v20 = vsel %vm682_vm11, %v2043_v47, %v2036_v48  ;;  %v2538_v56 = vpop.permute.xlu2 %2537 }
 0xa9c   :  { %3048 = vmatmul.msk.f32.vlgmr.msra.gmra.mxu1 %vm65_vm0, %v2045_v20  ;;  %v2558_v50 = vsel %vm194_vm1, %v2164_v51, %v2538_v56  ;;  %v3122_v56 = vld [vmem:[%s4257_s3 + $0xb] ss:$0 sm:$0xff] }
 0xaa1   :  { %v2038_v33 = vpop.permute.xlu1 %2037  ;;  %v2030_v29 = vpop.permute.xlu0 %2029 }
 0xaa2   :  { %v2044_v63 = vsel %vm679_vm10, %v2042_v1, %v2030_v29 }
 0xaa3   :  { %v2046_v53 = vsel %vm682_vm11, %v2044_v63, %v2038_v33 }
 0xaa4   :  { %3049 = vmatmul.msk.f32.gmra.mxu1 %vm65_vm0, %v2046_v53 }
 0xaab   :  { %v2536_v52 = vpop.permute.xlu0 %2535 }
 0xaac   :  { %v2557_v15 = vsel %vm194_vm1, %v2161_v3, %v2536_v52 }
 0xac2   :  { %v2544_v43 = vpop.permute.xlu1 %2543 }
 0xac3   :  { %v2552_v54 = vpop.permute.xlu0 %2551  ;;  %v2559_v55 = vsel %vm679_vm10, %v2557_v15, %v2544_v43 }
 0xac4   :  { %v2561_v30 = vsel %vm682_vm11, %v2559_v55, %v2552_v54  ;;  %v4171_v54 = vld [vmem:[%s4257_s3 + $0xa] ss:$0 sm:$0xff] }
 0xac5   :  { %3050 = vmatmul.msk.f32.gmra.mxu1 %vm65_vm0, %v2561_v30 }
 0xaca   :  { %v2546_v12 = vpop.permute.xlu1 %2545 }
 0xacb   :  { %v2554_v2 = vpop.permute.xlu0 %2553  ;;  %v2560_v45 = vsel %vm679_vm10, %v2558_v50, %v2546_v12 }
 0xacc   :  { %v2562_v23 = vsel %vm682_vm11, %v2560_v45, %v2554_v2 }
 0xacd   :  { %3051 = vmatmul.msk.f32.gmra.mxu1 %vm65_vm0, %v2562_v23 }
 0xb19   :  { %v2593_v28 = vpop.f32.mrf.mxu1 }
 0xb1a   :  { %v2594_v46 = vadd.f32 %v3120_v24, %v2593_v28 }
 0xb1c   :  { %v2605_v0 = vadd.f32 %v2594_v46, %v3795_v21 }
 0xb1e   :  { %v2611_v60 = vsel %vm65_vm0, %v2605_v0, 0.0 }
 0xb1f   :  { %2612 = vadd.xlane.f32.xlu2 %v2611_v60 }
 0xb21   :  { %v2596_v11 = vpop.f32.mrf.mxu1 }
 0xb22   :  { %v2597_v4 = vadd.f32 %v3120_v24, %v2596_v11 }
 0xb24   :  { %v2606_v22 = vadd.f32 %v2597_v4, %v3802_v32 }
 0xb26   :  { %v2614_v8 = vsel %vm65_vm0, %v2606_v22, 0.0 }
 0xb27   :  { %2615 = vadd.xlane.f32.xlu1 %v2614_v8 }
 0xb42   :  { %v2599_v9 = vpop.f32.mrf.mxu1 }
 0xb43   :  { %v2600_v16 = vadd.f32 %v3120_v24, %v2599_v9  ;;  %v2767_v9 = vld [vmem:[#allocation2 + $0x178] sm:$0xff] }
 0xb44   :  { %2790 = vmatpush.msrb.mxu3 %v2767_v9 }
 0xb45   :  { %v2607_v10 = vadd.f32 %v2600_v16, %v3828_v7  ;;  %v2766_v16 = vld [vmem:[#allocation2 + $0x170] sm:$0xff] }
 0xb46   :  { %2791 = vmatpush.msrb.mxu3 %v2766_v16 }
 0xb47   :  { %v2617_v13 = vsel %vm65_vm0, %v2607_v10, 0.0 }
 0xb48   :  { %2618 = vadd.xlane.f32.xlu0 %v2617_v13 }
 0xb4a   :  { %v2602_v6 = vpop.f32.mrf.mxu1 }
 0xb4b   :  { %v2603_v58 = vadd.f32 %v3120_v24, %v2602_v6 }
 0xb4d   :  { %v2608_v21 = vadd.f32 %v2603_v58, %v3835_v44  ;;  %v2764_v58 = vld [vmem:[#allocation2 + $0x160] sm:$0xff] }
 0xb4f   :  { %v2620_v14 = vsel %vm65_vm0, %v2608_v21, 0.0 }
 0xb50   :  { %2621 = vadd.xlane.f32.xlu2 %v2620_v14 }
 0xb92   :  { %v2613_v17 = vpop.xlane.xlu2 %2612 }
 0xb93   :  { %v2623_v32 = vmul.f32 %v2613_v17, %v3750_v62  ;;  %v2763_v17 = vld [vmem:[#allocation2 + $0x158] sm:$0xff] }
 0xb95   :  { %v2627_v31 = vsub.f32 %v2605_v0, %v2623_v32 }
 0xb97   :  { %v2631_v19 = vmul.f32 %v2627_v31, %v2627_v31 }
 0xb99   :  { %v2635_v42 = vsel %vm65_vm0, %v2631_v19, 0.0 }
 0xb9a   :  { %2636 = vadd.xlane.f32.xlu1 %v2635_v42  ;;  %v2616_v57 = vpop.xlane.xlu1 %2615 }
 0xb9b   :  { %v2624_v7 = vmul.f32 %v2616_v57, %v3750_v62 }
 0xb9d   :  { %v2628_v49 = vsub.f32 %v2606_v22, %v2624_v7 }
 0xb9f   :  { %v2632_v5 = vmul.f32 %v2628_v49, %v2628_v49 }
 0xba1   :  { %v2638_v40 = vsel %vm65_vm0, %v2632_v5, 0.0 }
 0xba2   :  { %2639 = vadd.xlane.f32.xlu0 %v2638_v40 }
 0xbbb   :  { %v2619_v44 = vpop.xlane.xlu0 %2618 }
 0xbbc   :  { %v2625_v3 = vmul.f32 %v2619_v44, %v3750_v62 }
 0xbbe   :  { %v4155_v35 = vsub.f32 %v2607_v10, %v2625_v3  ;;  %v2765_v10 = vld [vmem:[#allocation2 + $0x168] sm:$0xff] }
 0xbbf   :  { %2792 = vmatpush.msrb.mxu3 %v2765_v10 }
 0xbc0   :  { %v2633_v51 = vmul.f32 %v4155_v35, %v4155_v35 }
 0xbc1   :  { %2793 = vmatpush.msrb.mxu3 %v2764_v58 }
 0xbc2   :  { %v2641_v39 = vsel %vm65_vm0, %v2633_v51, 0.0 }
 0xbc3   :  { %2642 = vadd.xlane.f32.xlu2 %v2641_v39  ;;  %v2622_v26 = vpop.xlane.xlu2 %2621  ;;  %2794 = vmatpush.msrb.mxu3 %v2763_v17 }
 0xbc4   :  { %v2626_v61 = vmul.f32 %v2622_v26, %v3750_v62 }
 0xbc6   :  { %v4161_v27 = vsub.f32 %v2608_v21, %v2626_v61 }
 0xbc8   :  { %v2634_v59 = vmul.f32 %v4161_v27, %v4161_v27 }
 0xbca   :  { %v2644_v18 = vsel %vm65_vm0, %v2634_v59, 0.0 }
 0xbcb   :  { %2645 = vadd.xlane.f32.xlu1 %v2644_v18 }
 0xc0d   :  { %v2637_v37 = vpop.xlane.xlu1 %2636 }
 0xc0e   :  { %v2647_v38 = vmul.f32 %v2637_v37, %v3750_v62  ;;  %v3123_v37 = vld [vmem:[%s4257_s3 + $0x6] ss:$0 sm:$0xff] }
 0xc10   :  { %v2651_v48 = vadd.f32 1e-05, %v2647_v38 }
 0xc12   :  { %3265 = vrsqrt.f32 %v2651_v48  ;;  %vm2661_vm10 = vweird.f32 %v2651_v48 }
 0xc15   :  { %v2640_v47 = vpop.xlane.xlu0 %2639 }
 0xc16   :  { %v2648_v20 = vmul.f32 %v2640_v47, %v3750_v62 }
 0xc18   :  { %v3266_v33 = vpop.eup %3265  ;;  %v2652_v29 = vadd.f32 1e-05, %v2648_v20 }
 0xc19   :  { %v2656_v1 = vmul.f32 %v3266_v33, %v2651_v48  ;;  %vm2662_vm1 = vweird.f32 %v3266_v33 }
 0xc1a   :  { %3267 = vrsqrt.f32 %v2652_v29  ;;  %vm2663_vm11 = vmor %vm2661_vm10, %vm2662_vm1  ;;  %vm2671_vm14 = vweird.f32 %v2652_v29 }
 0xc1b   :  { %v2657_v63 = vmul.f32 %v3266_v33, %v2656_v1 }
 0xc1d   :  { %v2658_v53 = vmul.f32 0.5, %v2657_v63 }
 0xc1f   :  { %v2659_v52 = vsub.f32 1.5, %v2658_v53 }
 0xc20   :  { %v3268_v15 = vpop.eup %3267 }
 0xc21   :  { %v2660_v43 = vmul.f32 %v3266_v33, %v2659_v52  ;;  %v2666_v55 = vmul.f32 %v3268_v15, %v2652_v29  ;;  %vm2672_vm13 = vweird.f32 %v3268_v15 }
 0xc22   :  { %vm2673_vm15 = vmor %vm2671_vm14, %vm2672_vm13 }
 0xc23   :  { %v2664_v30 = vsel %vm2663_vm11, %v3266_v33, %v2660_v43  ;;  %v2667_v12 = vmul.f32 %v3268_v15, %v2666_v55  ;;  %v3124_v43 = vld [vmem:[%s4257_s3 + $0x7] ss:$0 sm:$0xff] }
 0xc24   :  { %v2695_v50 = vmul.f32 %v2664_v30, %v2627_v31 }
 0xc25   :  { %v2668_v45 = vmul.f32 0.5, %v2667_v12 }
 0xc26   :  { %v2700_v2 = vmul.f32 %v4171_v54, %v2695_v50 }
 0xc27   :  { %v2669_v24 = vsub.f32 1.5, %v2668_v45 }
 0xc28   :  { %v4177_v23 = vadd.f32 %v3122_v56, %v2700_v2 }
 0xc29   :  { %v2670_v28 = vmul.f32 %v3268_v15, %v2669_v24 }
 0xc2a   :  { %3052 = vmatmul.msk.f32.vlgmr.msra.gmra.mxu2 %vm65_vm0, %v4177_v23 }
 0xc2b   :  { %v2674_v46 = vsel %vm2673_vm15, %v3268_v15, %v2670_v28 }
 0xc2c   :  { %v2696_v0 = vmul.f32 %v2674_v46, %v2628_v49 }
 0xc2e   :  { %v2701_v60 = vmul.f32 %v4171_v54, %v2696_v0 }
 0xc30   :  { %v4182_v11 = vadd.f32 %v3122_v56, %v2701_v60 }
 0xc32   :  { %3053 = vmatmul.msk.f32.gmra.mxu2 %vm65_vm0, %v4182_v11 }
 0xc36   :  { %v2643_v4 = vpop.xlane.xlu2 %2642 }
 0xc37   :  { %v2649_v22 = vmul.f32 %v2643_v4, %v3750_v62 }
 0xc39   :  { %v2653_v8 = vadd.f32 1e-05, %v2649_v22 }
 0xc3b   :  { %3269 = vrsqrt.f32 %v2653_v8  ;;  %vm2681_vm3 = vweird.f32 %v2653_v8 }
 0xc3e   :  { %v2646_v13 = vpop.xlane.xlu1 %2645 }
 0xc3f   :  { %v2650_v6 = vmul.f32 %v2646_v13, %v3750_v62 }
 0xc41   :  { %v3270_v21 = vpop.eup %3269  ;;  %v2654_v14 = vadd.f32 1e-05, %v2650_v6 }
 0xc42   :  { %v2676_v32 = vmul.f32 %v3270_v21, %v2653_v8  ;;  %vm2682_vm2 = vweird.f32 %v3270_v21 }
 0xc43   :  { %3271 = vrsqrt.f32 %v2654_v14  ;;  %vm2683_vm4 = vmor %vm2681_vm3, %vm2682_vm2  ;;  %vm2691_vm6 = vweird.f32 %v2654_v14 }
 0xc44   :  { %v2677_v31 = vmul.f32 %v3270_v21, %v2676_v32 }
 0xc46   :  { %v2678_v19 = vmul.f32 0.5, %v2677_v31 }
 0xc48   :  { %v2679_v42 = vsub.f32 1.5, %v2678_v19 }
 0xc49   :  { %v3272_v57 = vpop.eup %3271 }
 0xc4a   :  { %v2680_v7 = vmul.f32 %v3270_v21, %v2679_v42  ;;  %v2686_v49 = vmul.f32 %v3272_v57, %v2654_v14  ;;  %vm2692_vm5 = vweird.f32 %v3272_v57 }
 0xc4b   :  { %vm2693_vm7 = vmor %vm2691_vm6, %vm2692_vm5 }
 0xc4c   :  { %v2684_v5 = vsel %vm2683_vm4, %v3270_v21, %v2680_v7  ;;  %v2687_v40 = vmul.f32 %v3272_v57, %v2686_v49 }
 0xc4d   :  { %v2697_v44 = vmul.f32 %v2684_v5, %v4155_v35  ;;  %v2762_v35 = vld [vmem:[#allocation2 + $0x150] sm:$0xff] }
 0xc4e   :  { %v2688_v3 = vmul.f32 0.5, %v2687_v40  ;;  %2795 = vmatpush.msrb.mxu3 %v2762_v35 }
 0xc4f   :  { %v2702_v51 = vmul.f32 %v4171_v54, %v2697_v44 }
 0xc50   :  { %v2689_v39 = vsub.f32 1.5, %v2688_v3  ;;  %2796 = vmatpush.msrb.mxu3 %v2761_v25 }
 0xc51   :  { %v2707_v26 = vadd.f32 %v3122_v56, %v2702_v51 }
 0xc52   :  { %v2690_v61 = vmul.f32 %v3272_v57, %v2689_v39  ;;  %2797 = vmatpush.msrb.mxu3 %v2760_v36 }
 0xc53   :  { %3054 = vmatmul.msk.f32.gmra.mxu2 %vm65_vm0, %v2707_v26 }
 0xc54   :  { %v2694_v59 = vsel %vm2693_vm7, %v3272_v57, %v2690_v61 }
 0xc55   :  { %v2698_v18 = vmul.f32 %v2694_v59, %v4161_v27 }
 0xc57   :  { %v2703_v34 = vmul.f32 %v4171_v54, %v2698_v18 }
 0xc59   :  { %v2708_v41 = vadd.f32 %v3122_v56, %v2703_v34 }
 0xc5b   :  { %3055 = vmatmul.msk.f32.gmra.mxu2 %vm65_vm0, %v2708_v41 }
 0xcad   :  { %v2744_v38 = vpop.f32.mrf.mxu2 }
 0xcae   :  { %v2745_v48 = vadd.f32 %v3123_v37, %v2744_v38 }
 0xcb0   :  { %v2756_v47 = vmax.f32 %v2745_v48, 0.0 }
 0xcb2   :  { %3056 = vmatmul.msk.f32.vlgmr.msrb.gmra.mxu3 %vm1391_vm12, %v2756_v47  ;;  %v3126_v47 = vld [vmem:[%s4257_s3 + $0xd] ss:$0 sm:$0xff] }
 0xcb5   :  { %v2747_v27 = vpop.f32.mrf.mxu2 }
 0xcb6   :  { %v2748_v20 = vadd.f32 %v3123_v37, %v2747_v27 }
 0xcb8   :  { %v2757_v33 = vmax.f32 %v2748_v20, 0.0 }
 0xcba   :  { %3057 = vmatmul.msk.f32.gmra.mxu3 %vm1391_vm12, %v2757_v33 }
 0xcd6   :  { %v2750_v1 = vpop.f32.mrf.mxu2 }
 0xcd7   :  { %v2751_v29 = vadd.f32 %v3123_v37, %v2750_v1 }
 0xcd9   :  { %v2758_v63 = vmax.f32 %v2751_v29, 0.0 }
 0xcdb   :  { %3058 = vmatmul.msk.f32.gmra.mxu3 %vm1391_vm12, %v2758_v63 }
 0xcde   :  { %v2753_v53 = vpop.f32.mrf.mxu2 }
 0xcdf   :  { %v2754_v52 = vadd.f32 %v3123_v37, %v2753_v53  ;;  %v3125_v37 = vld [vmem:[%s4257_s3 + $0xc] ss:$0 sm:$0xff] }
 0xce1   :  { %v2759_v15 = vmax.f32 %v2754_v52, 0.0 }
 0xce3   :  { %3059 = vmatmul.msk.f32.gmra.mxu3 %vm1391_vm12, %v2759_v15 }
 0xd35   :  { %v2799_v54 = vpop.f32.mrf.mxu3 }
 0xd36   :  { %v2800_v55 = vadd.f32 %v3124_v43, %v2799_v54 }
 0xd38   :  { %v2811_v30 = vadd.f32 %v2800_v55, %v4177_v23 }
 0xd3a   :  { %v2817_v56 = vsel %vm65_vm0, %v2811_v30, 0.0 }
 0xd3b   :  { %2818 = vadd.xlane.f32.xlu0 %v2817_v56 }
 0xd3d   :  { %v2802_v50 = vpop.f32.mrf.mxu3 }
 0xd3e   :  { %v2803_v12 = vadd.f32 %v3124_v43, %v2802_v50 }
 0xd40   :  { %v2812_v2 = vadd.f32 %v2803_v12, %v4182_v11 }
 0xd42   :  { %v2820_v45 = vsel %vm65_vm0, %v2812_v2, 0.0 }
 0xd43   :  { %2821 = vadd.xlane.f32.xlu2 %v2820_v45 }
 0xd5e   :  { %v2805_v24 = vpop.f32.mrf.mxu3 }
 0xd5f   :  { %v2806_v28 = vadd.f32 %v3124_v43, %v2805_v24 }
 0xd61   :  { %v2813_v46 = vadd.f32 %v2806_v28, %v2707_v26 }
 0xd63   :  { %v2823_v0 = vsel %vm65_vm0, %v2813_v46, 0.0 }
 0xd64   :  { %2824 = vadd.xlane.f32.xlu1 %v2823_v0 }
 0xd66   :  { %v2808_v60 = vpop.f32.mrf.mxu3 }
 0xd67   :  { %v2809_v4 = vadd.f32 %v3124_v43, %v2808_v60 }
 0xd69   :  { %v2814_v22 = vadd.f32 %v2809_v4, %v2708_v41 }
 0xd6b   :  { %v2826_v23 = vsel %vm65_vm0, %v2814_v22, 0.0 }
 0xd6c   :  { %2827 = vadd.xlane.f32.xlu0 %v2826_v23 }
 0xdae   :  { %v2819_v8 = vpop.xlane.xlu0 %2818 }
 0xdaf   :  { %v2829_v9 = vmul.f32 %v2819_v8, %v3750_v62 }
 0xdb1   :  { %v2833_v16 = vsub.f32 %v2811_v30, %v2829_v9 }
 0xdb3   :  { %v2837_v11 = vmul.f32 %v2833_v16, %v2833_v16 }
 0xdb5   :  { %v2841_v10 = vsel %vm65_vm0, %v2837_v11, 0.0 }
 0xdb6   :  { %2842 = vadd.xlane.f32.xlu2 %v2841_v10  ;;  %v2822_v13 = vpop.xlane.xlu2 %2821 }
 0xdb7   :  { %v2830_v6 = vmul.f32 %v2822_v13, %v3750_v62 }
 0xdb9   :  { %v2834_v58 = vsub.f32 %v2812_v2, %v2830_v6 }
 0xdbb   :  { %v2838_v21 = vmul.f32 %v2834_v58, %v2834_v58 }
 0xdbd   :  { %v2844_v14 = vsel %vm65_vm0, %v2838_v21, 0.0 }
 0xdbe   :  { %2845 = vadd.xlane.f32.xlu1 %v2844_v14 }
 0xdd7   :  { %v2825_v17 = vpop.xlane.xlu1 %2824 }
 0xdd8   :  { %v2831_v32 = vmul.f32 %v2825_v17, %v3750_v62 }
 0xdda   :  { %v4215_v31 = vsub.f32 %v2813_v46, %v2831_v32 }
 0xddc   :  { %v2839_v19 = vmul.f32 %v4215_v31, %v4215_v31 }
 0xdde   :  { %v2847_v42 = vsel %vm65_vm0, %v2839_v19, 0.0 }
 0xddf   :  { %v2828_v57 = vpop.xlane.xlu0 %2827  ;;  %2848 = vadd.xlane.f32.xlu0 %v2847_v42 }
 0xde0   :  { %v2832_v7 = vmul.f32 %v2828_v57, %v3750_v62 }
 0xde2   :  { %v4221_v49 = vsub.f32 %v2814_v22, %v2832_v7 }
 0xde4   :  { %v2840_v5 = vmul.f32 %v4221_v49, %v4221_v49 }
 0xde6   :  { %v2850_v40 = vsel %vm65_vm0, %v2840_v5, 0.0 }
 0xde7   :  { %2851 = vadd.xlane.f32.xlu2 %v2850_v40 }
 0xe29   :  { %v2843_v44 = vpop.xlane.xlu2 %2842 }
 0xe2a   :  { %v2853_v3 = vmul.f32 %v2843_v44, %v3750_v62 }
 0xe2c   :  { %v2857_v51 = vadd.f32 1e-05, %v2853_v3 }
 0xe2e   :  { %3273 = vrsqrt.f32 %v2857_v51  ;;  %vm2867_vm8 = vweird.f32 %v2857_v51 }
 0xe31   :  { %v2846_v39 = vpop.xlane.xlu1 %2845 }
 0xe32   :  { %v2854_v26 = vmul.f32 %v2846_v39, %v3750_v62 }
 0xe34   :  { %v3274_v61 = vpop.eup %3273  ;;  %v2858_v18 = vadd.f32 1e-05, %v2854_v26 }
 0xe35   :  { %v2862_v59 = vmul.f32 %v3274_v61, %v2857_v51  ;;  %vm2868_vm12 = vweird.f32 %v3274_v61 }
 0xe36   :  { %3275 = vrsqrt.f32 %v2858_v18  ;;  %vm2869_vm9 = vmor %vm2867_vm8, %vm2868_vm12  ;;  %vm2877_vm10 = vweird.f32 %v2858_v18 }
 0xe37   :  { %v2863_v34 = vmul.f32 %v3274_v61, %v2862_v59 }
 0xe39   :  { %v2864_v41 = vmul.f32 0.5, %v2863_v34 }
 0xe3b   :  { %v2865_v35 = vsub.f32 1.5, %v2864_v41 }
 0xe3c   :  { %v3276_v25 = vpop.eup %3275 }
 0xe3d   :  { %v2866_v36 = vmul.f32 %v3274_v61, %v2865_v35  ;;  %v2872_v38 = vmul.f32 %v3276_v25, %v2858_v18  ;;  %vm2878_vm1 = vweird.f32 %v3276_v25 }
 0xe3e   :  { %vm2879_vm11 = vmor %vm2877_vm10, %vm2878_vm1 }
 0xe3f   :  { %v2870_v48 = vsel %vm2869_vm9, %v3274_v61, %v2866_v36  ;;  %v2873_v20 = vmul.f32 %v3276_v25, %v2872_v38 }
 0xe40   :  { %v2901_v27 = vmul.f32 %v2870_v48, %v2833_v16 }
 0xe41   :  { %v2874_v1 = vmul.f32 0.5, %v2873_v20 }
 0xe42   :  { %v2906_v33 = vmul.f32 %v3125_v37, %v2901_v27 }
 0xe43   :  { %v2875_v63 = vsub.f32 1.5, %v2874_v1 }
 0xe44   :  { %v2911_v29 = vadd.f32 %v3126_v47, %v2906_v33 }
 0xe45   :  { %v2876_v53 = vmul.f32 %v3276_v25, %v2875_v63 }
 0xe46   :  { %2915 = vst.msk [vmem:[%s4258_s4] sm:$0xff] %vm65_vm0, %v2911_v29 }
 0xe47   :  { %v2880_v52 = vsel %vm2879_vm11, %v3276_v25, %v2876_v53 }
 0xe48   :  { %v2902_v15 = vmul.f32 %v2880_v52, %v2834_v58 }
 0xe4a   :  { %v2907_v43 = vmul.f32 %v3125_v37, %v2902_v15 }
 0xe4c   :  { %v2912_v54 = vadd.f32 %v3126_v47, %v2907_v43 }
 0xe4e   :  { %2916 = vst.msk [vmem:[%s4258_s4 + $0x8] sm:$0xff] %vm65_vm0, %v2912_v54 }
 0xe52   :  { %v2849_v55 = vpop.xlane.xlu0 %2848 }
 0xe53   :  { %v2855_v30 = vmul.f32 %v2849_v55, %v3750_v62 }
 0xe55   :  { %v2859_v56 = vadd.f32 1e-05, %v2855_v30 }
 0xe57   :  { %3277 = vrsqrt.f32 %v2859_v56  ;;  %vm2887_vm14 = vweird.f32 %v2859_v56 }
 0xe5a   :  { %v2852_v50 = vpop.xlane.xlu2 %2851 }
 0xe5b   :  { %v2856_v12 = vmul.f32 %v2852_v50, %v3750_v62 }
 0xe5d   :  { %v3278_v2 = vpop.eup %3277  ;;  %v2860_v45 = vadd.f32 1e-05, %v2856_v12 }
 0xe5e   :  { %v2882_v24 = vmul.f32 %v3278_v2, %v2859_v56  ;;  %vm2888_vm13 = vweird.f32 %v3278_v2 }
 0xe5f   :  { %3279 = vrsqrt.f32 %v2860_v45  ;;  %vm2889_vm15 = vmor %vm2887_vm14, %vm2888_vm13  ;;  %vm2897_vm3 = vweird.f32 %v2860_v45 }
 0xe60   :  { %v2883_v28 = vmul.f32 %v3278_v2, %v2882_v24 }
 0xe62   :  { %v2884_v46 = vmul.f32 0.5, %v2883_v28 }
 0xe64   :  { %v2885_v0 = vsub.f32 1.5, %v2884_v46 }
 0xe65   :  { %v3280_v60 = vpop.eup %3279 }
 0xe66   :  { %v2886_v4 = vmul.f32 %v3278_v2, %v2885_v0  ;;  %v2892_v22 = vmul.f32 %v3280_v60, %v2860_v45  ;;  %vm2898_vm2 = vweird.f32 %v3280_v60 }
 0xe67   :  { %vm2899_vm4 = vmor %vm2897_vm3, %vm2898_vm2 }
 0xe68   :  { %v2890_v23 = vsel %vm2889_vm15, %v3278_v2, %v2886_v4  ;;  %v2893_v8 = vmul.f32 %v3280_v60, %v2892_v22 }
 0xe69   :  { %v2903_v9 = vmul.f32 %v2890_v23, %v4215_v31 }
 0xe6a   :  { %v2894_v16 = vmul.f32 0.5, %v2893_v8 }
 0xe6b   :  { %v2908_v11 = vmul.f32 %v3125_v37, %v2903_v9 }
 0xe6c   :  { %v2895_v62 = vsub.f32 1.5, %v2894_v16 }
 0xe6d   :  { %v2913_v10 = vadd.f32 %v3126_v47, %v2908_v11 }
 0xe6e   :  { %v2896_v13 = vmul.f32 %v3280_v60, %v2895_v62 }
 0xe6f   :  { %2917 = vst.msk [vmem:[%s4258_s4 + $0x10] sm:$0xff] %vm65_vm0, %v2913_v10 }
 0xe70   :  { %v2900_v6 = vsel %vm2899_vm4, %v3280_v60, %v2896_v13 }
 0xe71   :  { %v2904_v58 = vmul.f32 %v2900_v6, %v4221_v49 }
 0xe73   :  { %v2909_v21 = vmul.f32 %v3125_v37, %v2904_v58 }
 0xe75   :  { %v2914_v14 = vadd.f32 %v3126_v47, %v2909_v21 }
 0xe77   :  { %2918 = vst.msk [vmem:[%s4258_s4 + $0x18] sm:$0xff] %vm65_vm0, %v2914_v14 }
 0xe78   :  { %2923 = vsyncpa [#allocation3], 1 }

</bundles_post_ra>
